<compile_context>
chip_gen: v5e
topology: v5e:2x2
jax: 0.10.0
libtpu: 0.0.40
codegen_flags: <defaults>
</compile_context>

<pallas_src>
import functools
import math

import jax
import jax.numpy as jnp
from jax import lax
from jax.experimental import pallas as pl
from jax.experimental.pallas import tpu as pltpu

EPS = 1e-5  # nn.LayerNorm default


def _decoder_block_kernel(xq_ref, xf_ref, val_ref, key_ref, trg_ref, src_ref,
                          aqk_ref, wvo_ref, w1_ref, b1_ref, w2_ref, vecs_ref,
                          out_ref, *, heads, head_dim):
    H, D = heads, head_dim
    f32, bf16 = jnp.float32, jnp.bfloat16
    neg_large = jnp.float32(1e20)

    x_q = xq_ref[...]            # (tq, E)  f32: residual + self-attn queries
    x_f = xf_ref[...]            # (L, E)   f32: self-attn keys/values source
    v_in = val_ref[...]          # (Lkv, E) f32: cross-attn values source
    k_in = key_ref[...]          # (Lkv, E) f32: cross-attn keys source

    # Packed bias / gain vectors: rows = [bo_a, g_n, be_n, bo_t, g1, be1, b2, g2, be2]
    vecs = vecs_ref[...]         # (9, E) f32
    bo_a, g_n, be_n = vecs[0:1], vecs[1:2], vecs[2:3]
    bo_t, g1, be1 = vecs[3:4], vecs[4:5], vecs[5:6]
    b2, g2, be2 = vecs[6:7], vecs[7:8], vecs[8:9]

    # Shared-per-head projections, algebraically folded in the wrapper:
    #   A   = Wq.T @ Wk / sqrt(E)       (D, D)    -> only ONE projection per stage
    #   Wvo = Wv.T @ Wo.T[hD:(h+1)D]    (H, D, E) -> V-projection folded into fc_out
    # Weights are DMA'd once; the head broadcast below happens in registers/VMEM.
    aqk = aqk_ref[...]                                          # (D, 2D) bf16
    a_self = jnp.broadcast_to(aqk[:, 0:D][None], (H, D, D))
    a_cross = jnp.broadcast_to(aqk[:, D:2 * D][None], (H, D, D))
    wvo = wvo_ref[...]                                          # (2H, D, E) bf16
    wvo_self, wvo_cross = wvo[0:H], wvo[H:2 * H]

    def layernorm(t, g, b):
        mu = jnp.mean(t, axis=-1, keepdims=True)
        var = jnp.mean((t - mu) ** 2, axis=-1, keepdims=True)
        return (t - mu) * lax.rsqrt(var + EPS) * g + b

    def split_heads(t):
        # (Lx, E) -> (H, Lx, D).  At production D=128 the lane slices are aligned.
        # TODO(synk): replace with a single pltpu.einshape minor-dim split if/when
        # the split form is available; stack-of-static-slices lowers reliably.
        return jnp.stack([t[:, h * D:(h + 1) * D] for h in range(H)],
                         axis=0).astype(bf16)

    def additive_mask(mask_ref):
        # wrapper ships {0,1} int8: keep -> 0.0, masked -> -1e20 (exp underflows to 0).
        return (mask_ref[...].astype(f32) - 1.0) * neg_large

    def attention(q_heads, k_heads, v_heads, a_qk, wvo_h, mask_add, bo):
        # q/k/v heads are *unprojected* activations — projections are folded into
        # a_qk (query side) and wvo_h (value side + fc_out head merge).
        qp = jnp.einsum("hqd,hde->hqe", q_heads, a_qk,
                        preferred_element_type=f32).astype(bf16)       # (H, tq, D)
        energy = jnp.einsum("hqd,hkd->hqk", qp, k_heads,
                            preferred_element_type=f32)                # (H, tq, Lk)
        energy = energy + mask_add[None, :, :]
        m = jnp.max(energy, axis=-1, keepdims=True)
        p = jnp.exp(energy - m)
        s = jnp.sum(p, axis=-1, keepdims=True)
        attn = (p * pl.reciprocal(s, approx=True)).astype(bf16)        # softmax
        ctx = jnp.einsum("hqk,hkd->hqd", attn, v_heads,
                         preferred_element_type=f32)                   # (H, tq, D)
        # Head merge + fc_out (V projection already folded into wvo_h); intermediate
        # is bounded by the q tile:  (H, tq, E) f32.
        proj = jnp.einsum("hqd,hde->hqe", ctx.astype(bf16), wvo_h,
                          preferred_element_type=f32)
        return jnp.sum(proj, axis=0) + bo                              # (tq, E) f32

    # ---- stage 1: masked self-attention over x (trg mask) ----
    xq_h = split_heads(x_q)
    xf_h = split_heads(x_f)          # K and V source (no projection needed)
    att_a = attention(xq_h, xf_h, xf_h, a_self, wvo_self,
                      additive_mask(trg_ref), bo_a)
    query = layernorm(att_a + x_q, g_n, be_n)       # dropout = identity (eval mode)

    # ---- stage 2: cross-attention (q = query tile, k = key, v = value, src mask) ----
    q_h = split_heads(query)
    k_h = split_heads(k_in)
    v_h = split_heads(v_in)
    att_t = attention(q_h, k_h, v_h, a_cross, wvo_cross,
                      additive_mask(src_ref), bo_t)
    x1 = layernorm(att_t + query, g1, be1)

    # ---- stage 3: feed-forward (Linear -> ReLU -> Linear) + final norm ----
    h1 = jnp.dot(x1.astype(bf16), w1_ref[...], preferred_element_type=f32) + b1_ref[...]
    h1 = jnp.maximum(h1, 0.0)
    ff = jnp.dot(h1.astype(bf16), w2_ref[...], preferred_element_type=f32) + b2
    out_ref[...] = layernorm(ff + x1, g2, be2).astype(out_ref.dtype)


def decoder_block(x, value, key, src_mask, trg_mask, params, *, heads,
                  block_q=None, out_dtype=jnp.float32):
    """x:(B,L,E)  value,key:(B,Lkv,E)  trg_mask:(B,L,L)  src_mask:(B,L,Lkv)."""
    B, L, E = x.shape
    Lkv = value.shape[1]
    D = E // heads
    FE = params["w1"].shape[0]
    scale = 1.0 / math.sqrt(E)
    f32, bf16 = jnp.float32, jnp.bfloat16

    if block_q is None:
        block_q = min(L, 128)
    assert L % block_q == 0 and (block_q % 8 == 0 or block_q == L), (L, block_q)
    nq = L // block_q

    # --- fold the shared-per-head projections (see kernel header) ---
    a_self = (params["Wq_a"].T @ params["Wk_a"]) * scale            # (D, D)
    a_cross = (params["Wq_t"].T @ params["Wk_t"]) * scale
    aqk = jnp.concatenate([a_self, a_cross], axis=1).astype(bf16)   # (D, 2D)

    def fold_vo(Wv, Wo):                                            # -> (H, D, E)
        wo_rows = Wo.T.reshape(heads, D, E)                         # per-head rows of Wo.T
        return jnp.einsum("dk,hke->hde", Wv.T, wo_rows)

    wvo = jnp.concatenate([fold_vo(params["Wv_a"], params["Wo_a"]),
                           fold_vo(params["Wv_t"], params["Wo_t"])],
                          axis=0).astype(bf16)                      # (2H, D, E)

    w1t = params["w1"].T.astype(bf16)                               # (E, FE)
    w2t = params["w2"].T.astype(bf16)                               # (FE, E)
    b1 = params["b1"].reshape(1, FE).astype(f32)

    vecs = jnp.stack([params["bo_a"], params["g_n"], params["be_n"],
                      params["bo_t"], params["g1"], params["be1"],
                      params["b2"], params["g2"], params["be2"]],
                     axis=0).astype(f32)                            # (9, E)

    # Masks as {0,1} int8 (4x less HBM DMA than f32 additive masks).  The q-tile axis
    # is exposed as a major dim so every block equals its full trailing dims.
    # TODO(synk): for purely causal trg masks / length-based src masks, generate the
    # mask in-kernel from broadcasted_iota + scalar-prefetched lengths instead.
    trg_i8 = (trg_mask != 0).astype(jnp.int8).reshape(B, nq, block_q, L)
    src_i8 = (src_mask != 0).astype(jnp.int8).reshape(B, nq, block_q, Lkv)

    kernel = functools.partial(_decoder_block_kernel, heads=heads, head_dim=D)

    # VMEM limit ≈ 75% of physical (≈96 MiB on v5e/v6e, ≈48 MiB on v7x).
    try:
        info = pltpu.get_tpu_info()
        cap = getattr(info, "vmem_capacity_bytes", 128 * 1024 * 1024)
        vmem_limit = int(min(100 * 1024 * 1024, (cap * 3) // 4))
    except Exception:
        vmem_limit = 48 * 1024 * 1024

    def build(single_buffer_consts):
        def const_spec(shape):
            idx = lambda b, qi: (0,) * len(shape)
            if single_buffer_consts:
                # Constant index_map -> one VMEM buffer is enough (v7x VMEM saver).
                return pl.BlockSpec(shape, idx, pipeline_mode=pl.Buffered(1))
            return pl.BlockSpec(shape, idx)

        in_specs = [
            pl.BlockSpec((None, block_q, E), lambda b, qi: (b, qi, 0)),        # x (q tile)
            pl.BlockSpec((None, L, E), lambda b, qi: (b, 0, 0)),               # x (full: self K/V)
            pl.BlockSpec((None, Lkv, E), lambda b, qi: (b, 0, 0)),             # value
            pl.BlockSpec((None, Lkv, E), lambda b, qi: (b, 0, 0)),             # key
            pl.BlockSpec((None, None, block_q, L), lambda b, qi: (b, qi, 0, 0)),    # trg mask
            pl.BlockSpec((None, None, block_q, Lkv), lambda b, qi: (b, qi, 0, 0)),  # src mask
            const_spec((D, 2 * D)),               # folded Q.K projections (self | cross)
            const_spec((2 * heads, D, E)),        # folded V.fc_out weights (self ; cross)
            const_spec((E, FE)),                  # ffn w1.T
            const_spec((1, FE)),                  # ffn b1
            const_spec((FE, E)),                  # ffn w2.T
            const_spec((9, E)),                   # packed biases / LN gains
        ]
        # TODO(synk): for very long KV (L, Lkv >> a few K), add an inner KV loop with
        # flash-style online softmax so the (H, tq, Lk) energy tile is also bounded.
        grid_spec = pltpu.PrefetchScalarGridSpec(
            num_scalar_prefetch=0,
            grid=(B, nq),
            in_specs=in_specs,
            out_specs=pl.BlockSpec((None, block_q, E), lambda b, qi: (b, qi, 0)),
        )
        return pl.pallas_call(
            kernel,
            out_shape=jax.ShapeDtypeStruct((B, L, E), out_dtype),
            grid_spec=grid_spec,
            compiler_params=pltpu.CompilerParams(
                dimension_semantics=("parallel", "parallel"),
                vmem_limit_bytes=vmem_limit),
        )

    operands = (x, x, value, key, trg_i8, src_i8, aqk, wvo, w1t, b1, w2t, vecs)
    try:
        return build(True)(*operands)
    except Exception:
        # Fallback if this JAX build rejects single-buffered (pl.Buffered(1)) specs.
        return build(False)(*operands)


# ----------------------------- pure-JAX reference -----------------------------

def _ln_ref(t, g, b):
    mu = t.mean(-1, keepdims=True)
    var = ((t - mu) ** 2).mean(-1, keepdims=True)
    return (t - mu) / jnp.sqrt(var + EPS) * g + b


def _self_attention_ref(values, keys, query, mask, Wq, Wk, Wv, Wo, bo, heads):
    B, Lq, E = query.shape
    D = E // heads

    def proj(t, W):
        th = t.reshape(B, -1, heads, D)
        return jnp.einsum("blhd,ed->blhe", th, W)     # x @ W.T per head

    q = proj(query, Wq)
    k = proj(keys, Wk)
    v = proj(values, Wv)
    energy = jnp.einsum("bqhd,bkhd->bhqk", q, k)
    energy = jnp.where(mask[:, None, :, :] == 0, -1e20, energy)
    attn = jax.nn.softmax(energy / math.sqrt(E), axis=3)
    out = jnp.einsum("bhqk,bkhd->bqhd", attn, v).reshape(B, Lq, E)
    return out @ Wo.T + bo


def decoder_block_ref(x, value, key, src_mask, trg_mask, p, *, heads):
    att = _self_attention_ref(x, x, x, trg_mask,
                              p["Wq_a"], p["Wk_a"], p["Wv_a"], p["Wo_a"], p["bo_a"], heads)
    query = _ln_ref(att + x, p["g_n"], p["be_n"])
    att2 = _self_attention_ref(value, key, query, src_mask,
                               p["Wq_t"], p["Wk_t"], p["Wv_t"], p["Wo_t"], p["bo_t"], heads)
    x1 = _ln_ref(att2 + query, p["g1"], p["be1"])
    ff = jax.nn.relu(x1 @ p["w1"].T + p["b1"]) @ p["w2"].T + p["b2"]
    return _ln_ref(ff + x1, p["g2"], p["be2"])


if __name__ == "__main__":
    B, L, E = 2, 16, 32
    heads = 4
    D = E // heads
    forward_expansion = 2
    FE = forward_expansion * E
    Lkv = 8
    block_q = 8          # -> grid (B, L // block_q) = (2, 2): exercises the q tiling

    key0 = jax.random.PRNGKey(0)
    ks = jax.random.split(key0, 24)
    rnd = lambda i, shape, s: jax.random.normal(ks[i], shape, jnp.float32) * s

    params = {
        # DecoderBlock.attention (self-attention over x)
        "Wq_a": rnd(0, (D, D), 0.2), "Wk_a": rnd(1, (D, D), 0.2), "Wv_a": rnd(2, (D, D), 0.2),
        "Wo_a": rnd(3, (E, E), 0.1), "bo_a": rnd(4, (E,), 0.1),
        # DecoderBlock.norm
        "g_n": 1.0 + rnd(5, (E,), 0.1), "be_n": rnd(6, (E,), 0.1),
        # TransformerBlock.attention (cross-attention)
        "Wq_t": rnd(7, (D, D), 0.2), "Wk_t": rnd(8, (D, D), 0.2), "Wv_t": rnd(9, (D, D), 0.2),
        "Wo_t": rnd(10, (E, E), 0.1), "bo_t": rnd(11, (E,), 0.1),
        # TransformerBlock.norm1 / norm2
        "g1": 1.0 + rnd(12, (E,), 0.1), "be1": rnd(13, (E,), 0.1),
        "g2": 1.0 + rnd(14, (E,), 0.1), "be2": rnd(15, (E,), 0.1),
        # feed_forward
        "w1": rnd(16, (FE, E), 0.1), "b1": rnd(17, (FE,), 0.1),
        "w2": rnd(18, (E, FE), 0.1), "b2": rnd(19, (E,), 0.1),
    }

    x = jax.random.normal(ks[20], (B, L, E), jnp.float32)
    value = jax.random.normal(ks[21], (B, Lkv, E), jnp.float32)
    key_t = jax.random.normal(ks[22], (B, Lkv, E), jnp.float32)

    # causal target mask (0 => masked); full source mask
    trg_mask = jnp.broadcast_to(jnp.tril(jnp.ones((L, L), jnp.float32)), (B, L, L))
    src_mask = jnp.ones((B, L, Lkv), jnp.float32)

    out = decoder_block(x, value, key_t, src_mask, trg_mask, params,
                        heads=heads, block_q=block_q)
    out = jax.block_until_ready(out)

    ref = decoder_block_ref(x, value, key_t, src_mask, trg_mask, params, heads=heads)
    assert out.shape == (B, L, E)
    max_diff = float(jnp.max(jnp.abs(out - ref)))
    # bf16 matmul inputs vs f32 reference -> ~1e-2 scale tolerance.
    assert jnp.allclose(out, ref, rtol=5e-2, atol=5e-2), f"max abs diff {max_diff}"

    # TODO(synk): dropout is identity here (eval mode); training-mode dropout would
    # need pltpu.prng_seed / pltpu.prng_random_bits.
    print("KERNEL_OK")
</pallas_src>

<mosaic_0001>
module attributes {stable_mosaic.version = 11 : i64} {
  func.func @_decoder_block_kernel(%arg0: i32, %arg1: i32, %arg2: memref<1x8x32xf32, #tpu.memory_space<vmem>>, %arg3: memref<1x16x32xf32, #tpu.memory_space<vmem>>, %arg4: memref<1x8x32xf32, #tpu.memory_space<vmem>>, %arg5: memref<1x8x32xf32, #tpu.memory_space<vmem>>, %arg6: memref<1x1x8x16xi8, #tpu.memory_space<vmem>>, %arg7: memref<1x1x8x8xi8, #tpu.memory_space<vmem>>, %arg8: memref<8x16xbf16, #tpu.memory_space<vmem>>, %arg9: memref<8x8x32xbf16, #tpu.memory_space<vmem>>, %arg10: memref<32x64xbf16, #tpu.memory_space<vmem>>, %arg11: memref<1x64xf32, #tpu.memory_space<vmem>>, %arg12: memref<64x32xbf16, #tpu.memory_space<vmem>>, %arg13: memref<9x32xf32, #tpu.memory_space<vmem>>, %arg14: memref<1x8x32xf32, #tpu.memory_space<vmem>>) attributes {dimension_semantics = [#tpu.dimension_semantics<parallel>, #tpu.dimension_semantics<parallel>], iteration_bounds = array<i64: 2, 2>, scalar_prefetch = 0 : i64, scratch_operands = 0 : i64, tpu.core_type = #tpu.core_type<tc>, window_params = [{transform_indices = @transform_0, window_bounds = array<i64: 1, 8, 32>}, {transform_indices = @transform_1, window_bounds = array<i64: 1, 16, 32>}, {transform_indices = @transform_2, window_bounds = array<i64: 1, 8, 32>}, {transform_indices = @transform_3, window_bounds = array<i64: 1, 8, 32>}, {transform_indices = @transform_4, window_bounds = array<i64: 1, 1, 8, 16>}, {transform_indices = @transform_5, window_bounds = array<i64: 1, 1, 8, 8>}, {pipeline_mode = #tpu.pipeline_mode<synchronous>, transform_indices = @transform_6, window_bounds = array<i64: 8, 16>}, {pipeline_mode = #tpu.pipeline_mode<synchronous>, transform_indices = @transform_7, window_bounds = array<i64: 8, 8, 32>}, {pipeline_mode = #tpu.pipeline_mode<synchronous>, transform_indices = @transform_8, window_bounds = array<i64: 32, 64>}, {pipeline_mode = #tpu.pipeline_mode<synchronous>, transform_indices = @transform_9, window_bounds = array<i64: 1, 64>}, {pipeline_mode = #tpu.pipeline_mode<synchronous>, transform_indices = @transform_10, window_bounds = array<i64: 64, 32>}, {pipeline_mode = #tpu.pipeline_mode<synchronous>, transform_indices = @transform_11, window_bounds = array<i64: 9, 32>}, {transform_indices = @transform_12, window_bounds = array<i64: 1, 8, 32>}]} {
    %c0 = arith.constant 0 : index
    %c0_0 = arith.constant 0 : index
    %c0_1 = arith.constant 0 : index
    %0 = vector.load %arg2[%c0, %c0_0, %c0_1] : memref<1x8x32xf32, #tpu.memory_space<vmem>>, vector<1x8x32xf32>
    %1 = vector.shape_cast %0 : vector<1x8x32xf32> to vector<8x32xf32>
    %c0_2 = arith.constant 0 : index
    %c0_3 = arith.constant 0 : index
    %c0_4 = arith.constant 0 : index
    %2 = vector.load %arg3[%c0_2, %c0_3, %c0_4] : memref<1x16x32xf32, #tpu.memory_space<vmem>>, vector<1x16x32xf32>
    %3 = vector.shape_cast %2 : vector<1x16x32xf32> to vector<16x32xf32>
    %c0_5 = arith.constant 0 : index
    %c0_6 = arith.constant 0 : index
    %c0_7 = arith.constant 0 : index
    %4 = vector.load %arg4[%c0_5, %c0_6, %c0_7] : memref<1x8x32xf32, #tpu.memory_space<vmem>>, vector<1x8x32xf32>
    %5 = vector.shape_cast %4 : vector<1x8x32xf32> to vector<8x32xf32>
    %c0_8 = arith.constant 0 : index
    %c0_9 = arith.constant 0 : index
    %c0_10 = arith.constant 0 : index
    %6 = vector.load %arg5[%c0_8, %c0_9, %c0_10] : memref<1x8x32xf32, #tpu.memory_space<vmem>>, vector<1x8x32xf32>
    %7 = vector.shape_cast %6 : vector<1x8x32xf32> to vector<8x32xf32>
    %c0_11 = arith.constant 0 : index
    %c0_12 = arith.constant 0 : index
    %8 = vector.load %arg13[%c0_11, %c0_12] : memref<9x32xf32, #tpu.memory_space<vmem>>, vector<9x32xf32>
    %9 = vector.extract_strided_slice %8 {offsets = [0, 0], sizes = [1, 32], strides = [1, 1]} : vector<9x32xf32> to vector<1x32xf32>
    %10 = vector.extract_strided_slice %8 {offsets = [1, 0], sizes = [1, 32], strides = [1, 1]} : vector<9x32xf32> to vector<1x32xf32>
    %11 = vector.extract_strided_slice %8 {offsets = [2, 0], sizes = [1, 32], strides = [1, 1]} : vector<9x32xf32> to vector<1x32xf32>
    %12 = vector.extract_strided_slice %8 {offsets = [3, 0], sizes = [1, 32], strides = [1, 1]} : vector<9x32xf32> to vector<1x32xf32>
    %13 = vector.extract_strided_slice %8 {offsets = [4, 0], sizes = [1, 32], strides = [1, 1]} : vector<9x32xf32> to vector<1x32xf32>
    %14 = vector.extract_strided_slice %8 {offsets = [5, 0], sizes = [1, 32], strides = [1, 1]} : vector<9x32xf32> to vector<1x32xf32>
    %15 = vector.extract_strided_slice %8 {offsets = [6, 0], sizes = [1, 32], strides = [1, 1]} : vector<9x32xf32> to vector<1x32xf32>
    %16 = vector.extract_strided_slice %8 {offsets = [7, 0], sizes = [1, 32], strides = [1, 1]} : vector<9x32xf32> to vector<1x32xf32>
    %17 = vector.extract_strided_slice %8 {offsets = [8, 0], sizes = [1, 32], strides = [1, 1]} : vector<9x32xf32> to vector<1x32xf32>
    %c0_13 = arith.constant 0 : index
    %c0_14 = arith.constant 0 : index
    %18 = vector.load %arg8[%c0_13, %c0_14] : memref<8x16xbf16, #tpu.memory_space<vmem>>, vector<8x16xbf16>
    %19 = vector.extract_strided_slice %18 {offsets = [0, 0], sizes = [8, 8], strides = [1, 1]} : vector<8x16xbf16> to vector<8x8xbf16>
    %20 = vector.shape_cast %19 : vector<8x8xbf16> to vector<1x8x8xbf16>
    %21 = vector.shape_cast %20 : vector<1x8x8xbf16> to vector<1x8x8xbf16>
    %22 = vector.broadcast %21 : vector<1x8x8xbf16> to vector<4x8x8xbf16>
    %23 = vector.extract_strided_slice %18 {offsets = [0, 8], sizes = [8, 8], strides = [1, 1]} : vector<8x16xbf16> to vector<8x8xbf16>
    %24 = vector.shape_cast %23 : vector<8x8xbf16> to vector<1x8x8xbf16>
    %25 = vector.shape_cast %24 : vector<1x8x8xbf16> to vector<1x8x8xbf16>
    %26 = vector.broadcast %25 : vector<1x8x8xbf16> to vector<4x8x8xbf16>
    %c0_15 = arith.constant 0 : index
    %c0_16 = arith.constant 0 : index
    %c0_17 = arith.constant 0 : index
    %27 = vector.load %arg9[%c0_15, %c0_16, %c0_17] : memref<8x8x32xbf16, #tpu.memory_space<vmem>>, vector<8x8x32xbf16>
    %28 = vector.extract_strided_slice %27 {offsets = [0, 0, 0], sizes = [4, 8, 32], strides = [1, 1, 1]} : vector<8x8x32xbf16> to vector<4x8x32xbf16>
    %29 = vector.extract_strided_slice %27 {offsets = [4, 0, 0], sizes = [4, 8, 32], strides = [1, 1, 1]} : vector<8x8x32xbf16> to vector<4x8x32xbf16>
    %30 = vector.extract_strided_slice %1 {offsets = [0, 0], sizes = [8, 8], strides = [1, 1]} : vector<8x32xf32> to vector<8x8xf32>
    %31 = vector.extract_strided_slice %1 {offsets = [0, 8], sizes = [8, 8], strides = [1, 1]} : vector<8x32xf32> to vector<8x8xf32>
    %32 = vector.extract_strided_slice %1 {offsets = [0, 16], sizes = [8, 8], strides = [1, 1]} : vector<8x32xf32> to vector<8x8xf32>
    %33 = vector.extract_strided_slice %1 {offsets = [0, 24], sizes = [8, 8], strides = [1, 1]} : vector<8x32xf32> to vector<8x8xf32>
    %34 = vector.shape_cast %30 : vector<8x8xf32> to vector<1x8x8xf32>
    %35 = vector.shape_cast %31 : vector<8x8xf32> to vector<1x8x8xf32>
    %36 = vector.shape_cast %32 : vector<8x8xf32> to vector<1x8x8xf32>
    %37 = vector.shape_cast %33 : vector<8x8xf32> to vector<1x8x8xf32>
    %38 = tpu.concatenate %34, %35, %36, %37 in 0 : vector<1x8x8xf32>, vector<1x8x8xf32>, vector<1x8x8xf32>, vector<1x8x8xf32> -> vector<4x8x8xf32>
    %39 = arith.truncf %38 : vector<4x8x8xf32> to vector<4x8x8xbf16>
    %40 = vector.extract_strided_slice %3 {offsets = [0, 0], sizes = [16, 8], strides = [1, 1]} : vector<16x32xf32> to vector<16x8xf32>
    %41 = vector.extract_strided_slice %3 {offsets = [0, 8], sizes = [16, 8], strides = [1, 1]} : vector<16x32xf32> to vector<16x8xf32>
    %42 = vector.extract_strided_slice %3 {offsets = [0, 16], sizes = [16, 8], strides = [1, 1]} : vector<16x32xf32> to vector<16x8xf32>
    %43 = vector.extract_strided_slice %3 {offsets = [0, 24], sizes = [16, 8], strides = [1, 1]} : vector<16x32xf32> to vector<16x8xf32>
    %44 = vector.shape_cast %40 : vector<16x8xf32> to vector<1x16x8xf32>
    %45 = vector.shape_cast %41 : vector<16x8xf32> to vector<1x16x8xf32>
    %46 = vector.shape_cast %42 : vector<16x8xf32> to vector<1x16x8xf32>
    %47 = vector.shape_cast %43 : vector<16x8xf32> to vector<1x16x8xf32>
    %48 = tpu.concatenate %44, %45, %46, %47 in 0 : vector<1x16x8xf32>, vector<1x16x8xf32>, vector<1x16x8xf32>, vector<1x16x8xf32> -> vector<4x16x8xf32>
    %49 = arith.truncf %48 : vector<4x16x8xf32> to vector<4x16x8xbf16>
    %c0_18 = arith.constant 0 : index
    %c0_19 = arith.constant 0 : index
    %c0_20 = arith.constant 0 : index
    %c0_21 = arith.constant 0 : index
    %50 = vector.load %arg6[%c0_18, %c0_19, %c0_20, %c0_21] : memref<1x1x8x16xi8, #tpu.memory_space<vmem>>, vector<1x1x8x16xi8>
    %51 = vector.shape_cast %50 : vector<1x1x8x16xi8> to vector<8x16xi8>
    %52 = arith.sitofp %51 : vector<8x16xi8> to vector<8x16xf32>
    %cst = arith.constant 1.000000e+00 : f32
    %53 = vector.broadcast %cst : f32 to vector<8x16xf32>
    %54 = arith.subf %52, %53 : vector<8x16xf32>
    %cst_22 = arith.constant 1.000000e+20 : f32
    %55 = vector.broadcast %cst_22 : f32 to vector<8x16xf32>
    %56 = arith.mulf %54, %55 : vector<8x16xf32>
    "tpu.trace_start"() <{level = 10 : i32, message = "hqd,hde->hqe"}> : () -> ()
    %cst_23 = arith.constant dense<0.000000e+00> : vector<4x8x8xf32>
    %57 = tpu.matmul %39, %22, %cst_23 {dimension_numbers = #tpu.dot_dimension_numbers<[2], [1], [1], [2], [0, 0, 0, 1, 1, 2], [0], [0]>} : vector<4x8x8xbf16>, vector<4x8x8xbf16>, vector<4x8x8xf32> -> vector<4x8x8xf32>
    "tpu.trace_stop"() : () -> ()
    %58 = arith.truncf %57 : vector<4x8x8xf32> to vector<4x8x8xbf16>
    "tpu.trace_start"() <{level = 10 : i32, message = "hqd,hkd->hqk"}> : () -> ()
    %cst_24 = arith.constant dense<0.000000e+00> : vector<4x8x16xf32>
    %59 = tpu.matmul %58, %49, %cst_24 {dimension_numbers = #tpu.dot_dimension_numbers<[2], [2], [1], [1], [0, 0, 0, 1, 1, 1], [0], [0]>} : vector<4x8x8xbf16>, vector<4x16x8xbf16>, vector<4x8x16xf32> -> vector<4x8x16xf32>
    "tpu.trace_stop"() : () -> ()
    %60 = vector.shape_cast %56 : vector<8x16xf32> to vector<1x8x16xf32>
    %61 = vector.broadcast %60 : vector<1x8x16xf32> to vector<4x8x16xf32>
    %62 = arith.addf %59, %61 : vector<4x8x16xf32>
    %cst_25 = arith.constant dense<0xFF800000> : vector<4x8xf32>
    %63 = vector.multi_reduction <maximumf>, %62, %cst_25 [2] : vector<4x8x16xf32> to vector<4x8xf32>
    %64 = vector.shape_cast %63 : vector<4x8xf32> to vector<4x8x1xf32>
    %65 = vector.broadcast %64 : vector<4x8x1xf32> to vector<4x8x16xf32>
    %66 = arith.subf %62, %65 : vector<4x8x16xf32>
    %67 = math.exp %66 : vector<4x8x16xf32>
    %cst_26 = arith.constant dense<0.000000e+00> : vector<4x8xf32>
    %68 = vector.multi_reduction <add>, %67, %cst_26 [2] : vector<4x8x16xf32> to vector<4x8xf32>
    %69 = vector.shape_cast %68 : vector<4x8xf32> to vector<4x8x1xf32>
    %70 = tpu.reciprocal %69 {approx = true} : vector<4x8x1xf32> -> vector<4x8x1xf32>
    %71 = vector.broadcast %70 : vector<4x8x1xf32> to vector<4x8x16xf32>
    %72 = arith.mulf %67, %71 : vector<4x8x16xf32>
    %73 = arith.truncf %72 : vector<4x8x16xf32> to vector<4x8x16xbf16>
    "tpu.trace_start"() <{level = 10 : i32, message = "hqk,hkd->hqd"}> : () -> ()
    %cst_27 = arith.constant dense<0.000000e+00> : vector<4x8x8xf32>
    %74 = tpu.matmul %73, %49, %cst_27 {dimension_numbers = #tpu.dot_dimension_numbers<[2], [1], [1], [2], [0, 0, 0, 1, 1, 2], [0], [0]>} : vector<4x8x16xbf16>, vector<4x16x8xbf16>, vector<4x8x8xf32> -> vector<4x8x8xf32>
    "tpu.trace_stop"() : () -> ()
    %75 = arith.truncf %74 : vector<4x8x8xf32> to vector<4x8x8xbf16>
    "tpu.trace_start"() <{level = 10 : i32, message = "hqd,hde->hqe"}> : () -> ()
    %cst_28 = arith.constant dense<0.000000e+00> : vector<4x8x32xf32>
    %76 = tpu.matmul %75, %28, %cst_28 {dimension_numbers = #tpu.dot_dimension_numbers<[2], [1], [1], [2], [0, 0, 0, 1, 1, 2], [0], [0]>} : vector<4x8x8xbf16>, vector<4x8x32xbf16>, vector<4x8x32xf32> -> vector<4x8x32xf32>
    "tpu.trace_stop"() : () -> ()
    %cst_29 = arith.constant dense<0.000000e+00> : vector<8x32xf32>
    %77 = vector.multi_reduction <add>, %76, %cst_29 [0] : vector<4x8x32xf32> to vector<8x32xf32>
    %78 = vector.broadcast %9 : vector<1x32xf32> to vector<8x32xf32>
    %79 = arith.addf %77, %78 : vector<8x32xf32>
    %80 = arith.addf %79, %1 : vector<8x32xf32>
    %cst_30 = arith.constant dense<0.000000e+00> : vector<8xf32>
    %81 = vector.multi_reduction <add>, %80, %cst_30 [1] : vector<8x32xf32> to vector<8xf32>
    %82 = vector.shape_cast %81 : vector<8xf32> to vector<8x1xf32>
    %cst_31 = arith.constant 3.200000e+01 : f32
    %83 = vector.broadcast %cst_31 : f32 to vector<8x1xf32>
    %84 = arith.divf %82, %83 : vector<8x1xf32>
    %85 = vector.broadcast %84 : vector<8x1xf32> to vector<8x32xf32>
    %86 = arith.subf %80, %85 : vector<8x32xf32>
    %87 = arith.mulf %86, %86 : vector<8x32xf32>
    %cst_32 = arith.constant dense<0.000000e+00> : vector<8xf32>
    %88 = vector.multi_reduction <add>, %87, %cst_32 [1] : vector<8x32xf32> to vector<8xf32>
    %89 = vector.shape_cast %88 : vector<8xf32> to vector<8x1xf32>
    %cst_33 = arith.constant 3.200000e+01 : f32
    %90 = vector.broadcast %cst_33 : f32 to vector<8x1xf32>
    %91 = arith.divf %89, %90 : vector<8x1xf32>
    %92 = vector.broadcast %84 : vector<8x1xf32> to vector<8x32xf32>
    %93 = arith.subf %80, %92 : vector<8x32xf32>
    %cst_34 = arith.constant 9.99999974E-6 : f32
    %94 = vector.broadcast %cst_34 : f32 to vector<8x1xf32>
    %95 = arith.addf %91, %94 : vector<8x1xf32>
    %96 = math.rsqrt %95 : vector<8x1xf32>
    %97 = vector.broadcast %96 : vector<8x1xf32> to vector<8x32xf32>
    %98 = arith.mulf %93, %97 : vector<8x32xf32>
    %99 = vector.broadcast %10 : vector<1x32xf32> to vector<8x32xf32>
    %100 = arith.mulf %98, %99 : vector<8x32xf32>
    %101 = vector.broadcast %11 : vector<1x32xf32> to vector<8x32xf32>
    %102 = arith.addf %100, %101 : vector<8x32xf32>
    %103 = vector.extract_strided_slice %102 {offsets = [0, 0], sizes = [8, 8], strides = [1, 1]} : vector<8x32xf32> to vector<8x8xf32>
    %104 = vector.extract_strided_slice %102 {offsets = [0, 8], sizes = [8, 8], strides = [1, 1]} : vector<8x32xf32> to vector<8x8xf32>
    %105 = vector.extract_strided_slice %102 {offsets = [0, 16], sizes = [8, 8], strides = [1, 1]} : vector<8x32xf32> to vector<8x8xf32>
    %106 = vector.extract_strided_slice %102 {offsets = [0, 24], sizes = [8, 8], strides = [1, 1]} : vector<8x32xf32> to vector<8x8xf32>
    %107 = vector.shape_cast %103 : vector<8x8xf32> to vector<1x8x8xf32>
    %108 = vector.shape_cast %104 : vector<8x8xf32> to vector<1x8x8xf32>
    %109 = vector.shape_cast %105 : vector<8x8xf32> to vector<1x8x8xf32>
    %110 = vector.shape_cast %106 : vector<8x8xf32> to vector<1x8x8xf32>
    %111 = tpu.concatenate %107, %108, %109, %110 in 0 : vector<1x8x8xf32>, vector<1x8x8xf32>, vector<1x8x8xf32>, vector<1x8x8xf32> -> vector<4x8x8xf32>
    %112 = arith.truncf %111 : vector<4x8x8xf32> to vector<4x8x8xbf16>
    %113 = vector.extract_strided_slice %7 {offsets = [0, 0], sizes = [8, 8], strides = [1, 1]} : vector<8x32xf32> to vector<8x8xf32>
    %114 = vector.extract_strided_slice %7 {offsets = [0, 8], sizes = [8, 8], strides = [1, 1]} : vector<8x32xf32> to vector<8x8xf32>
    %115 = vector.extract_strided_slice %7 {offsets = [0, 16], sizes = [8, 8], strides = [1, 1]} : vector<8x32xf32> to vector<8x8xf32>
    %116 = vector.extract_strided_slice %7 {offsets = [0, 24], sizes = [8, 8], strides = [1, 1]} : vector<8x32xf32> to vector<8x8xf32>
    %117 = vector.shape_cast %113 : vector<8x8xf32> to vector<1x8x8xf32>
    %118 = vector.shape_cast %114 : vector<8x8xf32> to vector<1x8x8xf32>
    %119 = vector.shape_cast %115 : vector<8x8xf32> to vector<1x8x8xf32>
    %120 = vector.shape_cast %116 : vector<8x8xf32> to vector<1x8x8xf32>
    %121 = tpu.concatenate %117, %118, %119, %120 in 0 : vector<1x8x8xf32>, vector<1x8x8xf32>, vector<1x8x8xf32>, vector<1x8x8xf32> -> vector<4x8x8xf32>
    %122 = arith.truncf %121 : vector<4x8x8xf32> to vector<4x8x8xbf16>
    %123 = vector.extract_strided_slice %5 {offsets = [0, 0], sizes = [8, 8], strides = [1, 1]} : vector<8x32xf32> to vector<8x8xf32>
    %124 = vector.extract_strided_slice %5 {offsets = [0, 8], sizes = [8, 8], strides = [1, 1]} : vector<8x32xf32> to vector<8x8xf32>
    %125 = vector.extract_strided_slice %5 {offsets = [0, 16], sizes = [8, 8], strides = [1, 1]} : vector<8x32xf32> to vector<8x8xf32>
    %126 = vector.extract_strided_slice %5 {offsets = [0, 24], sizes = [8, 8], strides = [1, 1]} : vector<8x32xf32> to vector<8x8xf32>
    %127 = vector.shape_cast %123 : vector<8x8xf32> to vector<1x8x8xf32>
    %128 = vector.shape_cast %124 : vector<8x8xf32> to vector<1x8x8xf32>
    %129 = vector.shape_cast %125 : vector<8x8xf32> to vector<1x8x8xf32>
    %130 = vector.shape_cast %126 : vector<8x8xf32> to vector<1x8x8xf32>
    %131 = tpu.concatenate %127, %128, %129, %130 in 0 : vector<1x8x8xf32>, vector<1x8x8xf32>, vector<1x8x8xf32>, vector<1x8x8xf32> -> vector<4x8x8xf32>
    %132 = arith.truncf %131 : vector<4x8x8xf32> to vector<4x8x8xbf16>
    %c0_35 = arith.constant 0 : index
    %c0_36 = arith.constant 0 : index
    %c0_37 = arith.constant 0 : index
    %c0_38 = arith.constant 0 : index
    %133 = vector.load %arg7[%c0_35, %c0_36, %c0_37, %c0_38] : memref<1x1x8x8xi8, #tpu.memory_space<vmem>>, vector<1x1x8x8xi8>
    %134 = vector.shape_cast %133 : vector<1x1x8x8xi8> to vector<8x8xi8>
    %135 = arith.sitofp %134 : vector<8x8xi8> to vector<8x8xf32>
    %cst_39 = arith.constant 1.000000e+00 : f32
    %136 = vector.broadcast %cst_39 : f32 to vector<8x8xf32>
    %137 = arith.subf %135, %136 : vector<8x8xf32>
    %cst_40 = arith.constant 1.000000e+20 : f32
    %138 = vector.broadcast %cst_40 : f32 to vector<8x8xf32>
    %139 = arith.mulf %137, %138 : vector<8x8xf32>
    "tpu.trace_start"() <{level = 10 : i32, message = "hqd,hde->hqe"}> : () -> ()
    %cst_41 = arith.constant dense<0.000000e+00> : vector<4x8x8xf32>
    %140 = tpu.matmul %112, %26, %cst_41 {dimension_numbers = #tpu.dot_dimension_numbers<[2], [1], [1], [2], [0, 0, 0, 1, 1, 2], [0], [0]>} : vector<4x8x8xbf16>, vector<4x8x8xbf16>, vector<4x8x8xf32> -> vector<4x8x8xf32>
    "tpu.trace_stop"() : () -> ()
    %141 = arith.truncf %140 : vector<4x8x8xf32> to vector<4x8x8xbf16>
    "tpu.trace_start"() <{level = 10 : i32, message = "hqd,hkd->hqk"}> : () -> ()
    %cst_42 = arith.constant dense<0.000000e+00> : vector<4x8x8xf32>
    %142 = tpu.matmul %141, %122, %cst_42 {dimension_numbers = #tpu.dot_dimension_numbers<[2], [2], [1], [1], [0, 0, 0, 1, 1, 1], [0], [0]>} : vector<4x8x8xbf16>, vector<4x8x8xbf16>, vector<4x8x8xf32> -> vector<4x8x8xf32>
    "tpu.trace_stop"() : () -> ()
    %143 = vector.shape_cast %139 : vector<8x8xf32> to vector<1x8x8xf32>
    %144 = vector.broadcast %143 : vector<1x8x8xf32> to vector<4x8x8xf32>
    %145 = arith.addf %142, %144 : vector<4x8x8xf32>
    %cst_43 = arith.constant dense<0xFF800000> : vector<4x8xf32>
    %146 = vector.multi_reduction <maximumf>, %145, %cst_43 [2] : vector<4x8x8xf32> to vector<4x8xf32>
    %147 = vector.shape_cast %146 : vector<4x8xf32> to vector<4x8x1xf32>
    %148 = vector.broadcast %147 : vector<4x8x1xf32> to vector<4x8x8xf32>
    %149 = arith.subf %145, %148 : vector<4x8x8xf32>
    %150 = math.exp %149 : vector<4x8x8xf32>
    %cst_44 = arith.constant dense<0.000000e+00> : vector<4x8xf32>
    %151 = vector.multi_reduction <add>, %150, %cst_44 [2] : vector<4x8x8xf32> to vector<4x8xf32>
    %152 = vector.shape_cast %151 : vector<4x8xf32> to vector<4x8x1xf32>
    %153 = tpu.reciprocal %152 {approx = true} : vector<4x8x1xf32> -> vector<4x8x1xf32>
    %154 = vector.broadcast %153 : vector<4x8x1xf32> to vector<4x8x8xf32>
    %155 = arith.mulf %150, %154 : vector<4x8x8xf32>
    %156 = arith.truncf %155 : vector<4x8x8xf32> to vector<4x8x8xbf16>
    "tpu.trace_start"() <{level = 10 : i32, message = "hqk,hkd->hqd"}> : () -> ()
    %cst_45 = arith.constant dense<0.000000e+00> : vector<4x8x8xf32>
    %157 = tpu.matmul %156, %132, %cst_45 {dimension_numbers = #tpu.dot_dimension_numbers<[2], [1], [1], [2], [0, 0, 0, 1, 1, 2], [0], [0]>} : vector<4x8x8xbf16>, vector<4x8x8xbf16>, vector<4x8x8xf32> -> vector<4x8x8xf32>
    "tpu.trace_stop"() : () -> ()
    %158 = arith.truncf %157 : vector<4x8x8xf32> to vector<4x8x8xbf16>
    "tpu.trace_start"() <{level = 10 : i32, message = "hqd,hde->hqe"}> : () -> ()
    %cst_46 = arith.constant dense<0.000000e+00> : vector<4x8x32xf32>
    %159 = tpu.matmul %158, %29, %cst_46 {dimension_numbers = #tpu.dot_dimension_numbers<[2], [1], [1], [2], [0, 0, 0, 1, 1, 2], [0], [0]>} : vector<4x8x8xbf16>, vector<4x8x32xbf16>, vector<4x8x32xf32> -> vector<4x8x32xf32>
    "tpu.trace_stop"() : () -> ()
    %cst_47 = arith.constant dense<0.000000e+00> : vector<8x32xf32>
    %160 = vector.multi_reduction <add>, %159, %cst_47 [0] : vector<4x8x32xf32> to vector<8x32xf32>
    %161 = vector.broadcast %12 : vector<1x32xf32> to vector<8x32xf32>
    %162 = arith.addf %160, %161 : vector<8x32xf32>
    %163 = arith.addf %162, %102 : vector<8x32xf32>
    %cst_48 = arith.constant dense<0.000000e+00> : vector<8xf32>
    %164 = vector.multi_reduction <add>, %163, %cst_48 [1] : vector<8x32xf32> to vector<8xf32>
    %165 = vector.shape_cast %164 : vector<8xf32> to vector<8x1xf32>
    %cst_49 = arith.constant 3.200000e+01 : f32
    %166 = vector.broadcast %cst_49 : f32 to vector<8x1xf32>
    %167 = arith.divf %165, %166 : vector<8x1xf32>
    %168 = vector.broadcast %167 : vector<8x1xf32> to vector<8x32xf32>
    %169 = arith.subf %163, %168 : vector<8x32xf32>
    %170 = arith.mulf %169, %169 : vector<8x32xf32>
    %cst_50 = arith.constant dense<0.000000e+00> : vector<8xf32>
    %171 = vector.multi_reduction <add>, %170, %cst_50 [1] : vector<8x32xf32> to vector<8xf32>
    %172 = vector.shape_cast %171 : vector<8xf32> to vector<8x1xf32>
    %cst_51 = arith.constant 3.200000e+01 : f32
    %173 = vector.broadcast %cst_51 : f32 to vector<8x1xf32>
    %174 = arith.divf %172, %173 : vector<8x1xf32>
    %175 = vector.broadcast %167 : vector<8x1xf32> to vector<8x32xf32>
    %176 = arith.subf %163, %175 : vector<8x32xf32>
    %cst_52 = arith.constant 9.99999974E-6 : f32
    %177 = vector.broadcast %cst_52 : f32 to vector<8x1xf32>
    %178 = arith.addf %174, %177 : vector<8x1xf32>
    %179 = math.rsqrt %178 : vector<8x1xf32>
    %180 = vector.broadcast %179 : vector<8x1xf32> to vector<8x32xf32>
    %181 = arith.mulf %176, %180 : vector<8x32xf32>
    %182 = vector.broadcast %13 : vector<1x32xf32> to vector<8x32xf32>
    %183 = arith.mulf %181, %182 : vector<8x32xf32>
    %184 = vector.broadcast %14 : vector<1x32xf32> to vector<8x32xf32>
    %185 = arith.addf %183, %184 : vector<8x32xf32>
    %186 = arith.truncf %185 : vector<8x32xf32> to vector<8x32xbf16>
    %c0_53 = arith.constant 0 : index
    %c0_54 = arith.constant 0 : index
    %187 = vector.load %arg10[%c0_53, %c0_54] : memref<32x64xbf16, #tpu.memory_space<vmem>>, vector<32x64xbf16>
    %cst_55 = arith.constant dense<0.000000e+00> : vector<8x64xf32>
    %188 = tpu.matmul %186, %187, %cst_55 {dimension_numbers = #tpu.dot_dimension_numbers<[1], [0], [0], [1], [0, 0, 1, 1], [], []>} : vector<8x32xbf16>, vector<32x64xbf16>, vector<8x64xf32> -> vector<8x64xf32>
    %c0_56 = arith.constant 0 : index
    %c0_57 = arith.constant 0 : index
    %189 = vector.load %arg11[%c0_56, %c0_57] : memref<1x64xf32, #tpu.memory_space<vmem>>, vector<1x64xf32>
    %190 = vector.broadcast %189 : vector<1x64xf32> to vector<8x64xf32>
    %191 = arith.addf %188, %190 : vector<8x64xf32>
    %cst_58 = arith.constant 0.000000e+00 : f32
    %192 = vector.broadcast %cst_58 : f32 to vector<8x64xf32>
    %193 = arith.maximumf %191, %192 : vector<8x64xf32>
    %194 = arith.truncf %193 : vector<8x64xf32> to vector<8x64xbf16>
    %c0_59 = arith.constant 0 : index
    %c0_60 = arith.constant 0 : index
    %195 = vector.load %arg12[%c0_59, %c0_60] : memref<64x32xbf16, #tpu.memory_space<vmem>>, vector<64x32xbf16>
    %cst_61 = arith.constant dense<0.000000e+00> : vector<8x32xf32>
    %196 = tpu.matmul %194, %195, %cst_61 {dimension_numbers = #tpu.dot_dimension_numbers<[1], [0], [0], [1], [0, 0, 1, 1], [], []>} : vector<8x64xbf16>, vector<64x32xbf16>, vector<8x32xf32> -> vector<8x32xf32>
    %197 = vector.broadcast %15 : vector<1x32xf32> to vector<8x32xf32>
    %198 = arith.addf %196, %197 : vector<8x32xf32>
    %199 = arith.addf %198, %185 : vector<8x32xf32>
    %cst_62 = arith.constant dense<0.000000e+00> : vector<8xf32>
    %200 = vector.multi_reduction <add>, %199, %cst_62 [1] : vector<8x32xf32> to vector<8xf32>
    %201 = vector.shape_cast %200 : vector<8xf32> to vector<8x1xf32>
    %cst_63 = arith.constant 3.200000e+01 : f32
    %202 = vector.broadcast %cst_63 : f32 to vector<8x1xf32>
    %203 = arith.divf %201, %202 : vector<8x1xf32>
    %204 = vector.broadcast %203 : vector<8x1xf32> to vector<8x32xf32>
    %205 = arith.subf %199, %204 : vector<8x32xf32>
    %206 = arith.mulf %205, %205 : vector<8x32xf32>
    %cst_64 = arith.constant dense<0.000000e+00> : vector<8xf32>
    %207 = vector.multi_reduction <add>, %206, %cst_64 [1] : vector<8x32xf32> to vector<8xf32>
    %208 = vector.shape_cast %207 : vector<8xf32> to vector<8x1xf32>
    %cst_65 = arith.constant 3.200000e+01 : f32
    %209 = vector.broadcast %cst_65 : f32 to vector<8x1xf32>
    %210 = arith.divf %208, %209 : vector<8x1xf32>
    %211 = vector.broadcast %203 : vector<8x1xf32> to vector<8x32xf32>
    %212 = arith.subf %199, %211 : vector<8x32xf32>
    %cst_66 = arith.constant 9.99999974E-6 : f32
    %213 = vector.broadcast %cst_66 : f32 to vector<8x1xf32>
    %214 = arith.addf %210, %213 : vector<8x1xf32>
    %215 = math.rsqrt %214 : vector<8x1xf32>
    %216 = vector.broadcast %215 : vector<8x1xf32> to vector<8x32xf32>
    %217 = arith.mulf %212, %216 : vector<8x32xf32>
    %218 = vector.broadcast %16 : vector<1x32xf32> to vector<8x32xf32>
    %219 = arith.mulf %217, %218 : vector<8x32xf32>
    %220 = vector.broadcast %17 : vector<1x32xf32> to vector<8x32xf32>
    %221 = arith.addf %219, %220 : vector<8x32xf32>
    %c0_67 = arith.constant 0 : index
    %c0_68 = arith.constant 0 : index
    %c0_69 = arith.constant 0 : index
    %222 = vector.load %arg14[%c0_67, %c0_68, %c0_69] : memref<1x8x32xf32, #tpu.memory_space<vmem>>, vector<1x8x32xf32>
    %223 = vector.shape_cast %222 : vector<1x8x32xf32> to vector<8x32xf32>
    %224 = vector.shape_cast %221 : vector<8x32xf32> to vector<1x8x32xf32>
    tpu.vector_store %arg14[%c0_67, %c0_68, %c0_69], %224 {strides = array<i32>} : memref<1x8x32xf32, #tpu.memory_space<vmem>>, vector<1x8x32xf32>,
    return
  }
  func.func @transform_0(%arg0: i32, %arg1: i32) -> (i32, i32, i32) {
    %c0_i32 = arith.constant 0 : i32
    %c0_i32_0 = arith.constant 0 : i32
    return %arg0, %arg1, %c0_i32 : i32, i32, i32
  }
  func.func @transform_1(%arg0: i32, %arg1: i32) -> (i32, i32, i32) {
    %c0_i32 = arith.constant 0 : i32
    %c0_i32_0 = arith.constant 0 : i32
    %c0_i32_1 = arith.constant 0 : i32
    return %arg0, %c0_i32, %c0_i32_0 : i32, i32, i32
  }
  func.func @transform_2(%arg0: i32, %arg1: i32) -> (i32, i32, i32) {
    %c0_i32 = arith.constant 0 : i32
    %c0_i32_0 = arith.constant 0 : i32
    %c0_i32_1 = arith.constant 0 : i32
    return %arg0, %c0_i32, %c0_i32_0 : i32, i32, i32
  }
  func.func @transform_3(%arg0: i32, %arg1: i32) -> (i32, i32, i32) {
    %c0_i32 = arith.constant 0 : i32
    %c0_i32_0 = arith.constant 0 : i32
    %c0_i32_1 = arith.constant 0 : i32
    return %arg0, %c0_i32, %c0_i32_0 : i32, i32, i32
  }
  func.func @transform_4(%arg0: i32, %arg1: i32) -> (i32, i32, i32, i32) {
    %c0_i32 = arith.constant 0 : i32
    %c0_i32_0 = arith.constant 0 : i32
    %c0_i32_1 = arith.constant 0 : i32
    return %arg0, %arg1, %c0_i32, %c0_i32_0 : i32, i32, i32, i32
  }
  func.func @transform_5(%arg0: i32, %arg1: i32) -> (i32, i32, i32, i32) {
    %c0_i32 = arith.constant 0 : i32
    %c0_i32_0 = arith.constant 0 : i32
    %c0_i32_1 = arith.constant 0 : i32
    return %arg0, %arg1, %c0_i32, %c0_i32_0 : i32, i32, i32, i32
  }
  func.func @transform_6(%arg0: i32, %arg1: i32) -> (i32, i32) {
    %c0_i32 = arith.constant 0 : i32
    %c0_i32_0 = arith.constant 0 : i32
    %c0_i32_1 = arith.constant 0 : i32
    return %c0_i32, %c0_i32_0 : i32, i32
  }
  func.func @transform_7(%arg0: i32, %arg1: i32) -> (i32, i32, i32) {
    %c0_i32 = arith.constant 0 : i32
    %c0_i32_0 = arith.constant 0 : i32
    %c0_i32_1 = arith.constant 0 : i32
    %c0_i32_2 = arith.constant 0 : i32
    return %c0_i32, %c0_i32_0, %c0_i32_1 : i32, i32, i32
  }
  func.func @transform_8(%arg0: i32, %arg1: i32) -> (i32, i32) {
    %c0_i32 = arith.constant 0 : i32
    %c0_i32_0 = arith.constant 0 : i32
    %c0_i32_1 = arith.constant 0 : i32
    return %c0_i32, %c0_i32_0 : i32, i32
  }
  func.func @transform_9(%arg0: i32, %arg1: i32) -> (i32, i32) {
    %c0_i32 = arith.constant 0 : i32
    %c0_i32_0 = arith.constant 0 : i32
    %c0_i32_1 = arith.constant 0 : i32
    return %c0_i32, %c0_i32_0 : i32, i32
  }
  func.func @transform_10(%arg0: i32, %arg1: i32) -> (i32, i32) {
    %c0_i32 = arith.constant 0 : i32
    %c0_i32_0 = arith.constant 0 : i32
    %c0_i32_1 = arith.constant 0 : i32
    return %c0_i32, %c0_i32_0 : i32, i32
  }
  func.func @transform_11(%arg0: i32, %arg1: i32) -> (i32, i32) {
    %c0_i32 = arith.constant 0 : i32
    %c0_i32_0 = arith.constant 0 : i32
    %c0_i32_1 = arith.constant 0 : i32
    return %c0_i32, %c0_i32_0 : i32, i32
  }
  func.func @transform_12(%arg0: i32, %arg1: i32) -> (i32, i32, i32) {
    %c0_i32 = arith.constant 0 : i32
    %c0_i32_0 = arith.constant 0 : i32
    return %arg0, %arg1, %c0_i32 : i32, i32, i32
  }
}

module attributes {stable_mosaic.version = 11 : i64} {
  func.func @_decoder_block_kernel(%arg0: i32, %arg1: i32, %arg2: memref<1x8x32xf32, #tpu.memory_space<vmem>>, %arg3: memref<1x16x32xf32, #tpu.memory_space<vmem>>, %arg4: memref<1x8x32xf32, #tpu.memory_space<vmem>>, %arg5: memref<1x8x32xf32, #tpu.memory_space<vmem>>, %arg6: memref<1x1x8x16xi8, #tpu.memory_space<vmem>>, %arg7: memref<1x1x8x8xi8, #tpu.memory_space<vmem>>, %arg8: memref<8x16xbf16, #tpu.memory_space<vmem>>, %arg9: memref<8x8x32xbf16, #tpu.memory_space<vmem>>, %arg10: memref<32x64xbf16, #tpu.memory_space<vmem>>, %arg11: memref<1x64xf32, #tpu.memory_space<vmem>>, %arg12: memref<64x32xbf16, #tpu.memory_space<vmem>>, %arg13: memref<9x32xf32, #tpu.memory_space<vmem>>, %arg14: memref<1x8x32xf32, #tpu.memory_space<vmem>>) attributes {dimension_semantics = [#tpu.dimension_semantics<parallel>, #tpu.dimension_semantics<parallel>], iteration_bounds = array<i64: 2, 2>, scalar_prefetch = 0 : i64, scratch_operands = 0 : i64, tpu.core_type = #tpu.core_type<tc>, window_params = [{transform_indices = @transform_0, window_bounds = array<i64: 1, 8, 32>}, {transform_indices = @transform_1, window_bounds = array<i64: 1, 16, 32>}, {transform_indices = @transform_2, window_bounds = array<i64: 1, 8, 32>}, {transform_indices = @transform_3, window_bounds = array<i64: 1, 8, 32>}, {transform_indices = @transform_4, window_bounds = array<i64: 1, 1, 8, 16>}, {transform_indices = @transform_5, window_bounds = array<i64: 1, 1, 8, 8>}, {pipeline_mode = #tpu.pipeline_mode<synchronous>, transform_indices = @transform_6, window_bounds = array<i64: 8, 16>}, {pipeline_mode = #tpu.pipeline_mode<synchronous>, transform_indices = @transform_7, window_bounds = array<i64: 8, 8, 32>}, {pipeline_mode = #tpu.pipeline_mode<synchronous>, transform_indices = @transform_8, window_bounds = array<i64: 32, 64>}, {pipeline_mode = #tpu.pipeline_mode<synchronous>, transform_indices = @transform_9, window_bounds = array<i64: 1, 64>}, {pipeline_mode = #tpu.pipeline_mode<synchronous>, transform_indices = @transform_10, window_bounds = array<i64: 64, 32>}, {pipeline_mode = #tpu.pipeline_mode<synchronous>, transform_indices = @transform_11, window_bounds = array<i64: 9, 32>}, {transform_indices = @transform_12, window_bounds = array<i64: 1, 8, 32>}]} {
    %c0 = arith.constant 0 : index
    %c0_0 = arith.constant 0 : index
    %c0_1 = arith.constant 0 : index
    %0 = vector.load %arg2[%c0, %c0_0, %c0_1] : memref<1x8x32xf32, #tpu.memory_space<vmem>>, vector<1x8x32xf32>
    %1 = vector.shape_cast %0 : vector<1x8x32xf32> to vector<8x32xf32>
    %c0_2 = arith.constant 0 : index
    %c0_3 = arith.constant 0 : index
    %c0_4 = arith.constant 0 : index
    %2 = vector.load %arg3[%c0_2, %c0_3, %c0_4] : memref<1x16x32xf32, #tpu.memory_space<vmem>>, vector<1x16x32xf32>
    %3 = vector.shape_cast %2 : vector<1x16x32xf32> to vector<16x32xf32>
    %c0_5 = arith.constant 0 : index
    %c0_6 = arith.constant 0 : index
    %c0_7 = arith.constant 0 : index
    %4 = vector.load %arg4[%c0_5, %c0_6, %c0_7] : memref<1x8x32xf32, #tpu.memory_space<vmem>>, vector<1x8x32xf32>
    %5 = vector.shape_cast %4 : vector<1x8x32xf32> to vector<8x32xf32>
    %c0_8 = arith.constant 0 : index
    %c0_9 = arith.constant 0 : index
    %c0_10 = arith.constant 0 : index
    %6 = vector.load %arg5[%c0_8, %c0_9, %c0_10] : memref<1x8x32xf32, #tpu.memory_space<vmem>>, vector<1x8x32xf32>
    %7 = vector.shape_cast %6 : vector<1x8x32xf32> to vector<8x32xf32>
    %c0_11 = arith.constant 0 : index
    %c0_12 = arith.constant 0 : index
    %8 = vector.load %arg13[%c0_11, %c0_12] : memref<9x32xf32, #tpu.memory_space<vmem>>, vector<9x32xf32>
    %9 = vector.extract_strided_slice %8 {offsets = [0, 0], sizes = [1, 32], strides = [1, 1]} : vector<9x32xf32> to vector<1x32xf32>
    %10 = vector.extract_strided_slice %8 {offsets = [1, 0], sizes = [1, 32], strides = [1, 1]} : vector<9x32xf32> to vector<1x32xf32>
    %11 = vector.extract_strided_slice %8 {offsets = [2, 0], sizes = [1, 32], strides = [1, 1]} : vector<9x32xf32> to vector<1x32xf32>
    %12 = vector.extract_strided_slice %8 {offsets = [3, 0], sizes = [1, 32], strides = [1, 1]} : vector<9x32xf32> to vector<1x32xf32>
    %13 = vector.extract_strided_slice %8 {offsets = [4, 0], sizes = [1, 32], strides = [1, 1]} : vector<9x32xf32> to vector<1x32xf32>
    %14 = vector.extract_strided_slice %8 {offsets = [5, 0], sizes = [1, 32], strides = [1, 1]} : vector<9x32xf32> to vector<1x32xf32>
    %15 = vector.extract_strided_slice %8 {offsets = [6, 0], sizes = [1, 32], strides = [1, 1]} : vector<9x32xf32> to vector<1x32xf32>
    %16 = vector.extract_strided_slice %8 {offsets = [7, 0], sizes = [1, 32], strides = [1, 1]} : vector<9x32xf32> to vector<1x32xf32>
    %17 = vector.extract_strided_slice %8 {offsets = [8, 0], sizes = [1, 32], strides = [1, 1]} : vector<9x32xf32> to vector<1x32xf32>
    %c0_13 = arith.constant 0 : index
    %c0_14 = arith.constant 0 : index
    %18 = vector.load %arg8[%c0_13, %c0_14] : memref<8x16xbf16, #tpu.memory_space<vmem>>, vector<8x16xbf16>
    %19 = vector.extract_strided_slice %18 {offsets = [0, 0], sizes = [8, 8], strides = [1, 1]} : vector<8x16xbf16> to vector<8x8xbf16>
    %20 = vector.shape_cast %19 : vector<8x8xbf16> to vector<1x8x8xbf16>
    %21 = vector.shape_cast %20 : vector<1x8x8xbf16> to vector<1x8x8xbf16>
    %22 = vector.broadcast %21 : vector<1x8x8xbf16> to vector<4x8x8xbf16>
    %23 = vector.extract_strided_slice %18 {offsets = [0, 8], sizes = [8, 8], strides = [1, 1]} : vector<8x16xbf16> to vector<8x8xbf16>
    %24 = vector.shape_cast %23 : vector<8x8xbf16> to vector<1x8x8xbf16>
    %25 = vector.shape_cast %24 : vector<1x8x8xbf16> to vector<1x8x8xbf16>
    %26 = vector.broadcast %25 : vector<1x8x8xbf16> to vector<4x8x8xbf16>
    %c0_15 = arith.constant 0 : index
    %c0_16 = arith.constant 0 : index
    %c0_17 = arith.constant 0 : index
    %27 = vector.load %arg9[%c0_15, %c0_16, %c0_17] : memref<8x8x32xbf16, #tpu.memory_space<vmem>>, vector<8x8x32xbf16>
    %28 = vector.extract_strided_slice %27 {offsets = [0, 0, 0], sizes = [4, 8, 32], strides = [1, 1, 1]} : vector<8x8x32xbf16> to vector<4x8x32xbf16>
    %29 = vector.extract_strided_slice %27 {offsets = [4, 0, 0], sizes = [4, 8, 32], strides = [1, 1, 1]} : vector<8x8x32xbf16> to vector<4x8x32xbf16>
    %30 = vector.extract_strided_slice %1 {offsets = [0, 0], sizes = [8, 8], strides = [1, 1]} : vector<8x32xf32> to vector<8x8xf32>
    %31 = vector.extract_strided_slice %1 {offsets = [0, 8], sizes = [8, 8], strides = [1, 1]} : vector<8x32xf32> to vector<8x8xf32>
    %32 = vector.extract_strided_slice %1 {offsets = [0, 16], sizes = [8, 8], strides = [1, 1]} : vector<8x32xf32> to vector<8x8xf32>
    %33 = vector.extract_strided_slice %1 {offsets = [0, 24], sizes = [8, 8], strides = [1, 1]} : vector<8x32xf32> to vector<8x8xf32>
    %34 = vector.shape_cast %30 : vector<8x8xf32> to vector<1x8x8xf32>
    %35 = vector.shape_cast %31 : vector<8x8xf32> to vector<1x8x8xf32>
    %36 = vector.shape_cast %32 : vector<8x8xf32> to vector<1x8x8xf32>
    %37 = vector.shape_cast %33 : vector<8x8xf32> to vector<1x8x8xf32>
    %38 = tpu.concatenate %34, %35, %36, %37 in 0 : vector<1x8x8xf32>, vector<1x8x8xf32>, vector<1x8x8xf32>, vector<1x8x8xf32> -> vector<4x8x8xf32>
    %39 = arith.truncf %38 : vector<4x8x8xf32> to vector<4x8x8xbf16>
    %40 = vector.extract_strided_slice %3 {offsets = [0, 0], sizes = [16, 8], strides = [1, 1]} : vector<16x32xf32> to vector<16x8xf32>
    %41 = vector.extract_strided_slice %3 {offsets = [0, 8], sizes = [16, 8], strides = [1, 1]} : vector<16x32xf32> to vector<16x8xf32>
    %42 = vector.extract_strided_slice %3 {offsets = [0, 16], sizes = [16, 8], strides = [1, 1]} : vector<16x32xf32> to vector<16x8xf32>
    %43 = vector.extract_strided_slice %3 {offsets = [0, 24], sizes = [16, 8], strides = [1, 1]} : vector<16x32xf32> to vector<16x8xf32>
    %44 = vector.shape_cast %40 : vector<16x8xf32> to vector<1x16x8xf32>
    %45 = vector.shape_cast %41 : vector<16x8xf32> to vector<1x16x8xf32>
    %46 = vector.shape_cast %42 : vector<16x8xf32> to vector<1x16x8xf32>
    %47 = vector.shape_cast %43 : vector<16x8xf32> to vector<1x16x8xf32>
    %48 = tpu.concatenate %44, %45, %46, %47 in 0 : vector<1x16x8xf32>, vector<1x16x8xf32>, vector<1x16x8xf32>, vector<1x16x8xf32> -> vector<4x16x8xf32>
    %49 = arith.truncf %48 : vector<4x16x8xf32> to vector<4x16x8xbf16>
    %c0_18 = arith.constant 0 : index
    %c0_19 = arith.constant 0 : index
    %c0_20 = arith.constant 0 : index
    %c0_21 = arith.constant 0 : index
    %50 = vector.load %arg6[%c0_18, %c0_19, %c0_20, %c0_21] : memref<1x1x8x16xi8, #tpu.memory_space<vmem>>, vector<1x1x8x16xi8>
    %51 = vector.shape_cast %50 : vector<1x1x8x16xi8> to vector<8x16xi8>
    %52 = arith.sitofp %51 : vector<8x16xi8> to vector<8x16xf32>
    %cst = arith.constant 1.000000e+00 : f32
    %53 = vector.broadcast %cst : f32 to vector<8x16xf32>
    %54 = arith.subf %52, %53 : vector<8x16xf32>
    %cst_22 = arith.constant 1.000000e+20 : f32
    %55 = vector.broadcast %cst_22 : f32 to vector<8x16xf32>
    %56 = arith.mulf %54, %55 : vector<8x16xf32>
    "tpu.trace_start"() <{level = 10 : i32, message = "hqd,hde->hqe"}> : () -> ()
    %cst_23 = arith.constant dense<0.000000e+00> : vector<4x8x8xf32>
    %57 = tpu.matmul %39, %22, %cst_23 {dimension_numbers = #tpu.dot_dimension_numbers<[2], [1], [1], [2], [0, 0, 0, 1, 1, 2], [0], [0]>} : vector<4x8x8xbf16>, vector<4x8x8xbf16>, vector<4x8x8xf32> -> vector<4x8x8xf32>
    "tpu.trace_stop"() : () -> ()
    %58 = arith.truncf %57 : vector<4x8x8xf32> to vector<4x8x8xbf16>
    "tpu.trace_start"() <{level = 10 : i32, message = "hqd,hkd->hqk"}> : () -> ()
    %cst_24 = arith.constant dense<0.000000e+00> : vector<4x8x16xf32>
    %59 = tpu.matmul %58, %49, %cst_24 {dimension_numbers = #tpu.dot_dimension_numbers<[2], [2], [1], [1], [0, 0, 0, 1, 1, 1], [0], [0]>} : vector<4x8x8xbf16>, vector<4x16x8xbf16>, vector<4x8x16xf32> -> vector<4x8x16xf32>
    "tpu.trace_stop"() : () -> ()
    %60 = vector.shape_cast %56 : vector<8x16xf32> to vector<1x8x16xf32>
    %61 = vector.broadcast %60 : vector<1x8x16xf32> to vector<4x8x16xf32>
    %62 = arith.addf %59, %61 : vector<4x8x16xf32>
    %cst_25 = arith.constant dense<0xFF800000> : vector<4x8xf32>
    %63 = vector.multi_reduction <maximumf>, %62, %cst_25 [2] : vector<4x8x16xf32> to vector<4x8xf32>
    %64 = vector.shape_cast %63 : vector<4x8xf32> to vector<4x8x1xf32>
    %65 = vector.broadcast %64 : vector<4x8x1xf32> to vector<4x8x16xf32>
    %66 = arith.subf %62, %65 : vector<4x8x16xf32>
    %67 = math.exp %66 : vector<4x8x16xf32>
    %cst_26 = arith.constant dense<0.000000e+00> : vector<4x8xf32>
    %68 = vector.multi_reduction <add>, %67, %cst_26 [2] : vector<4x8x16xf32> to vector<4x8xf32>
    %69 = vector.shape_cast %68 : vector<4x8xf32> to vector<4x8x1xf32>
    %70 = tpu.reciprocal %69 {approx = true} : vector<4x8x1xf32> -> vector<4x8x1xf32>
    %71 = vector.broadcast %70 : vector<4x8x1xf32> to vector<4x8x16xf32>
    %72 = arith.mulf %67, %71 : vector<4x8x16xf32>
    %73 = arith.truncf %72 : vector<4x8x16xf32> to vector<4x8x16xbf16>
    "tpu.trace_start"() <{level = 10 : i32, message = "hqk,hkd->hqd"}> : () -> ()
    %cst_27 = arith.constant dense<0.000000e+00> : vector<4x8x8xf32>
    %74 = tpu.matmul %73, %49, %cst_27 {dimension_numbers = #tpu.dot_dimension_numbers<[2], [1], [1], [2], [0, 0, 0, 1, 1, 2], [0], [0]>} : vector<4x8x16xbf16>, vector<4x16x8xbf16>, vector<4x8x8xf32> -> vector<4x8x8xf32>
    "tpu.trace_stop"() : () -> ()
    %75 = arith.truncf %74 : vector<4x8x8xf32> to vector<4x8x8xbf16>
    "tpu.trace_start"() <{level = 10 : i32, message = "hqd,hde->hqe"}> : () -> ()
    %cst_28 = arith.constant dense<0.000000e+00> : vector<4x8x32xf32>
    %76 = tpu.matmul %75, %28, %cst_28 {dimension_numbers = #tpu.dot_dimension_numbers<[2], [1], [1], [2], [0, 0, 0, 1, 1, 2], [0], [0]>} : vector<4x8x8xbf16>, vector<4x8x32xbf16>, vector<4x8x32xf32> -> vector<4x8x32xf32>
    "tpu.trace_stop"() : () -> ()
    %cst_29 = arith.constant dense<0.000000e+00> : vector<8x32xf32>
    %77 = vector.multi_reduction <add>, %76, %cst_29 [0] : vector<4x8x32xf32> to vector<8x32xf32>
    %78 = vector.broadcast %9 : vector<1x32xf32> to vector<8x32xf32>
    %79 = arith.addf %77, %78 : vector<8x32xf32>
    %80 = arith.addf %79, %1 : vector<8x32xf32>
    %cst_30 = arith.constant dense<0.000000e+00> : vector<8xf32>
    %81 = vector.multi_reduction <add>, %80, %cst_30 [1] : vector<8x32xf32> to vector<8xf32>
    %82 = vector.shape_cast %81 : vector<8xf32> to vector<8x1xf32>
    %cst_31 = arith.constant 3.200000e+01 : f32
    %83 = vector.broadcast %cst_31 : f32 to vector<8x1xf32>
    %84 = arith.divf %82, %83 : vector<8x1xf32>
    %85 = vector.broadcast %84 : vector<8x1xf32> to vector<8x32xf32>
    %86 = arith.subf %80, %85 : vector<8x32xf32>
    %87 = arith.mulf %86, %86 : vector<8x32xf32>
    %cst_32 = arith.constant dense<0.000000e+00> : vector<8xf32>
    %88 = vector.multi_reduction <add>, %87, %cst_32 [1] : vector<8x32xf32> to vector<8xf32>
    %89 = vector.shape_cast %88 : vector<8xf32> to vector<8x1xf32>
    %cst_33 = arith.constant 3.200000e+01 : f32
    %90 = vector.broadcast %cst_33 : f32 to vector<8x1xf32>
    %91 = arith.divf %89, %90 : vector<8x1xf32>
    %92 = vector.broadcast %84 : vector<8x1xf32> to vector<8x32xf32>
    %93 = arith.subf %80, %92 : vector<8x32xf32>
    %cst_34 = arith.constant 9.99999974E-6 : f32
    %94 = vector.broadcast %cst_34 : f32 to vector<8x1xf32>
    %95 = arith.addf %91, %94 : vector<8x1xf32>
    %96 = math.rsqrt %95 : vector<8x1xf32>
    %97 = vector.broadcast %96 : vector<8x1xf32> to vector<8x32xf32>
    %98 = arith.mulf %93, %97 : vector<8x32xf32>
    %99 = vector.broadcast %10 : vector<1x32xf32> to vector<8x32xf32>
    %100 = arith.mulf %98, %99 : vector<8x32xf32>
    %101 = vector.broadcast %11 : vector<1x32xf32> to vector<8x32xf32>
    %102 = arith.addf %100, %101 : vector<8x32xf32>
    %103 = vector.extract_strided_slice %102 {offsets = [0, 0], sizes = [8, 8], strides = [1, 1]} : vector<8x32xf32> to vector<8x8xf32>
    %104 = vector.extract_strided_slice %102 {offsets = [0, 8], sizes = [8, 8], strides = [1, 1]} : vector<8x32xf32> to vector<8x8xf32>
    %105 = vector.extract_strided_slice %102 {offsets = [0, 16], sizes = [8, 8], strides = [1, 1]} : vector<8x32xf32> to vector<8x8xf32>
    %106 = vector.extract_strided_slice %102 {offsets = [0, 24], sizes = [8, 8], strides = [1, 1]} : vector<8x32xf32> to vector<8x8xf32>
    %107 = vector.shape_cast %103 : vector<8x8xf32> to vector<1x8x8xf32>
    %108 = vector.shape_cast %104 : vector<8x8xf32> to vector<1x8x8xf32>
    %109 = vector.shape_cast %105 : vector<8x8xf32> to vector<1x8x8xf32>
    %110 = vector.shape_cast %106 : vector<8x8xf32> to vector<1x8x8xf32>
    %111 = tpu.concatenate %107, %108, %109, %110 in 0 : vector<1x8x8xf32>, vector<1x8x8xf32>, vector<1x8x8xf32>, vector<1x8x8xf32> -> vector<4x8x8xf32>
    %112 = arith.truncf %111 : vector<4x8x8xf32> to vector<4x8x8xbf16>
    %113 = vector.extract_strided_slice %7 {offsets = [0, 0], sizes = [8, 8], strides = [1, 1]} : vector<8x32xf32> to vector<8x8xf32>
    %114 = vector.extract_strided_slice %7 {offsets = [0, 8], sizes = [8, 8], strides = [1, 1]} : vector<8x32xf32> to vector<8x8xf32>
    %115 = vector.extract_strided_slice %7 {offsets = [0, 16], sizes = [8, 8], strides = [1, 1]} : vector<8x32xf32> to vector<8x8xf32>
    %116 = vector.extract_strided_slice %7 {offsets = [0, 24], sizes = [8, 8], strides = [1, 1]} : vector<8x32xf32> to vector<8x8xf32>
    %117 = vector.shape_cast %113 : vector<8x8xf32> to vector<1x8x8xf32>
    %118 = vector.shape_cast %114 : vector<8x8xf32> to vector<1x8x8xf32>
    %119 = vector.shape_cast %115 : vector<8x8xf32> to vector<1x8x8xf32>
    %120 = vector.shape_cast %116 : vector<8x8xf32> to vector<1x8x8xf32>
    %121 = tpu.concatenate %117, %118, %119, %120 in 0 : vector<1x8x8xf32>, vector<1x8x8xf32>, vector<1x8x8xf32>, vector<1x8x8xf32> -> vector<4x8x8xf32>
    %122 = arith.truncf %121 : vector<4x8x8xf32> to vector<4x8x8xbf16>
    %123 = vector.extract_strided_slice %5 {offsets = [0, 0], sizes = [8, 8], strides = [1, 1]} : vector<8x32xf32> to vector<8x8xf32>
    %124 = vector.extract_strided_slice %5 {offsets = [0, 8], sizes = [8, 8], strides = [1, 1]} : vector<8x32xf32> to vector<8x8xf32>
    %125 = vector.extract_strided_slice %5 {offsets = [0, 16], sizes = [8, 8], strides = [1, 1]} : vector<8x32xf32> to vector<8x8xf32>
    %126 = vector.extract_strided_slice %5 {offsets = [0, 24], sizes = [8, 8], strides = [1, 1]} : vector<8x32xf32> to vector<8x8xf32>
    %127 = vector.shape_cast %123 : vector<8x8xf32> to vector<1x8x8xf32>
    %128 = vector.shape_cast %124 : vector<8x8xf32> to vector<1x8x8xf32>
    %129 = vector.shape_cast %125 : vector<8x8xf32> to vector<1x8x8xf32>
    %130 = vector.shape_cast %126 : vector<8x8xf32> to vector<1x8x8xf32>
    %131 = tpu.concatenate %127, %128, %129, %130 in 0 : vector<1x8x8xf32>, vector<1x8x8xf32>, vector<1x8x8xf32>, vector<1x8x8xf32> -> vector<4x8x8xf32>
    %132 = arith.truncf %131 : vector<4x8x8xf32> to vector<4x8x8xbf16>
    %c0_35 = arith.constant 0 : index
    %c0_36 = arith.constant 0 : index
    %c0_37 = arith.constant 0 : index
    %c0_38 = arith.constant 0 : index
    %133 = vector.load %arg7[%c0_35, %c0_36, %c0_37, %c0_38] : memref<1x1x8x8xi8, #tpu.memory_space<vmem>>, vector<1x1x8x8xi8>
    %134 = vector.shape_cast %133 : vector<1x1x8x8xi8> to vector<8x8xi8>
    %135 = arith.sitofp %134 : vector<8x8xi8> to vector<8x8xf32>
    %cst_39 = arith.constant 1.000000e+00 : f32
    %136 = vector.broadcast %cst_39 : f32 to vector<8x8xf32>
    %137 = arith.subf %135, %136 : vector<8x8xf32>
    %cst_40 = arith.constant 1.000000e+20 : f32
    %138 = vector.broadcast %cst_40 : f32 to vector<8x8xf32>
    %139 = arith.mulf %137, %138 : vector<8x8xf32>
    "tpu.trace_start"() <{level = 10 : i32, message = "hqd,hde->hqe"}> : () -> ()
    %cst_41 = arith.constant dense<0.000000e+00> : vector<4x8x8xf32>
    %140 = tpu.matmul %112, %26, %cst_41 {dimension_numbers = #tpu.dot_dimension_numbers<[2], [1], [1], [2], [0, 0, 0, 1, 1, 2], [0], [0]>} : vector<4x8x8xbf16>, vector<4x8x8xbf16>, vector<4x8x8xf32> -> vector<4x8x8xf32>
    "tpu.trace_stop"() : () -> ()
    %141 = arith.truncf %140 : vector<4x8x8xf32> to vector<4x8x8xbf16>
    "tpu.trace_start"() <{level = 10 : i32, message = "hqd,hkd->hqk"}> : () -> ()
    %cst_42 = arith.constant dense<0.000000e+00> : vector<4x8x8xf32>
    %142 = tpu.matmul %141, %122, %cst_42 {dimension_numbers = #tpu.dot_dimension_numbers<[2], [2], [1], [1], [0, 0, 0, 1, 1, 1], [0], [0]>} : vector<4x8x8xbf16>, vector<4x8x8xbf16>, vector<4x8x8xf32> -> vector<4x8x8xf32>
    "tpu.trace_stop"() : () -> ()
    %143 = vector.shape_cast %139 : vector<8x8xf32> to vector<1x8x8xf32>
    %144 = vector.broadcast %143 : vector<1x8x8xf32> to vector<4x8x8xf32>
    %145 = arith.addf %142, %144 : vector<4x8x8xf32>
    %cst_43 = arith.constant dense<0xFF800000> : vector<4x8xf32>
    %146 = vector.multi_reduction <maximumf>, %145, %cst_43 [2] : vector<4x8x8xf32> to vector<4x8xf32>
    %147 = vector.shape_cast %146 : vector<4x8xf32> to vector<4x8x1xf32>
    %148 = vector.broadcast %147 : vector<4x8x1xf32> to vector<4x8x8xf32>
    %149 = arith.subf %145, %148 : vector<4x8x8xf32>
    %150 = math.exp %149 : vector<4x8x8xf32>
    %cst_44 = arith.constant dense<0.000000e+00> : vector<4x8xf32>
    %151 = vector.multi_reduction <add>, %150, %cst_44 [2] : vector<4x8x8xf32> to vector<4x8xf32>
    %152 = vector.shape_cast %151 : vector<4x8xf32> to vector<4x8x1xf32>
    %153 = tpu.reciprocal %152 {approx = true} : vector<4x8x1xf32> -> vector<4x8x1xf32>
    %154 = vector.broadcast %153 : vector<4x8x1xf32> to vector<4x8x8xf32>
    %155 = arith.mulf %150, %154 : vector<4x8x8xf32>
    %156 = arith.truncf %155 : vector<4x8x8xf32> to vector<4x8x8xbf16>
    "tpu.trace_start"() <{level = 10 : i32, message = "hqk,hkd->hqd"}> : () -> ()
    %cst_45 = arith.constant dense<0.000000e+00> : vector<4x8x8xf32>
    %157 = tpu.matmul %156, %132, %cst_45 {dimension_numbers = #tpu.dot_dimension_numbers<[2], [1], [1], [2], [0, 0, 0, 1, 1, 2], [0], [0]>} : vector<4x8x8xbf16>, vector<4x8x8xbf16>, vector<4x8x8xf32> -> vector<4x8x8xf32>
    "tpu.trace_stop"() : () -> ()
    %158 = arith.truncf %157 : vector<4x8x8xf32> to vector<4x8x8xbf16>
    "tpu.trace_start"() <{level = 10 : i32, message = "hqd,hde->hqe"}> : () -> ()
    %cst_46 = arith.constant dense<0.000000e+00> : vector<4x8x32xf32>
    %159 = tpu.matmul %158, %29, %cst_46 {dimension_numbers = #tpu.dot_dimension_numbers<[2], [1], [1], [2], [0, 0, 0, 1, 1, 2], [0], [0]>} : vector<4x8x8xbf16>, vector<4x8x32xbf16>, vector<4x8x32xf32> -> vector<4x8x32xf32>
    "tpu.trace_stop"() : () -> ()
    %cst_47 = arith.constant dense<0.000000e+00> : vector<8x32xf32>
    %160 = vector.multi_reduction <add>, %159, %cst_47 [0] : vector<4x8x32xf32> to vector<8x32xf32>
    %161 = vector.broadcast %12 : vector<1x32xf32> to vector<8x32xf32>
    %162 = arith.addf %160, %161 : vector<8x32xf32>
    %163 = arith.addf %162, %102 : vector<8x32xf32>
    %cst_48 = arith.constant dense<0.000000e+00> : vector<8xf32>
    %164 = vector.multi_reduction <add>, %163, %cst_48 [1] : vector<8x32xf32> to vector<8xf32>
    %165 = vector.shape_cast %164 : vector<8xf32> to vector<8x1xf32>
    %cst_49 = arith.constant 3.200000e+01 : f32
    %166 = vector.broadcast %cst_49 : f32 to vector<8x1xf32>
    %167 = arith.divf %165, %166 : vector<8x1xf32>
    %168 = vector.broadcast %167 : vector<8x1xf32> to vector<8x32xf32>
    %169 = arith.subf %163, %168 : vector<8x32xf32>
    %170 = arith.mulf %169, %169 : vector<8x32xf32>
    %cst_50 = arith.constant dense<0.000000e+00> : vector<8xf32>
    %171 = vector.multi_reduction <add>, %170, %cst_50 [1] : vector<8x32xf32> to vector<8xf32>
    %172 = vector.shape_cast %171 : vector<8xf32> to vector<8x1xf32>
    %cst_51 = arith.constant 3.200000e+01 : f32
    %173 = vector.broadcast %cst_51 : f32 to vector<8x1xf32>
    %174 = arith.divf %172, %173 : vector<8x1xf32>
    %175 = vector.broadcast %167 : vector<8x1xf32> to vector<8x32xf32>
    %176 = arith.subf %163, %175 : vector<8x32xf32>
    %cst_52 = arith.constant 9.99999974E-6 : f32
    %177 = vector.broadcast %cst_52 : f32 to vector<8x1xf32>
    %178 = arith.addf %174, %177 : vector<8x1xf32>
    %179 = math.rsqrt %178 : vector<8x1xf32>
    %180 = vector.broadcast %179 : vector<8x1xf32> to vector<8x32xf32>
    %181 = arith.mulf %176, %180 : vector<8x32xf32>
    %182 = vector.broadcast %13 : vector<1x32xf32> to vector<8x32xf32>
    %183 = arith.mulf %181, %182 : vector<8x32xf32>
    %184 = vector.broadcast %14 : vector<1x32xf32> to vector<8x32xf32>
    %185 = arith.addf %183, %184 : vector<8x32xf32>
    %186 = arith.truncf %185 : vector<8x32xf32> to vector<8x32xbf16>
    %c0_53 = arith.constant 0 : index
    %c0_54 = arith.constant 0 : index
    %187 = vector.load %arg10[%c0_53, %c0_54] : memref<32x64xbf16, #tpu.memory_space<vmem>>, vector<32x64xbf16>
    %cst_55 = arith.constant dense<0.000000e+00> : vector<8x64xf32>
    %188 = tpu.matmul %186, %187, %cst_55 {dimension_numbers = #tpu.dot_dimension_numbers<[1], [0], [0], [1], [0, 0, 1, 1], [], []>} : vector<8x32xbf16>, vector<32x64xbf16>, vector<8x64xf32> -> vector<8x64xf32>
    %c0_56 = arith.constant 0 : index
    %c0_57 = arith.constant 0 : index
    %189 = vector.load %arg11[%c0_56, %c0_57] : memref<1x64xf32, #tpu.memory_space<vmem>>, vector<1x64xf32>
    %190 = vector.broadcast %189 : vector<1x64xf32> to vector<8x64xf32>
    %191 = arith.addf %188, %190 : vector<8x64xf32>
    %cst_58 = arith.constant 0.000000e+00 : f32
    %192 = vector.broadcast %cst_58 : f32 to vector<8x64xf32>
    %193 = arith.maximumf %191, %192 : vector<8x64xf32>
    %194 = arith.truncf %193 : vector<8x64xf32> to vector<8x64xbf16>
    %c0_59 = arith.constant 0 : index
    %c0_60 = arith.constant 0 : index
    %195 = vector.load %arg12[%c0_59, %c0_60] : memref<64x32xbf16, #tpu.memory_space<vmem>>, vector<64x32xbf16>
    %cst_61 = arith.constant dense<0.000000e+00> : vector<8x32xf32>
    %196 = tpu.matmul %194, %195, %cst_61 {dimension_numbers = #tpu.dot_dimension_numbers<[1], [0], [0], [1], [0, 0, 1, 1], [], []>} : vector<8x64xbf16>, vector<64x32xbf16>, vector<8x32xf32> -> vector<8x32xf32>
    %197 = vector.broadcast %15 : vector<1x32xf32> to vector<8x32xf32>
    %198 = arith.addf %196, %197 : vector<8x32xf32>
    %199 = arith.addf %198, %185 : vector<8x32xf32>
    %cst_62 = arith.constant dense<0.000000e+00> : vector<8xf32>
    %200 = vector.multi_reduction <add>, %199, %cst_62 [1] : vector<8x32xf32> to vector<8xf32>
    %201 = vector.shape_cast %200 : vector<8xf32> to vector<8x1xf32>
    %cst_63 = arith.constant 3.200000e+01 : f32
    %202 = vector.broadcast %cst_63 : f32 to vector<8x1xf32>
    %203 = arith.divf %201, %202 : vector<8x1xf32>
    %204 = vector.broadcast %203 : vector<8x1xf32> to vector<8x32xf32>
    %205 = arith.subf %199, %204 : vector<8x32xf32>
    %206 = arith.mulf %205, %205 : vector<8x32xf32>
    %cst_64 = arith.constant dense<0.000000e+00> : vector<8xf32>
    %207 = vector.multi_reduction <add>, %206, %cst_64 [1] : vector<8x32xf32> to vector<8xf32>
    %208 = vector.shape_cast %207 : vector<8xf32> to vector<8x1xf32>
    %cst_65 = arith.constant 3.200000e+01 : f32
    %209 = vector.broadcast %cst_65 : f32 to vector<8x1xf32>
    %210 = arith.divf %208, %209 : vector<8x1xf32>
    %211 = vector.broadcast %203 : vector<8x1xf32> to vector<8x32xf32>
    %212 = arith.subf %199, %211 : vector<8x32xf32>
    %cst_66 = arith.constant 9.99999974E-6 : f32
    %213 = vector.broadcast %cst_66 : f32 to vector<8x1xf32>
    %214 = arith.addf %210, %213 : vector<8x1xf32>
    %215 = math.rsqrt %214 : vector<8x1xf32>
    %216 = vector.broadcast %215 : vector<8x1xf32> to vector<8x32xf32>
    %217 = arith.mulf %212, %216 : vector<8x32xf32>
    %218 = vector.broadcast %16 : vector<1x32xf32> to vector<8x32xf32>
    %219 = arith.mulf %217, %218 : vector<8x32xf32>
    %220 = vector.broadcast %17 : vector<1x32xf32> to vector<8x32xf32>
    %221 = arith.addf %219, %220 : vector<8x32xf32>
    %c0_67 = arith.constant 0 : index
    %c0_68 = arith.constant 0 : index
    %c0_69 = arith.constant 0 : index
    %222 = vector.load %arg14[%c0_67, %c0_68, %c0_69] : memref<1x8x32xf32, #tpu.memory_space<vmem>>, vector<1x8x32xf32>
    %223 = vector.shape_cast %222 : vector<1x8x32xf32> to vector<8x32xf32>
    %224 = vector.shape_cast %221 : vector<8x32xf32> to vector<1x8x32xf32>
    tpu.vector_store %arg14[%c0_67, %c0_68, %c0_69], %224 {strides = array<i32>} : memref<1x8x32xf32, #tpu.memory_space<vmem>>, vector<1x8x32xf32>,
    return
  }
  func.func @transform_0(%arg0: i32, %arg1: i32) -> (i32, i32, i32) {
    %c0_i32 = arith.constant 0 : i32
    %c0_i32_0 = arith.constant 0 : i32
    return %arg0, %arg1, %c0_i32 : i32, i32, i32
  }
  func.func @transform_1(%arg0: i32, %arg1: i32) -> (i32, i32, i32) {
    %c0_i32 = arith.constant 0 : i32
    %c0_i32_0 = arith.constant 0 : i32
    %c0_i32_1 = arith.constant 0 : i32
    return %arg0, %c0_i32, %c0_i32_0 : i32, i32, i32
  }
  func.func @transform_2(%arg0: i32, %arg1: i32) -> (i32, i32, i32) {
    %c0_i32 = arith.constant 0 : i32
    %c0_i32_0 = arith.constant 0 : i32
    %c0_i32_1 = arith.constant 0 : i32
    return %arg0, %c0_i32, %c0_i32_0 : i32, i32, i32
  }
  func.func @transform_3(%arg0: i32, %arg1: i32) -> (i32, i32, i32) {
    %c0_i32 = arith.constant 0 : i32
    %c0_i32_0 = arith.constant 0 : i32
    %c0_i32_1 = arith.constant 0 : i32
    return %arg0, %c0_i32, %c0_i32_0 : i32, i32, i32
  }
  func.func @transform_4(%arg0: i32, %arg1: i32) -> (i32, i32, i32, i32) {
    %c0_i32 = arith.constant 0 : i32
    %c0_i32_0 = arith.constant 0 : i32
    %c0_i32_1 = arith.constant 0 : i32
    return %arg0, %arg1, %c0_i32, %c0_i32_0 : i32, i32, i32, i32
  }
  func.func @transform_5(%arg0: i32, %arg1: i32) -> (i32, i32, i32, i32) {
    %c0_i32 = arith.constant 0 : i32
    %c0_i32_0 = arith.constant 0 : i32
    %c0_i32_1 = arith.constant 0 : i32
    return %arg0, %arg1, %c0_i32, %c0_i32_0 : i32, i32, i32, i32
  }
  func.func @transform_6(%arg0: i32, %arg1: i32) -> (i32, i32) {
    %c0_i32 = arith.constant 0 : i32
    %c0_i32_0 = arith.constant 0 : i32
    %c0_i32_1 = arith.constant 0 : i32
    return %c0_i32, %c0_i32_0 : i32, i32
  }
  func.func @transform_7(%arg0: i32, %arg1: i32) -> (i32, i32, i32) {
    %c0_i32 = arith.constant 0 : i32
    %c0_i32_0 = arith.constant 0 : i32
    %c0_i32_1 = arith.constant 0 : i32
    %c0_i32_2 = arith.constant 0 : i32
    return %c0_i32, %c0_i32_0, %c0_i32_1 : i32, i32, i32
  }
  func.func @transform_8(%arg0: i32, %arg1: i32) -> (i32, i32) {
    %c0_i32 = arith.constant 0 : i32
    %c0_i32_0 = arith.constant 0 : i32
    %c0_i32_1 = arith.constant 0 : i32
    return %c0_i32, %c0_i32_0 : i32, i32
  }
  func.func @transform_9(%arg0: i32, %arg1: i32) -> (i32, i32) {
    %c0_i32 = arith.constant 0 : i32
    %c0_i32_0 = arith.constant 0 : i32
    %c0_i32_1 = arith.constant 0 : i32
    return %c0_i32, %c0_i32_0 : i32, i32
  }
  func.func @transform_10(%arg0: i32, %arg1: i32) -> (i32, i32) {
    %c0_i32 = arith.constant 0 : i32
    %c0_i32_0 = arith.constant 0 : i32
    %c0_i32_1 = arith.constant 0 : i32
    return %c0_i32, %c0_i32_0 : i32, i32
  }
  func.func @transform_11(%arg0: i32, %arg1: i32) -> (i32, i32) {
    %c0_i32 = arith.constant 0 : i32
    %c0_i32_0 = arith.constant 0 : i32
    %c0_i32_1 = arith.constant 0 : i32
    return %c0_i32, %c0_i32_0 : i32, i32
  }
  func.func @transform_12(%arg0: i32, %arg1: i32) -> (i32, i32, i32) {
    %c0_i32 = arith.constant 0 : i32
    %c0_i32_0 = arith.constant 0 : i32
    return %arg0, %arg1, %c0_i32 : i32, i32, i32
  }
}

</mosaic_0001>

<bundles_post_ra>
// kernel: tpu_custom_call.1
= control target key start
LH: loop header
LB: loop body
LE: loop exit
PB: predicated region body
PF: predicated region fallthrough
CT: control target
= control target key end

     0   :  { %s3141_s0 = inlined_call_operand.vmem [shape: f32[2,16,32], index: 0, kind: input, shape index: {}]   ;;  %s3142_s1 = inlined_call_operand.hbm [shape: f32[2,16,32], index: 1, kind: input, shape index: {}]   ;;  %s3143_s2 = inlined_call_operand.vmem [shape: f32[2,8,32], index: 2, kind: input, shape index: {}]   ;;  %s3144_s3 = inlined_call_operand.hbm [shape: f32[2,8,32], index: 3, kind: input, shape index: {}]   ;;  %s3145_s4 = inlined_call_operand.hbm [shape: s8[2,2,8,16], index: 4, kind: input, shape index: {}]   ;;  %s3146_s5 = inlined_call_operand.hbm [shape: s8[2,2,8,8], index: 5, kind: input, shape index: {}]   ;;  %s3147_s6 = inlined_call_operand.vmem [shape: bf16[8,16], index: 6, kind: input, shape index: {}]   ;;  %s3148_s7 = inlined_call_operand.hbm [shape: bf16[8,8,32], index: 7, kind: input, shape index: {}]   ;;  %s3149_s8 = inlined_call_operand.hbm [shape: bf16[32,64], index: 8, kind: input, shape index: {}]   ;;  %s3150_s9 = inlined_call_operand.vmem [shape: f32[1,64], index: 9, kind: input, shape index: {}]   ;;  %s3151_s10 = inlined_call_operand.vmem [shape: bf16[64,32], index: 10, kind: input, shape index: {}]   ;;  %s3152_s11 = inlined_call_operand.hbm [shape: f32[9,32], index: 11, kind: input, shape index: {}]   ;;  %s3153_s12 = inlined_call_operand.hbm [shape: f32[2,16,32], index: 12, kind: output, shape index: {}]  }
   0x1   :  { %3168 = sst [smem:[#allocation30_spill]] %s3141_s0 }
   0x2   :  { %3169 = sst [smem:[#allocation31_spill]] %s3142_s1 }
   0x3   :  { %3170 = sst [smem:[#allocation32_spill]] %s3143_s2 }
   0x4   :  { %3171 = sst [smem:[#allocation33_spill]] %s3144_s3 }
   0x5   :  { %3172 = sst [smem:[#allocation34_spill]] %s3145_s4 }
   0x6   :  { %3173 = sst [smem:[#allocation35_spill]] %s3147_s6 }
   0x7   :  { %3174 = sst [smem:[#allocation36_spill]] %s3148_s7 }
   0x8   :  { %3175 = sst [smem:[#allocation37_spill]] %s3149_s8 }
   0x9   :  { %3176 = sst [smem:[#allocation38_spill]] %s3150_s9 }
   0xa   :  { %3177 = sst [smem:[#allocation39_spill]] %s3151_s10 }
   0xb   :  { %3178 = sst [smem:[#allocation40_spill]] %s3152_s11 }
   0xc   :  { %3179 = sst [smem:[#allocation41_spill]] %s3153_s12 }
   0xd   :  { %17 = vsyncpa [#allocation3], 0 }
   0xe   :  { %19 = vsyncpa [#allocation3 + $0x1], 0 }
   0xf   :  { %20 = vsyncpa [#allocation6], 0 }
  0x10   :  { %22 = vsyncpa [#allocation6 + $0x1], 0 }
  0x11   :  { %23 = vsyncpa [#allocation9], 0 }
  0x12   :  { %25 = vsyncpa [#allocation9 + $0x1], 0 }
  0x13   :  { %26 = vsyncpa [#allocation12], 0 }
  0x14   :  { %27 = vsyncpa [#allocation4], 0 }
  0x15   :  { %29 = vsyncpa [#allocation4 + $0x1], 0  ;;  %s2671_s21 = smov 0   ;;  %s2673_s22 = smov 0  }
  0x16   :  { %s2675_s23 = smov 0   ;;  %s2677_s24 = smov 0  }
  0x17   :  { %s2679_s25 = smov 0   ;;  %s2681_s26 = smov 0  }
  0x18   :  { %s2683_s27 = smov 0   ;;  %s2685_s28 = smov 0  }
  0x19   :  { %s2687_s29 = smov 0   ;;  %s2689_s30 = smov 0  }
  0x1a   :  { %s2691_s13 = smov 0  }
  0x1b LB: > { %3180 = sst [smem:[#allocation22_spill]] %s2553_s21  ;;  %s2727_s14 = sadd.s32 4294967295, %s2593_s13   ;;  %s2593_s13 = sphi %s2691_s13, %s35_s13   ;;  %s2589_s30 = sphi %s2689_s30, %s3231_s30   ;;  %s2585_s29 = sphi %s2687_s29, %s3230_s29   ;;  %s2581_s28 = sphi %s2685_s28, %s3229_s28   ;;  %s2577_s27 = sphi %s2683_s27, %s3228_s27   ;;  %s2573_s26 = sphi %s2681_s26, %s3227_s26   ;;  %s2569_s25 = sphi %s2679_s25, %s3226_s25   ;;  %s2565_s24 = sphi %s2677_s24, %s3225_s24   ;;  %s2561_s23 = sphi %s2675_s23, %s3224_s23   ;;  %s2557_s22 = sphi %s2673_s22, %s3223_s22   ;;  %s2553_s21 = sphi %s2671_s21, %s3220_s21  }
  0x1c   : > { %3181 = sst [smem:[#allocation23_spill]] %s2557_s22  ;;  %p1928_p0 = scmp.ge.s32.totalorder %s2593_s13, 1 }
  0x1d   : > { %3182 = sst [smem:[#allocation24_spill]] %s2577_s27  ;;  %p96_p1 = scmp.eq.s32.totalorder %s2727_s14, 0 }
  0x1e   : > { %3183 = sst [smem:[#allocation25_spill]] %s2581_s28  ;;  %p368_p2 = scmp.lt.s32.totalorder %s2593_s13, 5 }
  0x1f   : > { %s3184_s7 = sld [smem:[#allocation36_spill]]  ;;  %s2595_s19 = smov [#allocation10]  }
  0x20   : > { %p2735_p3 = pnand %p1928_p0, %p368_p2  ;;  %s384_s20 = sshll.u32 %s2595_s19, 4  ;;  %s385_s20 = int_to_ptr.vmem [resolvable:$true] %s384_s20 }
  0x21   : > { %s3187_s8 = sld [smem:[#allocation37_spill]]  ;;  %s2596_s19 = smov 64  }
  0x22   : > { %s3185_s18 = scalar_select %p2735_p3, 1, 0 }
  0x23   : > { %p2050_p4 = pneg %p2735_p3  ;;  %s2597_s9 = smov 4  }
  0x24   : > { %s2598_s10 = smov [#allocation11]   ;;  %p89_p6 = scmp.ne.s32.totalorder %s2573_s26, %s2569_s25 }
  0x25   : > { %s382_s17 = sshll.u32 %s3184_s7, 4  ;;  %p2743_p5 = pnand %p2050_p4, %p96_p1  ;;  %s383_s17 = int_to_ptr.hbm [resolvable:$true] %s382_s17 }
  0x26   : > { %s398_s2 = sshll.u32 %s2598_s10, 4  ;;  %s1927_s7 = sadd.s32 4294967294, %s2593_s13   ;;  %s399_s2 = int_to_ptr.vmem [resolvable:$true] %s398_s2 }
  0x27   : > { %s396_s12 = sshll.u32 %s3187_s8, 4  ;;  %p90_p7 = scmp.eq.s32.totalorder %s2593_s13, 0  ;;  %s397_s12 = int_to_ptr.hbm [resolvable:$true] %s396_s12 }
  0x28   : > { %2053 = dma.hbm_to_vmem [thread:$0]  (!%p2743_p5), %s383_s17, 512, %s385_s20, [#allocation9], %s2596_s19, %s2596_s19, %s2597_s9  }
  0x29   : > { %2056 = dma.hbm_to_vmem [thread:$0]  (!%p2743_p5), %s397_s12, 256, %s399_s2, [#allocation12], %s2596_s19, %s2596_s19, %s2597_s9  }
  0x2a   : > { %p95_p8 = scmp.ne.s32.totalorder %s2569_s25, %s2565_s24  ;;  %p169_p9 = scmp.ne.s32.totalorder %s2561_s23, %s2557_s22 }
  0x2b   : > { %p91_p10 = por %p90_p7, %p89_p6  ;;  %p175_p11 = scmp.ne.s32.totalorder %s2557_s22, %s2553_s21 }
  0x2c   : > { %p2767_p12 = por %p96_p1, %p95_p8  ;;  %p2771_p13 = por %p169_p9, %p90_p7 }
  0x2d   : > { %p2777_p0 = por %p175_p11, %p96_p1  ;;  %p355_p2 = scmp.eq.s32.totalorder %s2727_s14, 3 }
  0x2e   : > { %p361_p4 = scmp.eq.s32.totalorder %s1927_s7, 3  ;;  %p2080_p6 = scmp.lt.s32.totalorder %s2593_s13, 4 }
  0x2f   : > { %s3190_s2 = scalar_select %p2777_p0, 1, 0 }
  0x30   : > { %p2783_p3 = por %p355_p2, %p169_p9  ;;  %s2788_s12 = sand.u32 1, %s2573_s26  }
  0x31   : > { %3191 = sst [smem:[#allocation26_spill]] %s3190_s2  ;;  %p2790_p7 = por %p361_p4, %p175_p11 }
  0x32   : > { %s3192_s9 = scalar_select %p2783_p3, 1, 0 }
  0x33   : > { %s3194_s24 = scalar_select %p2790_p7, 1, 0 }
  0x34   : > { %3193 = sst [smem:[#allocation27_spill]] %s3192_s9  ;;  %s1933_s20 = sshll.u32 %s2788_s12, 4 }
  0x35   : > { %3195 = sst [smem:[#allocation28_spill]] %s3194_s24  ;;  %p2797_p8 = pnand %p2080_p6, %p91_p10 }
  0x36   : > { %s3165_s7 = sand.u32 1, %s2593_s13   ;;  %s1936_s16 = sshll.u32 %s2788_s12, 3 }
  0x37   : > { %s1937_s8 = sshll.u32 %s2589_s30, 3  ;;  %s476_s21 = scalar_lea.vmem [#allocation5], %s1936_s16 }
  0x38   : > { %s484_s9 = sshll.u32 %s476_s21, 4  ;;  %s3197_s3 = sld [smem:[#allocation33_spill]]  ;;  %s485_s9 = int_to_ptr.vmem [resolvable:$true] %s484_s9 }
  0x39   : > { %p2811_p9 = pnand %p2080_p6, %p2771_p13  ;;  %s2817_s2 = scalar_lea.sflag [#allocation6], %s3165_s7 }
  0x3a   : > { %s3199_s11 = sld [smem:[#allocation40_spill]]  ;;  %s2599_s6 = smov [#allocation13]  }
  0x3b   : > { %s2601_s10 = smov 8   ;;  %s3200_s1 = sld [smem:[#allocation31_spill]] }
  0x3c   : > { %s44_s22 = sadd.s32 1, %s2585_s29  ;;  %s47_s15 = sadd.s32 1, %s2589_s30 }
  0x3d   : > { %s3202_s4 = sld [smem:[#allocation34_spill]]  ;;  %p3205_p2 = scmp.ne.s32.totalorder %s3185_s18, 0 }
  0x3e   : > { %s480_s27 = scalar_lea.hbm %s3197_s3, %s1937_s8  ;;  %s418_s8 = sshll.u32 %s2599_s6, 4  ;;  %s419_s8 = int_to_ptr.vmem [resolvable:$true] %s418_s8 }
  0x3f   : > { %s482_s24 = sshll.u32 %s480_s27, 4  ;;  %s2600_s27 = smov 128   ;;  %s483_s24 = int_to_ptr.hbm [resolvable:$true] %s482_s24 }
  0x40   : > { %2066 = dma.hbm_to_vmem [thread:$0]  (!%p2797_p8), %s483_s24, 128, %s485_s9, %s2817_s2  }
  0x41   : > { %s416_s0 = sshll.u32 %s3199_s11, 4  ;;  %s2021_s9 = sshll.u32 %s2589_s30, 4  ;;  %s417_s0 = int_to_ptr.hbm [resolvable:$true] %s416_s0 }
  0x42   : > { %2059 = dma.hbm_to_vmem [thread:$0]  (!%p2743_p5), %s417_s0, 256, %s419_s8, [#allocation12], %s2600_s27, %s2600_s27, %s2601_s10  }
  0x43   : > { %s447_s24 = scalar_lea.vmem [#allocation2], %s1933_s20  ;;  %s452_s3 = scalar_lea.hbm %s3200_s1, %s2021_s9 }
  0x44   : > { %s455_s21 = sshll.u32 %s447_s24, 4  ;;  %s453_s6 = sshll.u32 %s452_s3, 4  ;;  %s456_s21 = int_to_ptr.vmem [resolvable:$true] %s455_s21  ;;  %s454_s6 = int_to_ptr.hbm [resolvable:$true] %s453_s6 }
  0x45   : > { %s444_s11 = scalar_lea.sflag [#allocation3], %s2788_s12  ;;  %p45_p5 = scmp.ge.s32.totalorder %s44_s22, 2 }
  0x46   : > { %2063 = dma.hbm_to_vmem [thread:$0]  (!%p2797_p8), %s454_s6, 256, %s456_s21, %s444_s11, %s2600_s27, %s2600_s27, %s2601_s10  }
  0x47   : > { %s162_s0 = sadd.s32 1, %s2561_s23  ;;  %s493_s8 = sand.u32 1, %s2561_s23  }
  0x48   : > { %s1939_s20 = sshll.u32 %s2589_s30, 1  ;;  %s3233_s22 = smov (%p45_p5, %s44_s22), 0 }
  0x49   : > { %s3235_s15 = smov (!%p45_p5, %s47_s15), %s2589_s30  ;;  %s158_s7 = ssub.s32 %s2585_s29, %s3233_s22 }
  0x4a   : > { %s1938_s3 = sshll.u32 %s493_s8, 1  ;;  %p49_p10 = scmp.ge.s32.totalorder %s3235_s15, 2 }
  0x4b   : > { %s499_s11 = sadd.s32 %s2585_s29, %s1939_s20  ;;  %s495_s12 = scalar_lea.vmem [#allocation7], %s1938_s3 }
  0x4c   : > { %s505_s19 = sshll.u32 %s495_s12, 4  ;;  %s3237_s15 = smov (%p49_p10, %s3235_s15), 0  ;;  %s506_s19 = int_to_ptr.vmem [resolvable:$true] %s505_s19 }
  0x4d   : > { %3201 = sst [smem:[#allocation29_spill]] %s3237_s15  ;;  %s1940_s27 = sshll.u32 %s499_s11, 1 }
  0x4e   : > { %s79_s10 = ssub.s32 %s2589_s30, %s3237_s15  ;;  %s501_s21 = scalar_lea.hbm %s3202_s4, %s1940_s27 }
  0x4f   : > { %p80_p11 = scmp.eq.s32.totalorder %s79_s10, 0  ;;  %s159_s16 = sor.u32 %s158_s7, %s79_s10 }
  0x50   : > { %p160_p13 = scmp.eq.s32.totalorder %s159_s16, 0  ;;  %s503_s6 = sshll.u32 %s501_s21, 4  ;;  %s504_s6 = int_to_ptr.hbm [resolvable:$true] %s503_s6 }
  0x51   : > { %s3203_s8 = sadd.s32 1, %s2573_s26  ;;  %s522_s15 = scalar_lea.hbm %s3146_s5, %s1940_s27 }
  0x52   : > { %s2855_s20 = scalar_select %p80_p11, %s2573_s26, %s3203_s8  }
  0x53   : > { %s2858_s12 = scalar_select %p160_p13, %s2561_s23, %s162_s0  }
  0x54   : > { %2069 = dma.hbm_to_vmem [thread:$0]  (!%p2811_p9), %s504_s6, 32, %s506_s19, %s2817_s2  }
  0x55   : > { %s516_s9 = scalar_lea.vmem [#allocation8], %s1938_s3  ;;  %s524_s4 = sshll.u32 %s522_s15, 4  ;;  %s525_s4 = int_to_ptr.hbm [resolvable:$true] %s524_s4 }
  0x56   : > { %s526_s24 = sshll.u32 %s516_s9, 4  ;;  %s3204_s7 = sand.u32 1, %s2593_s13   ;;  %s527_s24 = int_to_ptr.vmem [resolvable:$true] %s526_s24 }
  0x57   : > { %s513_s10 = scalar_lea.sflag [#allocation9], %s3204_s7  ;;  %535 = sbr.rel (%p3205_p2) target bundleno = 3051 (0xbeb), region = 68 }
  0x58   : > { %2072 = dma.hbm_to_vmem [thread:$0]  (!%p2811_p9), %s525_s4, 32, %s527_s24, %s513_s10  }
  0x59   : > { %s537_s0 = sand.u32 (!%p3205_p2), 1, %s2569_s25  }
  0x5a   : > { %s1945_s2 = sshll.u32 (!%p3205_p2), %s537_s0, 4  ;;  %s538_s19 = scalar_lea.sflag (!%p3205_p2), [#allocation3], %s537_s0 }
  0x5b   : > { %s2873_s21 = scalar_lea.vmem (!%p3205_p2), [#allocation2], %s1945_s2 }
  0x5c   : > { %2524 = dma.done.wait (%p2767_p12), %s538_s19, 256  }
  0x5d   : > { %2526 = vsyncadd (%p2767_p12), %s538_s19, 4294967040  ;;  %s547_s1 = sand.u32 1, %s2727_s14   ;;  %s1946_s28 = sshll.u32 %s537_s0, 3 }
  0x5e   : > { %s548_s4 = scalar_lea.sflag [#allocation6], %s547_s1  ;;  %s2880_s15 = scalar_lea.vmem [#allocation5], %s1946_s28 }
  0x5f   : > { %2528 = dma.done.wait (%p2767_p12), %s548_s4, 128  }
  0x60   : > { %2530 = vsyncadd (%p2767_p12), %s548_s4, 4294967168  ;;  %s3206_s18 = sld [smem:[#allocation23_spill]] }
  0x66   : > { %s2887_s27 = sand.u32 1, %s3206_s18  }
  0x67   : > { %s1947_s16 = sshll.u32 %s2887_s27, 1 }
  0x68   : > { %s2890_s6 = scalar_lea.vmem [#allocation7], %s1947_s16 }
  0x69   : > { %2532 = dma.done.wait (%p2777_p0), %s548_s4, 32  }
  0x6a   : > { %2534 = vsyncadd (%p2777_p0), %s548_s4, 4294967264  ;;  %s568_s8 = scalar_lea.sflag [#allocation9], %s547_s1  ;;  %s2896_s11 = scalar_lea.vmem [#allocation8], %s1947_s16 }
  0x6b   : > { %2536 = dma.done.wait (%p2777_p0), %s568_s8, 32  }
  0x6c   : > { %2538 = vsyncadd (%p2777_p0), %s568_s8, 4294967264 }
  0x6d   : > { %2540 = dma.done.wait (%p96_p1), [#allocation9], 512  }
  0x6e   : > { %2542 = vsyncadd (%p96_p1), [#allocation9], 4294966784 }
  0x6f   : > { %2544 = dma.done.wait (%p96_p1), [#allocation12], 512  }
  0x70   : > { %2546 = vsyncadd (%p96_p1), [#allocation12], 4294966784  ;;  %s3208_s17 = sld [smem:[#allocation25_spill]]  ;;  %vm735_vm0 = vcmask 1043456   ;;  %s2602_s16 = smov 120   ;;  %vm731_vm1 = vcmask 64512  }
  0x71   : > { %s3209_s9 = sld [smem:[#allocation24_spill]]  ;;  %s2603_s8 = smov 112   ;;  %v669_v4 = vld [vmem:[%s2873_s21] sm:$0xff]  ;;  %v670_v5 = vld [vmem:[%s2873_s21 + $0x8] sm:$0xff]  ;;  %vm900_vm2 = vcmask 130048   ;;  %vm1097_vm3 = vcmask 261120  }
  0x72   : > { %s3210_s28 = sld [smem:[#allocation35_spill]]  ;;  %v2184_v6 = vpack.i.bf16 %v670_v5, %v669_v4  ;;  %v718_v7 = vpack.c.bf16 %v669_v4, %v669_v4  ;;  %v719_v8 = vpack.c.bf16 %v670_v5, %v670_v5  ;;  %v726_v49 = vld [vmem:[%s2890_s6] sm:$0x3]  ;;  %vm1652_vm11 = vcmask 523264   ;;  %s1698_s14 = scalar_lea.sflag [#allocation4], %s2887_s27 }
  0x73   : > { %s3211_s18 = sld [smem:[#allocation30_spill]]  ;;  %v727_v50 = vunpack.c.0.s8 %v726_v49 }
  0x74   : > { %v806_v9 = vunpack.c.l.b16 %v718_v7  ;;  %v807_v10 = vunpack.c.l.b16 %v719_v8 }
  0x75   : > { %v728_v53 = vcvt.s32.f32 %v727_v50 }
  0x76   : > { %p655_p12 = scmp.lt.s32.totalorder %s3208_s17, 1  ;;  %v808_v11 = vpack.c.b16 %v807_v10, %v806_v9 }
  0x77   : > { %p657_p4 = scmp.lt.s32.totalorder %s3209_s9, 1  ;;  %v1956_v55 = vadd.f32 -1.0, %v728_v53 }
  0x78   : > { %s2913_s24 = scalar_select %p655_p12, %s3208_s17, 1  ;;  %v2920_v0 = vld [vmem:[%s3210_s28] sm:$0xf]  ;;  %v813_v12 = vsel %vm731_vm1, %v808_v11, 0 }
  0x79   : > { %s658_s7 = scalar_select %p657_p4, %s3209_s9, 1  ;;  %v737_v1 = vsel %vm735_vm0, %v2920_v0, 0  ;;  %v730_v58 = vmul.f32 1e+20, %v1956_v55 }
  0x7a   : > { %s1953_s10 = sshll.u32 %s2913_s24, 1  ;;  %746 = vmatpush.bf16.msra.mxu0 %v737_v1  ;;  %762 = vmatpush.bf16.msra.mxu1 %v737_v1  ;;  %s1955_s21 = sshll.u32 %s2913_s24, 3 }
  0x7b   : > { %s660_s0 = sadd.s32 %s1953_s10, %s658_s7  ;;  %778 = vmatpush.bf16.msra.mxu2 %v737_v1  ;;  %794 = vmatpush.bf16.msra.mxu3 %v737_v1  ;;  %s2604_s7 = smov 104  }
  0x7c   : > { %s1954_s2 = sshll.u32 %s660_s0, 3  ;;  %2190 = vrot.lane.b32.xlu2 %v2184_v6, %s2604_s7  ;;  %s3215_s24 = sld [smem:[#allocation41_spill]] }
  0x7d   : > { %s662_s3 = scalar_lea.vmem %s3211_s18, %s1954_s2  ;;  %s3213_s2 = sld [smem:[#allocation39_spill]] }
  0x7e   : > { %v2927_v2 = vld [vmem:[%s662_s3] sm:$0xff]  ;;  %822 = vmatpush.bf16.xpose.msrb.mxu0 %v813_v12 }
  0x7f   : > { %685 = vrot.lane.b32.xlu1 %v2927_v2, %s2602_s16  ;;  %v694_v3 = vpack.c.bf16 %v2927_v2, %v2927_v2  ;;  %688 = vrot.lane.b32.xlu0 %v2927_v2, %s2603_s8 }
  0x81   : > { %1957 = vmatmul.msk.bf16.vlgmr.msra.gmra.mxu0 %vm731_vm1, %v694_v3 }
  0x82   : > { %s3216_s0 = smov %s3215_s24 }
  0x84   : > { %2195 = vrot.lane.b32.xlu2 %v2184_v6, %s2602_s16 }
  0x86   : > { %960 = vmatpush.bf16.msra.mxu0 %v808_v11 }
  0x87   : > { %691 = vrot.lane.b32.xlu0 %v2927_v2, %s2604_s7  ;;  %2185 = vrot.lane.b32.xlu1 %v2184_v6, %s2603_s8 }
  0xd6   : > { %v2191_v22 = vpop.permute.xlu2 %2190 }
  0xd7   : > { %v2193_v33 = vunpack.i.h.bf16 %v2191_v22  ;;  %v2192_v34 = vunpack.i.l.bf16 %v2191_v22 }
  0xd9   : > { %v725_v41 = vpack.c.bf16 %v2193_v33, %v2193_v33  ;;  %v724_v42 = vpack.c.bf16 %v2192_v34, %v2192_v34 }
  0xdb   : > { %v879_v44 = vunpack.c.l.b16 %v725_v41  ;;  %v878_v45 = vunpack.c.l.b16 %v724_v42  ;;  %v676_v41 = vld [vmem:[#allocation10] sm:$0xf] }
  0xdc   : > { %v1025_v42 = vsel %vm735_vm0, %v676_v41, 0 }
  0xdd   : > { %v880_v47 = vpack.c.b16 %v879_v44, %v878_v45 }
  0xde   : > { %v2196_v23 = vpop.permute.xlu2 %2195 }
  0xdf   : > { %v2198_v24 = vunpack.i.h.bf16 %v2196_v23  ;;  %v2197_v25 = vunpack.i.l.bf16 %v2196_v23  ;;  %v885_v48 = vsel %vm731_vm1, %v880_v47, 0 }
  0xe0   : > { %894 = vmatpush.bf16.xpose.msrb.mxu3 %v885_v48 }
  0xe1   : > { %v721_v26 = vpack.c.bf16 %v2198_v24, %v2198_v24  ;;  %v720_v27 = vpack.c.bf16 %v2197_v25, %v2197_v25 }
  0xe3   : > { %v831_v28 = vunpack.c.l.b16 %v721_v26  ;;  %v830_v29 = vunpack.c.l.b16 %v720_v27 }
  0xe5   : > { %v832_v35 = vpack.c.b16 %v831_v28, %v830_v29 }
  0xe7   : > { %v837_v38 = vsel %vm731_vm1, %v832_v35, 0 }
  0xe8   : > { %846 = vmatpush.bf16.xpose.msrb.mxu1 %v837_v38 }
  0xf1   : > { %v686_v13 = vpop.permute.xlu1 %685  ;;  %v689_v15 = vpop.permute.xlu0 %688 }
  0xf2   : > { %v695_v14 = vpack.c.bf16 %v686_v13, %v686_v13  ;;  %v696_v16 = vpack.c.bf16 %v689_v15, %v689_v15 }
  0xf4   : > { %1958 = vmatmul.msk.bf16.vlgmr.msra.gmra.mxu1 %vm731_vm1, %v695_v14  ;;  %1959 = vmatmul.msk.bf16.vlgmr.msra.gmra.mxu2 %vm731_vm1, %v696_v16 }
  0xf5   : > { %977 = vmatpush.bf16.msra.mxu1 %v832_v35 }
  0xf9   : > { %v692_v17 = vpop.permute.xlu0 %691  ;;  %v2186_v30 = vpop.permute.xlu1 %2185 }
  0xfa   : > { %v697_v18 = vpack.c.bf16 %v692_v17, %v692_v17  ;;  %v2188_v31 = vunpack.i.h.bf16 %v2186_v30  ;;  %v2187_v32 = vunpack.i.l.bf16 %v2186_v30 }
  0xfc   : > { %1960 = vmatmul.msk.bf16.vlgmr.msra.gmra.mxu3 %vm731_vm1, %v697_v18  ;;  %v723_v36 = vpack.c.bf16 %v2188_v31, %v2188_v31  ;;  %v722_v37 = vpack.c.bf16 %v2187_v32, %v2187_v32 }
  0xfd   : > { %1011 = vmatpush.bf16.msra.mxu3 %v880_v47 }
  0xfe   : > { %v748_v19 = vpop.f32.mrf.mxu0  ;;  %v855_v39 = vunpack.c.l.b16 %v723_v36  ;;  %v854_v40 = vunpack.c.l.b16 %v722_v37 }
  0xff   : > { %v800_v20 = vpack.c.bf16 %v748_v19, %v748_v19 }
 0x100   : > { %v856_v43 = vpack.c.b16 %v855_v39, %v854_v40 }
 0x101   : > { %1961 = vmatmul.msk.bf16.vlgmr.msrb.gmra.mxu0 %vm731_vm1, %v800_v20 }
 0x102   : > { %v861_v46 = vsel %vm731_vm1, %v856_v43, 0  ;;  %1034 = vmatpush.bf16.msrb.mxu0 %v1025_v42 }
 0x103   : > { %870 = vmatpush.bf16.xpose.msrb.mxu2 %v861_v46 }
 0x106   : > { %v750_v21 = vpop.f32.mrf.mxu0 }
 0x10b   : > { %994 = vmatpush.bf16.msra.mxu2 %v856_v43 }
 0x171   : > { %v764_v51 = vpop.f32.mrf.mxu1 }
 0x172   : > { %v801_v52 = vpack.c.bf16 %v764_v51, %v764_v51 }
 0x174   : > { %1962 = vmatmul.msk.bf16.vlgmr.msrb.gmra.mxu1 %vm731_vm1, %v801_v52 }
 0x177   : > { %v780_v54 = vpop.f32.mrf.mxu2 }
 0x178   : > { %v802_v56 = vpack.c.bf16 %v780_v54, %v780_v54 }
 0x179   : > { %v766_v57 = vpop.f32.mrf.mxu1 }
 0x17a   : > { %1963 = vmatmul.msk.bf16.vlgmr.msrb.gmra.mxu2 %vm731_vm1, %v802_v56 }
 0x17e   : > { %v824_v59 = vpop.f32.mrf.mxu0 }
 0x17f   : > { %v782_v60 = vpop.f32.mrf.mxu2  ;;  %v796_v61 = vpop.f32.mrf.mxu3  ;;  %v825_v62 = vadd.f32 %v824_v59, %v730_v58 }
 0x180   : > { %v803_v63 = vpack.c.bf16 %v796_v61, %v796_v61  ;;  %v677_v60 = vld [vmem:[#allocation10 + $0x4] sm:$0xf] }
 0x181   : > { %v901_v1 = vsel %vm900_vm2, %v825_v62, -inf  ;;  %v1044_v61 = vsel %vm735_vm0, %v677_v60, 0 }
 0x182   : > { %1964 = vmatmul.msk.bf16.vlgmr.msrb.gmra.mxu3 %vm731_vm1, %v803_v63  ;;  %902 = vmax.xlane.f32.xlu2 %v901_v1 }
 0x183   : > { %1053 = vmatpush.bf16.msrb.mxu1 %v1044_v61  ;;  %v672_v61 = vld [vmem:[%s2880_s15] sm:$0xff]  ;;  %s1952_s15 = sshll.u32 %s2887_s27, 3 }
 0x186   : > { %v826_v3 = vpop.f32.mrf.mxu0 }
 0x187   : > { %v798_v4 = vpop.f32.mrf.mxu3 }
 0x1f1   : > { %v848_v5 = vpop.f32.mrf.mxu1 }
 0x1f2   : > { %v849_v6 = vadd.f32 %v848_v5, %v730_v58 }
 0x1f4   : > { %v904_v7 = vsel %vm900_vm2, %v849_v6, -inf }
 0x1f5   : > { %905 = vmax.xlane.f32.xlu2 %v904_v7  ;;  %v903_v8 = vpop.xlane.xlu2 %902 }
 0x1f6   : > { %v913_v9 = vsub.f32 %v825_v62, %v903_v8  ;;  %v679_v62 = vld [vmem:[#allocation10 + $0xc] sm:$0xf] }
 0x1f7   : > { %v1082_v63 = vsel %vm735_vm0, %v679_v62, 0  ;;  %v1165_v62 = vpack.c.bf16 %v672_v61, %v672_v61 }
 0x1f8   : > { %v917_v10 = vmul.f32 1.442695, %v913_v9  ;;  %1091 = vmatpush.bf16.msrb.mxu3 %v1082_v63 }
 0x1f9   : > { %v850_v11 = vpop.f32.mrf.mxu1  ;;  %v1268_v63 = vsel %vm731_vm1, %v1165_v62, 0 }
 0x1fa   : > { %2201 = vpow2.f32 %v917_v10 }
 0x1fd   : > { %v872_v12 = vpop.f32.mrf.mxu2 }
 0x1fe   : > { %v873_v13 = vadd.f32 %v872_v12, %v730_v58 }
 0x200   : > { %v2202_v14 = vpop.eup %2201  ;;  %v907_v15 = vsel %vm900_vm2, %v873_v13, -inf }
 0x201   : > { %908 = vmax.xlane.f32.xlu0 %v907_v15  ;;  %v925_v16 = vsel %vm900_vm2, %v2202_v14, 0.0 }
 0x202   : > { %926 = vadd.xlane.f32.xlu2 %v925_v16 }
 0x205   : > { %v874_v17 = vpop.f32.mrf.mxu2  ;;  %v896_v18 = vpop.f32.mrf.mxu3 }
 0x206   : > { %v897_v19 = vadd.f32 %v896_v18, %v730_v58  ;;  %v678_v58 = vld [vmem:[#allocation10 + $0x8] sm:$0xf] }
 0x207   : > { %v1063_v59 = vsel %vm735_vm0, %v678_v58, 0 }
 0x208   : > { %v910_v20 = vsel %vm900_vm2, %v897_v19, -inf  ;;  %1072 = vmatpush.bf16.msrb.mxu2 %v1063_v59 }
 0x209   : > { %911 = vmax.xlane.f32.xlu1 %v910_v20 }
 0x20d   : > { %v898_v21 = vpop.f32.mrf.mxu3 }
 0x268   : > { %v906_v22 = vpop.xlane.xlu2 %905 }
 0x269   : > { %v914_v26 = vsub.f32 %v849_v6, %v906_v22 }
 0x26b   : > { %v919_v28 = vmul.f32 1.442695, %v914_v26 }
 0x274   : > { %v909_v23 = vpop.xlane.xlu0 %908 }
 0x275   : > { %v915_v24 = vsub.f32 %v873_v13, %v909_v23  ;;  %v927_v25 = vpop.xlane.xlu2 %926 }
 0x276   : > { %2203 = vrcp.f32 %v927_v25 }
 0x277   : > { %v921_v27 = vmul.f32 1.442695, %v915_v24 }
 0x279   : > { %2205 = vpow2.f32 %v921_v27 }
 0x27a   : > { %2207 = vpow2.f32 %v919_v28 }
 0x27c   : > { %v2204_v29 = vpop.eup %2203  ;;  %v912_v30 = vpop.xlane.xlu1 %911 }
 0x27d   : > { %v941_v31 = vmul.f32 %v2204_v29, %v2202_v14  ;;  %v916_v32 = vsub.f32 %v897_v19, %v912_v30  ;;  %v2978_v19 = vld [vmem:[#allocation13] sm:$0xff] }
 0x27e   : > { %v1105_v24 = vperm.slane %v2978_v19, 0 }
 0x27f   : > { %v2206_v33 = vpop.eup %2205  ;;  %v945_v34 = vpack.c.bf16 %v941_v31, %v941_v31  ;;  %v923_v35 = vmul.f32 1.442695, %v916_v32  ;;  %v2605_v31 = vmov 32.0   ;;  %v1189_v32 = vunpack.c.l.b16 %v2920_v0 }
 0x280   : > { %v931_v36 = vsel %vm900_vm2, %v2206_v33, 0.0  ;;  %v2208_v37 = vpop.eup %2207 }
 0x281   : > { %2209 = vpow2.f32 %v923_v35  ;;  %932 = vadd.xlane.f32.xlu0 %v931_v36  ;;  %1965 = vmatmul.msk.bf16.vlgmr.msra.gmra.mxu0 %vm900_vm2, %v945_v34  ;;  %v928_v40 = vsel %vm900_vm2, %v2208_v37, 0.0 }
 0x287   : > { %v2210_v38 = vpop.eup %2209 }
 0x288   : > { %v934_v39 = vsel %vm900_vm2, %v2210_v38, 0.0 }
 0x289   : > { %935 = vadd.xlane.f32.xlu1 %v934_v39  ;;  %929 = vadd.xlane.f32.xlu0 %v928_v40 }
 0x2f4   : > { %v933_v43 = vpop.xlane.xlu0 %932 }
 0x2f5   : > { %2211 = vrcp.f32 %v933_v43 }
 0x2fb   : > { %v2212_v44 = vpop.eup %2211 }
 0x2fc   : > { %v943_v45 = vmul.f32 %v2212_v44, %v2206_v33  ;;  %v936_v46 = vpop.xlane.xlu1 %935  ;;  %v930_v47 = vpop.xlane.xlu0 %929  ;;  %v1190_v33 = vpack.c.b16 %v1189_v32, %v1189_v32 }
 0x2fd   : > { %2213 = vrcp.f32 %v936_v46 }
 0x2fe   : > { %v947_v48 = vpack.c.bf16 %v943_v45, %v943_v45  ;;  %2215 = vrcp.f32 %v930_v47  ;;  %v962_v49 = vpop.f32.mrf.mxu0  ;;  %1191 = vrot.lane.b32.xlu0 %v1190_v33, %s2602_s16 }
 0x2ff   : > { %v1017_v50 = vpack.c.bf16 %v962_v49, %v962_v49  ;;  %2217 = vrcp.f32 %v2605_v31 }
 0x300   : > { %1967 = vmatmul.msk.bf16.vlgmr.msra.gmra.mxu2 %vm900_vm2, %v947_v48 }
 0x301   : > { %1969 = vmatmul.msk.bf16.vlgmr.msrb.gmra.mxu0 %vm731_vm1, %v1017_v50 }
 0x303   : > { %v2214_v51 = vpop.eup %2213 }
 0x304   : > { %v2216_v52 = vpop.eup %2215  ;;  %v944_v53 = vmul.f32 %v2214_v51, %v2210_v38 }
 0x305   : > { %v942_v54 = vmul.f32 %v2216_v52, %v2208_v37  ;;  %v2218_v34 = vpop.eup %2217 }
 0x306   : > { %v948_v55 = vpack.c.bf16 %v944_v53, %v944_v53  ;;  %v964_v56 = vpop.f32.mrf.mxu0  ;;  %v1112_v35 = vmul.f32 32.0, %v2218_v34  ;;  %vm1116_vm4 = vweird.f32 %v2218_v34 }
 0x307   : > { %v946_v57 = vpack.c.bf16 %v942_v54, %v942_v54  ;;  %v1137_v54 = vperm.slane %v2978_v19, 1 }
 0x308   : > { %1968 = vmatmul.msk.bf16.vlgmr.msra.gmra.mxu3 %vm900_vm2, %v948_v55  ;;  %v1113_v36 = vsub.f32 1.0, %v1112_v35 }
 0x309   : > { %1966 = vmatmul.msk.bf16.vlgmr.msra.gmra.mxu1 %vm900_vm2, %v946_v57  ;;  %v1139_v57 = vperm.slane %v2978_v19, 2 }
 0x30a   : > { %v1114_v37 = vmul.f32 %v2218_v34, %v1113_v36 }
 0x30c   : > { %v1115_v38 = vadd.f32 %v2218_v34, %v1114_v37 }
 0x30e   : > { %v2986_v39 = vsel %vm1116_vm4, %v2218_v34, %v1115_v38 }
 0x370   : > { %v1192_v0 = vpop.permute.xlu0 %1191 }
 0x371   : > { %v1197_v44 = vsel %vm735_vm0, %v1192_v0, 0 }
 0x372   : > { %1206 = vmatpush.bf16.msra.mxu0 %v1197_v44  ;;  %1254 = vmatpush.bf16.msra.mxu3 %v1197_v44 }
 0x373   : > { %1222 = vmatpush.bf16.msra.mxu1 %v1197_v44  ;;  %1238 = vmatpush.bf16.msra.mxu2 %v1197_v44 }
 0x376   : > { %1277 = vmatpush.bf16.xpose.msrb.mxu0 %v1268_v63 }
 0x37e   : > { %v1036_v1 = vpop.f32.mrf.mxu0 }
 0x37f   : > { %v1098_v16 = vsel %vm1097_vm3, %v1036_v1, 0.0 }
 0x383   : > { %v996_v3 = vpop.f32.mrf.mxu2 }
 0x384   : > { %v1019_v4 = vpack.c.bf16 %v996_v3, %v996_v3 }
 0x386   : > { %v979_v5 = vpop.f32.mrf.mxu1  ;;  %1971 = vmatmul.msk.bf16.vlgmr.msrb.gmra.mxu2 %vm731_vm1, %v1019_v4  ;;  %v1038_v6 = vpop.f32.mrf.mxu0 }
 0x387   : > { %v1018_v7 = vpack.c.bf16 %v979_v5, %v979_v5 }
 0x389   : > { %1970 = vmatmul.msk.bf16.vlgmr.msrb.gmra.mxu1 %vm731_vm1, %v1018_v7 }
 0x38b   : > { %v998_v8 = vpop.f32.mrf.mxu2  ;;  %v1013_v9 = vpop.f32.mrf.mxu3 }
 0x38c   : > { %v1020_v10 = vpack.c.bf16 %v1013_v9, %v1013_v9 }
 0x38e   : > { %v981_v11 = vpop.f32.mrf.mxu1  ;;  %1972 = vmatmul.msk.bf16.vlgmr.msrb.gmra.mxu3 %vm731_vm1, %v1020_v10 }
 0x393   : > { %v1015_v12 = vpop.f32.mrf.mxu3 }
 0x406   : > { %v1055_v13 = vpop.f32.mrf.mxu1 }
 0x407   : > { %v1099_v15 = vsel %vm1097_vm3, %v1055_v13, 0.0 }
 0x408   : > { %v1100_v20 = vadd.f32 %v1099_v15, %v1098_v16 }
 0x409   : > { %v1074_v14 = vpop.f32.mrf.mxu2 }
 0x40a   : > { %v1101_v17 = vsel %vm1097_vm3, %v1074_v14, 0.0 }
 0x40b   : > { %v1102_v21 = vadd.f32 %v1101_v17, %v1100_v20 }
 0x40e   : > { %v1057_v18 = vpop.f32.mrf.mxu1 }
 0x411   : > { %v1076_v22 = vpop.f32.mrf.mxu2  ;;  %v1093_v23 = vpop.f32.mrf.mxu3 }
 0x412   : > { %v1103_v25 = vsel %vm1097_vm3, %v1093_v23, 0.0 }
 0x413   : > { %v1104_v26 = vadd.f32 %v1103_v25, %v1102_v21 }
 0x415   : > { %v1106_v27 = vadd.f32 %v1105_v24, %v1104_v26  ;;  %v1183_v24 = vld [vmem:[%s2896_s11] sm:$0x3]  ;;  %s3212_s11 = sld [smem:[#allocation32_spill]] }
 0x416   : > { %v1184_v25 = vunpack.c.0.s8 %v1183_v24 }
 0x417   : > { %v1107_v28 = vadd.f32 %v1106_v27, %v2927_v2 }
 0x419   : > { %v1095_v29 = vpop.f32.mrf.mxu3  ;;  %v1108_v30 = vsel %vm1097_vm3, %v1107_v28, 0.0 }
 0x41a   : > { %1109 = vadd.xlane.f32.xlu1 %v1108_v30 }
 0x41b   : > { %s666_s10 = scalar_lea.vmem %s3212_s11, %s1955_s21 }
 0x48d   : > { %v1110_v2 = vpop.xlane.xlu1 %1109 }
 0x48e   : > { %v1118_v40 = vmul.f32 %v2986_v39, %v1110_v2 }
 0x490   : > { %v1119_v41 = vsub.f32 %v1107_v28, %v1118_v40  ;;  %v1185_v28 = vcvt.s32.f32 %v1184_v25 }
 0x492   : > { %v1120_v42 = vmul.f32 %v1119_v41, %v1119_v41  ;;  %v1973_v29 = vadd.f32 -1.0, %v1185_v28 }
 0x494   : > { %v1121_v43 = vsel %vm1097_vm3, %v1120_v42, 0.0  ;;  %v1187_v33 = vmul.f32 1e+20, %v1973_v29 }
 0x495   : > { %1122 = vadd.xlane.f32.xlu2 %v1121_v43 }
 0x508   : > { %v1123_v45 = vpop.xlane.xlu2 %1122 }
 0x509   : > { %v1124_v46 = vmul.f32 %v1123_v45, %v2986_v39 }
 0x50b   : > { %v1125_v47 = vadd.f32 1e-05, %v1124_v46 }
 0x50d   : > { %2219 = vrsqrt.f32 %v1125_v47  ;;  %vm1132_vm6 = vweird.f32 %v1125_v47 }
 0x513   : > { %v2220_v48 = vpop.eup %2219 }
 0x514   : > { %v1127_v49 = vmul.f32 %v2220_v48, %v1125_v47  ;;  %vm1133_vm5 = vweird.f32 %v2220_v48 }
 0x515   : > { %vm1134_vm7 = vmor %vm1132_vm6, %vm1133_vm5 }
 0x516   : > { %v1128_v50 = vmul.f32 %v2220_v48, %v1127_v49 }
 0x518   : > { %v1129_v51 = vmul.f32 0.5, %v1128_v50 }
 0x51a   : > { %v1130_v52 = vsub.f32 1.5, %v1129_v51 }
 0x51c   : > { %v1131_v53 = vmul.f32 %v2220_v48, %v1130_v52 }
 0x51e   : > { %v1135_v55 = vsel %vm1134_vm7, %v2220_v48, %v1131_v53 }
 0x51f   : > { %v1136_v56 = vmul.f32 %v1135_v55, %v1119_v41  ;;  %v671_v55 = vld [vmem:[%s666_s10] sm:$0xff] }
 0x521   : > { %v1138_v58 = vmul.f32 %v1137_v54, %v1136_v56  ;;  %v1179_v56 = vpack.c.bf16 %v671_v55, %v671_v55 }
 0x523   : > { %v2994_v59 = vadd.f32 %v1139_v57, %v1138_v58  ;;  %v1392_v57 = vsel %vm735_vm0, %v1179_v56, 0 }
 0x525   : > { %1142 = vrot.lane.b32.xlu0 %v2994_v59, %s2602_s16  ;;  %1148 = vrot.lane.b32.xlu2 %v2994_v59, %s2604_s7  ;;  %v1151_v60 = vpack.c.bf16 %v2994_v59, %v2994_v59 }
 0x526   : > { %1145 = vrot.lane.b32.xlu1 %v2994_v59, %s2603_s8 }
 0x527   : > { %1974 = vmatmul.msk.bf16.vlgmr.msra.gmra.mxu0 %vm731_vm1, %v1151_v60 }
 0x528   : > { %1401 = vmatpush.bf16.msra.mxu0 %v1392_v57 }
 0x52d   : > { %1162 = vrot.lane.b32.xlu0 %v672_v61, %s2604_s7  ;;  %1156 = vrot.lane.b32.xlu2 %v672_v61, %s2602_s16 }
 0x52e   : > { %1159 = vrot.lane.b32.xlu1 %v672_v61, %s2603_s8 }
 0x57f   : > { %v1149_v1 = vpop.permute.xlu2 %1148 }
 0x580   : > { %v1154_v3 = vpack.c.bf16 %v1149_v1, %v1149_v1 }
 0x582   : > { %1977 = vmatmul.msk.bf16.vlgmr.msra.gmra.mxu3 %vm731_vm1, %v1154_v3 }
 0x587   : > { %v1157_v14 = vpop.permute.xlu2 %1156 }
 0x588   : > { %v1166_v16 = vpack.c.bf16 %v1157_v14, %v1157_v14 }
 0x58a   : > { %v1287_v18 = vsel %vm731_vm1, %v1166_v16, 0 }
 0x58b   : > { %1296 = vmatpush.bf16.xpose.msrb.mxu1 %v1287_v18 }
 0x597   : > { %v1143_v4 = vpop.permute.xlu0 %1142 }
 0x598   : > { %v1152_v5 = vpack.c.bf16 %v1143_v4, %v1143_v4  ;;  %v1146_v6 = vpop.permute.xlu1 %1145 }
 0x599   : > { %v1153_v7 = vpack.c.bf16 %v1146_v6, %v1146_v6 }
 0x59a   : > { %1975 = vmatmul.msk.bf16.vlgmr.msra.gmra.mxu1 %vm731_vm1, %v1152_v5 }
 0x59b   : > { %1976 = vmatmul.msk.bf16.vlgmr.msra.gmra.mxu2 %vm731_vm1, %v1153_v7 }
 0x59f   : > { %v1163_v11 = vpop.permute.xlu0 %1162 }
 0x5a0   : > { %v1168_v12 = vpack.c.bf16 %v1163_v11, %v1163_v11  ;;  %v1160_v15 = vpop.permute.xlu1 %1159 }
 0x5a1   : > { %v1167_v17 = vpack.c.bf16 %v1160_v15, %v1160_v15 }
 0x5a2   : > { %v1325_v13 = vsel %vm731_vm1, %v1168_v12, 0 }
 0x5a3   : > { %1334 = vmatpush.bf16.xpose.msrb.mxu3 %v1325_v13  ;;  %v1306_v20 = vsel %vm731_vm1, %v1167_v17, 0 }
 0x5a4   : > { %v1208_v8 = vpop.f32.mrf.mxu0  ;;  %1315 = vmatpush.bf16.xpose.msrb.mxu2 %v1306_v20  ;;  %v680_v20 = vld [vmem:[#allocation10 + $0x10] sm:$0xf] }
 0x5a5   : > { %v1260_v9 = vpack.c.bf16 %v1208_v8, %v1208_v8 }
 0x5a7   : > { %1978 = vmatmul.msk.bf16.vlgmr.msrb.gmra.mxu0 %vm731_vm1, %v1260_v9 }
 0x5ac   : > { %v1210_v10 = vpop.f32.mrf.mxu0 }
 0x605   : > { %v1256_v21 = vpop.f32.mrf.mxu3 }
 0x606   : > { %v1263_v22 = vpack.c.bf16 %v1256_v21, %v1256_v21  ;;  %v1472_v21 = vsel %vm735_vm0, %v680_v20, 0 }
 0x607   : > { %1481 = vmatpush.bf16.msrb.mxu0 %v1472_v21  ;;  %v2023_v21 = vld [vmem:[#allocation11 + $0x8] sm:$0xff] }
 0x608   : > { %1981 = vmatmul.msk.bf16.vlgmr.msrb.gmra.mxu3 %vm731_vm1, %v1263_v22 }
 0x60d   : > { %v1258_v23 = vpop.f32.mrf.mxu3 }
 0x617   : > { %v1224_v26 = vpop.f32.mrf.mxu1 }
 0x618   : > { %v1261_v27 = vpack.c.bf16 %v1224_v26, %v1224_v26 }
 0x61a   : > { %1979 = vmatmul.msk.bf16.vlgmr.msrb.gmra.mxu1 %vm731_vm1, %v1261_v27 }
 0x61e   : > { %v1240_v30 = vpop.f32.mrf.mxu2 }
 0x61f   : > { %v1262_v31 = vpack.c.bf16 %v1240_v30, %v1240_v30  ;;  %v1226_v32 = vpop.f32.mrf.mxu1 }
 0x621   : > { %1980 = vmatmul.msk.bf16.vlgmr.msrb.gmra.mxu2 %vm731_vm1, %v1262_v31 }
 0x624   : > { %v1279_v34 = vpop.f32.mrf.mxu0 }
 0x625   : > { %v1280_v35 = vadd.f32 %v1279_v34, %v1187_v33 }
 0x626   : > { %v1242_v36 = vpop.f32.mrf.mxu2 }
 0x627   : > { %v1340_v37 = vsel %vm731_vm1, %v1280_v35, -inf }
 0x628   : > { %1341 = vmax.xlane.f32.xlu2 %v1340_v37 }
 0x62c   : > { %v1281_v38 = vpop.f32.mrf.mxu0 }
 0x68b   : > { %v1336_v2 = vpop.f32.mrf.mxu3 }
 0x68c   : > { %v1337_v40 = vadd.f32 %v1336_v2, %v1187_v33 }
 0x68e   : > { %v1349_v41 = vsel %vm731_vm1, %v1337_v40, -inf }
 0x68f   : > { %1350 = vmax.xlane.f32.xlu0 %v1349_v41 }
 0x693   : > { %v1338_v42 = vpop.f32.mrf.mxu3 }
 0x697   : > { %v1298_v43 = vpop.f32.mrf.mxu1 }
 0x698   : > { %v1299_v52 = vadd.f32 %v1298_v43, %v1187_v33  ;;  %v682_v43 = vld [vmem:[#allocation10 + $0x18] sm:$0xf] }
 0x69a   : > { %v1343_v54 = vsel %vm731_vm1, %v1299_v52, -inf }
 0x69b   : > { %v1342_v0 = vpop.xlane.xlu2 %1341 }
 0x69c   : > { %v1352_v44 = vsub.f32 %v1280_v35, %v1342_v0  ;;  %v1510_v0 = vsel %vm735_vm0, %v682_v43, 0 }
 0x69e   : > { %v1356_v45 = vmul.f32 1.442695, %v1352_v44  ;;  %v681_v44 = vld [vmem:[#allocation10 + $0x14] sm:$0xf] }
 0x69f   : > { %v1300_v46 = vpop.f32.mrf.mxu1 }
 0x6a0   : > { %2221 = vpow2.f32 %v1356_v45  ;;  %v1491_v45 = vsel %vm735_vm0, %v681_v44, 0  ;;  %v683_v46 = vld [vmem:[#allocation10 + $0x1c] sm:$0xf] }
 0x6a4   : > { %v1317_v47 = vpop.f32.mrf.mxu2 }
 0x6a5   : > { %v1318_v48 = vadd.f32 %v1317_v47, %v1187_v33  ;;  %v1529_v47 = vsel %vm735_vm0, %v683_v46, 0 }
 0x6a6   : > { %v2222_v49 = vpop.eup %2221 }
 0x6a7   : > { %v1346_v50 = vsel %vm731_vm1, %v1318_v48, -inf  ;;  %v1364_v51 = vsel %vm731_vm1, %v2222_v49, 0.0 }
 0x6a8   : > { %1347 = vmax.xlane.f32.xlu1 %v1346_v50  ;;  %1365 = vadd.xlane.f32.xlu2 %v1364_v51 }
 0x6ac   : > { %v1319_v53 = vpop.f32.mrf.mxu2 }
 0x6b0   : > { %1344 = vmax.xlane.f32.xlu1 %v1343_v54 }
 0x6c9   : > { %1173 = vrot.lane.b32.xlu1 %v671_v55, %s2603_s8  ;;  %s3214_s8 = sld [smem:[#allocation38_spill]] }
 0x702   : > { %v1351_v1 = vpop.xlane.xlu0 %1350 }
 0x703   : > { %v1355_v8 = vsub.f32 %v1337_v40, %v1351_v1 }
 0x705   : > { %v1362_v11 = vmul.f32 1.442695, %v1355_v8  ;;  %v1551_v8 = vperm.slane %v2978_v19, 3 }
 0x71b   : > { %v1348_v58 = vpop.xlane.xlu1 %1347  ;;  %v1366_v60 = vpop.xlane.xlu2 %1365 }
 0x71c   : > { %v1354_v61 = vsub.f32 %v1318_v48, %v1348_v58  ;;  %2223 = vrcp.f32 %v1366_v60 }
 0x71e   : > { %v1360_v62 = vmul.f32 1.442695, %v1354_v61 }
 0x720   : > { %2225 = vpow2.f32 %v1360_v62 }
 0x722   : > { %v2224_v63 = vpop.eup %2223 }
 0x723   : > { %v1380_v3 = vmul.f32 %v2224_v63, %v2222_v49  ;;  %v1345_v4 = vpop.xlane.xlu1 %1344 }
 0x724   : > { %v1353_v5 = vsub.f32 %v1299_v52, %v1345_v4 }
 0x725   : > { %v1384_v6 = vpack.c.bf16 %v1380_v3, %v1380_v3 }
 0x726   : > { %v2226_v7 = vpop.eup %2225  ;;  %v1358_v9 = vmul.f32 1.442695, %v1353_v5 }
 0x727   : > { %v1370_v10 = vsel %vm731_vm1, %v2226_v7, 0.0  ;;  %1982 = vmatmul.msk.bf16.vlgmr.msra.gmra.mxu0 %vm731_vm1, %v1384_v6 }
 0x728   : > { %2227 = vpow2.f32 %v1358_v9  ;;  %1371 = vadd.xlane.f32.xlu0 %v1370_v10  ;;  %1610 = vmatpush.bf16.msra.mxu0 %v2023_v21 }
 0x729   : > { %2229 = vpow2.f32 %v1362_v11 }
 0x72e   : > { %v2228_v12 = vpop.eup %2227 }
 0x72f   : > { %v1367_v13 = vsel %vm731_vm1, %v2228_v12, 0.0  ;;  %v2230_v14 = vpop.eup %2229 }
 0x730   : > { %1368 = vadd.xlane.f32.xlu2 %v1367_v13  ;;  %v1373_v15 = vsel %vm731_vm1, %v2230_v14, 0.0 }
 0x738   : > { %1374 = vadd.xlane.f32.xlu2 %v1373_v15 }
 0x73b   : > { %v1174_v16 = vpop.permute.xlu1 %1173 }
 0x73c   : > { %1176 = vrot.lane.b32.xlu0 %v671_v55, %s2604_s7  ;;  %v1181_v17 = vpack.c.bf16 %v1174_v16, %v1174_v16  ;;  %s2017_s7 = sshll.u32 %s3208_s17, 1  ;;  %s654_s17 = scalar_lea.vmem [#allocation14], %s1952_s15 }
 0x73d   : > { %s1708_s21 = sadd.s32 %s3209_s9, %s2017_s7  ;;  %s1712_s9 = sshll.u32 %s654_s17, 4  ;;  %s1713_s9 = int_to_ptr.vmem [resolvable:$true] %s1712_s9 }
 0x73e   : > { %v1430_v18 = vsel %vm735_vm0, %v1181_v17, 0  ;;  %s2018_s6 = sshll.u32 %s1708_s21, 3 }
 0x73f   : > { %1439 = vmatpush.bf16.msra.mxu2 %v1430_v18  ;;  %s1710_s19 = scalar_lea.hbm %s3215_s24, %s2018_s6 }
 0x740   : > { %s1714_s28 = sshll.u32 %s1710_s19, 4  ;;  %s1715_s28 = int_to_ptr.hbm [resolvable:$true] %s1714_s28 }
 0x741   : > { %s2465_s4 = sshra.s32 %s1715_s28, 4  ;;  %s2466_s4 = int_to_ptr.hbm [resolvable:$true] %s2465_s4 }
 0x742   : > { %s2467_s18 = scalar_lea.hbm %s2466_s4, 8  ;;  %p2472_p8 = scmp.lt.s32.totalorder %s2466_s4, %s3216_s0 }
 0x743   : > { %1519 = vmatpush.bf16.msrb.mxu2 %v1510_v0  ;;  %p2468_p1 = scmp.ne.s32.totalorder %s2466_s4, %s2467_s18 }
 0x745   : > { %p2469_p0 = pnand %p2468_p1, %p2783_p3 }
 0x747   : > { %p2470_p6 = pneg %p2469_p0 }
 0x750   : > { %1170 = vrot.lane.b32.xlu2 %v671_v55, %s2602_s16 }
 0x79b   : > { %v1372_v22 = vpop.xlane.xlu0 %1371 }
 0x79c   : > { %2231 = vrcp.f32 %v1372_v22  ;;  %v2022_v22 = vld [vmem:[#allocation11] sm:$0xff] }
 0x79d   : > { %1611 = vmatpush.bf16.msra.mxu0 %v2022_v22 }
 0x7a2   : > { %v2232_v23 = vpop.eup %2231 }
 0x7a3   : > { %v1382_v24 = vmul.f32 %v2232_v23, %v2226_v7  ;;  %v1369_v25 = vpop.xlane.xlu2 %1368 }
 0x7a4   : > { %v1403_v26 = vpop.f32.mrf.mxu0  ;;  %2233 = vrcp.f32 %v1369_v25  ;;  %v2026_v25 = vld [vmem:[%s3213_s2 + $0x10] sm:$0xff] }
 0x7a5   : > { %v1386_v27 = vpack.c.bf16 %v1382_v24, %v1382_v24  ;;  %v1464_v28 = vpack.c.bf16 %v1403_v26, %v1403_v26 }
 0x7a7   : > { %1984 = vmatmul.msk.bf16.vlgmr.msra.gmra.mxu2 %vm731_vm1, %v1386_v27  ;;  %1986 = vmatmul.msk.bf16.vlgmr.msrb.gmra.mxu0 %vm731_vm1, %v1464_v28 }
 0x7aa   : > { %v2234_v33 = vpop.eup %2233 }
 0x7ab   : > { %v1375_v29 = vpop.xlane.xlu2 %1374  ;;  %v1381_v38 = vmul.f32 %v2234_v33, %v2228_v12  ;;  %v1576_v33 = vperm.slane %v2978_v19, 4 }
 0x7ac   : > { %2235 = vrcp.f32 %v1375_v29  ;;  %v1405_v30 = vpop.f32.mrf.mxu0 }
 0x7ad   : > { %v1385_v42 = vpack.c.bf16 %v1381_v38, %v1381_v38 }
 0x7ae   : > { %v1177_v31 = vpop.permute.xlu0 %1176 }
 0x7af   : > { %v1182_v32 = vpack.c.bf16 %v1177_v31, %v1177_v31 }
 0x7b1   : > { %v1449_v34 = vsel %vm735_vm0, %v1182_v32, 0 }
 0x7b2   : > { %v2236_v35 = vpop.eup %2235  ;;  %1458 = vmatpush.bf16.msra.mxu3 %v1449_v34 }
 0x7b3   : > { %v1383_v36 = vmul.f32 %v2236_v35, %v2230_v14  ;;  %v1171_v37 = vpop.permute.xlu2 %1170  ;;  %v1578_v35 = vperm.slane %v2978_v19, 5 }
 0x7b4   : > { %v1180_v2 = vpack.c.bf16 %v1171_v37, %v1171_v37 }
 0x7b5   : > { %v1387_v40 = vpack.c.bf16 %v1383_v36, %v1383_v36 }
 0x7b6   : > { %v1411_v41 = vsel %vm735_vm0, %v1180_v2, 0  ;;  %1538 = vmatpush.bf16.msrb.mxu3 %v1529_v47  ;;  %v1627_v47 = vperm.slane %v2978_v19, 6 }
 0x7b7   : > { %1420 = vmatpush.bf16.msra.mxu1 %v1411_v41  ;;  %1985 = vmatmul.msk.bf16.vlgmr.msra.gmra.mxu3 %vm731_vm1, %v1387_v40  ;;  %v2025_v40 = vld [vmem:[%s3213_s2 + $0x8] sm:$0xff]  ;;  %v2024_v41 = vld [vmem:[%s3213_s2] sm:$0xff] }
 0x7ba   : > { %1983 = vmatmul.msk.bf16.vlgmr.msra.gmra.mxu1 %vm731_vm1, %v1385_v42  ;;  %v2199_v42 = vld [vmem:[%s3214_s8] ss:$0 sm:$0xff]  ;;  %s2471_s8 = scalar_lea.hbm %s3216_s0, 32 }
 0x7bb   : > { %1500 = vmatpush.bf16.msrb.mxu1 %v1491_v45  ;;  %p2473_p9 = scmp.lt.s32.totalorder %s2471_s8, %s2467_s18 }
 0x7bd   : > { %p2474_p5 = por %p2473_p9, %p2472_p8 }
 0x7bf   : > { %p2475_p10 = pnand %p2474_p5, %p2470_p6 }
 0x824   : > { %v1483_v48 = vpop.f32.mrf.mxu0 }
 0x825   : > { %v1544_v1 = vsel %vm1097_vm3, %v1483_v48, 0.0 }
 0x82a   : > { %v1441_v49 = vpop.f32.mrf.mxu2 }
 0x82b   : > { %v1466_v50 = vpack.c.bf16 %v1441_v49, %v1441_v49 }
 0x82c   : > { %v1485_v51 = vpop.f32.mrf.mxu0 }
 0x82d   : > { %1988 = vmatmul.msk.bf16.vlgmr.msrb.gmra.mxu2 %vm731_vm1, %v1466_v50 }
 0x832   : > { %v1443_v52 = vpop.f32.mrf.mxu2 }
 0x837   : > { %v1422_v53 = vpop.f32.mrf.mxu1 }
 0x838   : > { %v1465_v54 = vpack.c.bf16 %v1422_v53, %v1422_v53 }
 0x83a   : > { %v1460_v55 = vpop.f32.mrf.mxu3  ;;  %1987 = vmatmul.msk.bf16.vlgmr.msrb.gmra.mxu1 %vm731_vm1, %v1465_v54 }
 0x83b   : > { %v1467_v56 = vpack.c.bf16 %v1460_v55, %v1460_v55 }
 0x83d   : > { %1989 = vmatmul.msk.bf16.vlgmr.msrb.gmra.mxu3 %vm731_vm1, %v1467_v56 }
 0x83f   : > { %v1424_v57 = vpop.f32.mrf.mxu1 }
 0x842   : > { %v1462_v58 = vpop.f32.mrf.mxu3 }
 0x8b0   : > { %v1521_v60 = vpop.f32.mrf.mxu2 }
 0x8b1   : > { %v1547_v4 = vsel %vm1097_vm3, %v1521_v60, 0.0 }
 0x8b7   : > { %v1502_v61 = vpop.f32.mrf.mxu1 }
 0x8b8   : > { %v1523_v62 = vpop.f32.mrf.mxu2  ;;  %v1545_v63 = vsel %vm1097_vm3, %v1502_v61, 0.0 }
 0x8b9   : > { %v1546_v3 = vadd.f32 %v1545_v63, %v1544_v1 }
 0x8bb   : > { %v1548_v7 = vadd.f32 %v1547_v4, %v1546_v3 }
 0x8bf   : > { %v1504_v5 = vpop.f32.mrf.mxu1 }
 0x8c0   : > { %v1540_v6 = vpop.f32.mrf.mxu3 }
 0x8c1   : > { %v1549_v9 = vsel %vm1097_vm3, %v1540_v6, 0.0  ;;  %v1692_v6 = vperm.slane %v2978_v19, 7 }
 0x8c2   : > { %v1550_v10 = vadd.f32 %v1549_v9, %v1548_v7 }
 0x8c4   : > { %v1552_v11 = vadd.f32 %v1551_v8, %v1550_v10  ;;  %v2200_v8 = vld [vmem:[#allocation13 + $0x8] ss:$0 sm:$0xff] }
 0x8c6   : > { %v1553_v12 = vadd.f32 %v1552_v11, %v2994_v59  ;;  %v2027_v59 = vld [vmem:[%s3213_s2 + $0x18] sm:$0xff] }
 0x8c7   : > { %1660 = vmatpush.bf16.msra.mxu1 %v2027_v59 }
 0x8c8   : > { %v1542_v13 = vpop.f32.mrf.mxu3  ;;  %v1554_v14 = vsel %vm1097_vm3, %v1553_v12, 0.0 }
 0x8c9   : > { %1555 = vadd.xlane.f32.xlu0 %v1554_v14 }
 0x8cb   : > { %1661 = vmatpush.bf16.msra.mxu1 %v2026_v25 }
 0x8cf   : > { %1662 = vmatpush.bf16.msra.mxu1 %v2025_v40 }
 0x8d3   : > { %1663 = vmatpush.bf16.msra.mxu1 %v2024_v41 }
 0x93c   : > { %v1556_v15 = vpop.xlane.xlu0 %1555 }
 0x93d   : > { %v1557_v16 = vmul.f32 %v1556_v15, %v2986_v39 }
 0x93f   : > { %v1558_v17 = vsub.f32 %v1553_v12, %v1557_v16 }
 0x941   : > { %v1559_v18 = vmul.f32 %v1558_v17, %v1558_v17 }
 0x943   : > { %v1560_v20 = vsel %vm1097_vm3, %v1559_v18, 0.0 }
 0x944   : > { %1561 = vadd.xlane.f32.xlu1 %v1560_v20 }
 0x9b7   : > { %v1562_v23 = vpop.xlane.xlu1 %1561 }
 0x9b8   : > { %v1563_v24 = vmul.f32 %v1562_v23, %v2986_v39 }
 0x9ba   : > { %v1564_v26 = vadd.f32 1e-05, %v1563_v24 }
 0x9bc   : > { %2237 = vrsqrt.f32 %v1564_v26  ;;  %vm1571_vm9 = vweird.f32 %v1564_v26 }
 0x9c2   : > { %v2238_v27 = vpop.eup %2237 }
 0x9c3   : > { %v1566_v28 = vmul.f32 %v2238_v27, %v1564_v26  ;;  %vm1572_vm8 = vweird.f32 %v2238_v27 }
 0x9c4   : > { %vm1573_vm10 = vmor %vm1571_vm9, %vm1572_vm8 }
 0x9c5   : > { %v1567_v29 = vmul.f32 %v2238_v27, %v1566_v28 }
 0x9c7   : > { %v1568_v30 = vmul.f32 0.5, %v1567_v29 }
 0x9c9   : > { %v1569_v31 = vsub.f32 1.5, %v1568_v30 }
 0x9cb   : > { %v1570_v32 = vmul.f32 %v2238_v27, %v1569_v31 }
 0x9cd   : > { %v1574_v34 = vsel %vm1573_vm10, %v2238_v27, %v1570_v32 }
 0x9ce   : > { %v1575_v36 = vmul.f32 %v1574_v34, %v1558_v17 }
 0x9d0   : > { %v1577_v37 = vmul.f32 %v1576_v33, %v1575_v36 }
 0x9d2   : > { %v1579_v38 = vadd.f32 %v1578_v35, %v1577_v37 }
 0x9d4   : > { %v1580_v2 = vpack.c.bf16 %v1579_v38, %v1579_v38 }
 0x9d6   : > { %1998 = vmatmul.msk.bf16.vlgmr.msra.gmra.mxu0 %vm1097_vm3, %v1580_v2 }
 0xa53   : > { %v1613_v43 = vpop.f32.mrf.mxu0 }
 0xa54   : > { %v1614_v0 = vadd.f32 %v2199_v42, %v1613_v43 }
 0xa56   : > { %v1617_v44 = vmax.f32 %v1614_v0, 0.0 }
 0xa58   : > { %v1618_v45 = vpack.c.bf16 %v1617_v44, %v1617_v44 }
 0xa5a   : > { %2015 = vmatmul.msk.bf16.vlgmr.msra.gmra.mxu1 %vm1652_vm11, %v1618_v45 }
 0xa5b   : > { %v1615_v46 = vpop.f32.mrf.mxu0 }
 0xad7   : > { %v1665_v48 = vpop.f32.mrf.mxu1 }
 0xad8   : > { %v1666_v49 = vadd.f32 %v1665_v48, %v1627_v47 }
 0xada   : > { %v1669_v50 = vadd.f32 %v1666_v49, %v1579_v38 }
 0xadc   : > { %v1670_v51 = vsel %vm1097_vm3, %v1669_v50, 0.0 }
 0xadd   : > { %1671 = vadd.xlane.f32.xlu2 %v1670_v51 }
 0xadf   : > { %v1667_v52 = vpop.f32.mrf.mxu1 }
 0xb50   : > { %v1672_v53 = vpop.xlane.xlu2 %1671 }
 0xb51   : > { %v1673_v54 = vmul.f32 %v1672_v53, %v2986_v39 }
 0xb53   : > { %v1674_v55 = vsub.f32 %v1669_v50, %v1673_v54 }
 0xb55   : > { %v1675_v56 = vmul.f32 %v1674_v55, %v1674_v55 }
 0xb57   : > { %v1676_v57 = vsel %vm1097_vm3, %v1675_v56, 0.0 }
 0xb58   : > { %1677 = vadd.xlane.f32.xlu0 %v1676_v57 }
 0xbcb   : > { %v1678_v58 = vpop.xlane.xlu0 %1677 }
 0xbcc   : > { %v1679_v60 = vmul.f32 %v1678_v58, %v2986_v39 }
 0xbce   : > { %v1680_v61 = vadd.f32 1e-05, %v1679_v60 }
 0xbd0   : > { %2239 = vrsqrt.f32 %v1680_v61  ;;  %vm1687_vm13 = vweird.f32 %v1680_v61 }
 0xbd6   : > { %v2240_v62 = vpop.eup %2239 }
 0xbd7   : > { %v1682_v63 = vmul.f32 %v2240_v62, %v1680_v61  ;;  %vm1688_vm12 = vweird.f32 %v2240_v62 }
 0xbd8   : > { %vm1689_vm14 = vmor %vm1687_vm13, %vm1688_vm12 }
 0xbd9   : > { %v1683_v1 = vmul.f32 %v2240_v62, %v1682_v63 }
 0xbdb   : > { %v1684_v3 = vmul.f32 0.5, %v1683_v1 }
 0xbdd   : > { %v1685_v4 = vsub.f32 1.5, %v1684_v3 }
 0xbdf   : > { %v1686_v5 = vmul.f32 %v2240_v62, %v1685_v4 }
 0xbe1   : > { %v1690_v39 = vsel %vm1689_vm14, %v2240_v62, %v1686_v5 }
 0xbe2   : > { %v1691_v7 = vmul.f32 %v1690_v39, %v1674_v55 }
 0xbe4   : > { %v1693_v9 = vmul.f32 %v1692_v6, %v1691_v7 }
 0xbe6   : > { %v1695_v10 = vadd.f32 %v2200_v8, %v1693_v9 }
 0xbe8   : > { %1696 = vst.msk [vmem:[%s654_s17] sm:$0xff] %vm1097_vm3, %v1695_v10 }
 0xbe9   : > { %2478 = shalt.err (!%p2475_p10)
}
 0xbea   : > { %2048 = dma.vmem_to_hbm [thread:$0]  (%p2783_p3), %s1713_s9, 128, %s1715_s28, %s1698_s14  }
 0xbeb PF: > { %s3218_s27 = sld [smem:[#allocation22_spill]]  ;;  %p2084_p11 = scmp.ge.s32.totalorder %s2593_s13, 2 }
 0xbed   : > { %p2074_p13 = pnand %p2084_p11, %p2790_p7 }
 0xbef   : > { %p2075_p2 = pneg %p2074_p13 }
 0xbf1   : > { %s1726_s6 = sand.u32 1, %s3218_s27  }
 0xbf2   : > { %s1727_s11 = scalar_lea.sflag [#allocation4], %s1726_s6 }
 0xbf3   : > { %2548 = dma.done.wait (%p2075_p2), %s1727_s11, 128  }
 0xbf4   : > { %2550 = vsyncadd (%p2075_p2), %s1727_s11, 4294967168  ;;  %s35_s13 = sadd.s32 1, %s2593_s13   ;;  %s3220_s21 = sld [smem:[#allocation23_spill]] }
 0xbf5   : > { %p32_p12 = scmp.ge.s32.totalorder %s35_s13, 6   ;;  %s3221_s10 = smov %s3233_s22 }
 0xbf6   : > { %s3222_s19 = sld [smem:[#allocation29_spill]]  ;;  %s3223_s22 = smov %s2561_s23 }
 0xbf7   : > { %s3224_s23 = smov %s2858_s12  ;;  %s3225_s24 = smov %s2569_s25 }
 0xbf8   : > { %s3226_s25 = smov %s2573_s26  ;;  %s3227_s26 = smov %s2855_s20 }
 0xbf9   : > { %s3228_s27 = smov %s2585_s29  ;;  %s3229_s28 = smov %s2589_s30 }
 0xbfa   : > { %s3230_s29 = smov %s3221_s10  ;;  %34 = sbr.rel (!%p32_p12) target bundleno = 27 (0x1b), region = 168 }
 0xbfc   : > { %s3231_s30 = smov %s3222_s19 }
 0xbff   :  { %1733 = vsyncpa [#allocation3], 1 }
 0xc00   :  { %1735 = vsyncpa [#allocation3 + $0x1], 1 }
 0xc01   :  { %1736 = vsyncpa [#allocation6], 1 }
 0xc02   :  { %1738 = vsyncpa [#allocation6 + $0x1], 1 }
 0xc03   :  { %1739 = vsyncpa [#allocation9], 1 }
 0xc04   :  { %1741 = vsyncpa [#allocation9 + $0x1], 1 }
 0xc05   :  { %1742 = vsyncpa [#allocation12], 1 }
 0xc06   :  { %1743 = vsyncpa [#allocation4], 1 }
 0xc07   :  { %1745 = vsyncpa [#allocation4 + $0x1], 1 }

// kernel: tpu_custom_call.1
= control target key start
LH: loop header
LB: loop body
LE: loop exit
PB: predicated region body
PF: predicated region fallthrough
CT: control target
= control target key end

     0   :  { %s3141_s0 = inlined_call_operand.vmem [shape: f32[2,16,32], index: 0, kind: input, shape index: {}]   ;;  %s3142_s1 = inlined_call_operand.hbm [shape: f32[2,16,32], index: 1, kind: input, shape index: {}]   ;;  %s3143_s2 = inlined_call_operand.vmem [shape: f32[2,8,32], index: 2, kind: input, shape index: {}]   ;;  %s3144_s3 = inlined_call_operand.hbm [shape: f32[2,8,32], index: 3, kind: input, shape index: {}]   ;;  %s3145_s4 = inlined_call_operand.hbm [shape: s8[2,2,8,16], index: 4, kind: input, shape index: {}]   ;;  %s3146_s5 = inlined_call_operand.hbm [shape: s8[2,2,8,8], index: 5, kind: input, shape index: {}]   ;;  %s3147_s6 = inlined_call_operand.vmem [shape: bf16[8,16], index: 6, kind: input, shape index: {}]   ;;  %s3148_s7 = inlined_call_operand.hbm [shape: bf16[8,8,32], index: 7, kind: input, shape index: {}]   ;;  %s3149_s8 = inlined_call_operand.hbm [shape: bf16[32,64], index: 8, kind: input, shape index: {}]   ;;  %s3150_s9 = inlined_call_operand.vmem [shape: f32[1,64], index: 9, kind: input, shape index: {}]   ;;  %s3151_s10 = inlined_call_operand.vmem [shape: bf16[64,32], index: 10, kind: input, shape index: {}]   ;;  %s3152_s11 = inlined_call_operand.hbm [shape: f32[9,32], index: 11, kind: input, shape index: {}]   ;;  %s3153_s12 = inlined_call_operand.hbm [shape: f32[2,16,32], index: 12, kind: output, shape index: {}]  }
   0x1   :  { %3168 = sst [smem:[#allocation30_spill]] %s3141_s0 }
   0x2   :  { %3169 = sst [smem:[#allocation31_spill]] %s3142_s1 }
   0x3   :  { %3170 = sst [smem:[#allocation32_spill]] %s3143_s2 }
   0x4   :  { %3171 = sst [smem:[#allocation33_spill]] %s3144_s3 }
   0x5   :  { %3172 = sst [smem:[#allocation34_spill]] %s3145_s4 }
   0x6   :  { %3173 = sst [smem:[#allocation35_spill]] %s3147_s6 }
   0x7   :  { %3174 = sst [smem:[#allocation36_spill]] %s3148_s7 }
   0x8   :  { %3175 = sst [smem:[#allocation37_spill]] %s3149_s8 }
   0x9   :  { %3176 = sst [smem:[#allocation38_spill]] %s3150_s9 }
   0xa   :  { %3177 = sst [smem:[#allocation39_spill]] %s3151_s10 }
   0xb   :  { %3178 = sst [smem:[#allocation40_spill]] %s3152_s11 }
   0xc   :  { %3179 = sst [smem:[#allocation41_spill]] %s3153_s12 }
   0xd   :  { %17 = vsyncpa [#allocation3], 0 }
   0xe   :  { %19 = vsyncpa [#allocation3 + $0x1], 0 }
   0xf   :  { %20 = vsyncpa [#allocation6], 0 }
  0x10   :  { %22 = vsyncpa [#allocation6 + $0x1], 0 }
  0x11   :  { %23 = vsyncpa [#allocation9], 0 }
  0x12   :  { %25 = vsyncpa [#allocation9 + $0x1], 0 }
  0x13   :  { %26 = vsyncpa [#allocation12], 0 }
  0x14   :  { %27 = vsyncpa [#allocation4], 0 }
  0x15   :  { %29 = vsyncpa [#allocation4 + $0x1], 0  ;;  %s2671_s21 = smov 0   ;;  %s2673_s22 = smov 0  }
  0x16   :  { %s2675_s23 = smov 0   ;;  %s2677_s24 = smov 0  }
  0x17   :  { %s2679_s25 = smov 0   ;;  %s2681_s26 = smov 0  }
  0x18   :  { %s2683_s27 = smov 0   ;;  %s2685_s28 = smov 0  }
  0x19   :  { %s2687_s29 = smov 0   ;;  %s2689_s30 = smov 0  }
  0x1a   :  { %s2691_s13 = smov 0  }
  0x1b LB: > { %3180 = sst [smem:[#allocation22_spill]] %s2553_s21  ;;  %s2727_s14 = sadd.s32 4294967295, %s2593_s13   ;;  %s2593_s13 = sphi %s2691_s13, %s35_s13   ;;  %s2589_s30 = sphi %s2689_s30, %s3231_s30   ;;  %s2585_s29 = sphi %s2687_s29, %s3230_s29   ;;  %s2581_s28 = sphi %s2685_s28, %s3229_s28   ;;  %s2577_s27 = sphi %s2683_s27, %s3228_s27   ;;  %s2573_s26 = sphi %s2681_s26, %s3227_s26   ;;  %s2569_s25 = sphi %s2679_s25, %s3226_s25   ;;  %s2565_s24 = sphi %s2677_s24, %s3225_s24   ;;  %s2561_s23 = sphi %s2675_s23, %s3224_s23   ;;  %s2557_s22 = sphi %s2673_s22, %s3223_s22   ;;  %s2553_s21 = sphi %s2671_s21, %s3220_s21  }
  0x1c   : > { %3181 = sst [smem:[#allocation23_spill]] %s2557_s22  ;;  %p1928_p0 = scmp.ge.s32.totalorder %s2593_s13, 1 }
  0x1d   : > { %3182 = sst [smem:[#allocation24_spill]] %s2577_s27  ;;  %p96_p1 = scmp.eq.s32.totalorder %s2727_s14, 0 }
  0x1e   : > { %3183 = sst [smem:[#allocation25_spill]] %s2581_s28  ;;  %p368_p2 = scmp.lt.s32.totalorder %s2593_s13, 5 }
  0x1f   : > { %s3184_s7 = sld [smem:[#allocation36_spill]]  ;;  %s2595_s19 = smov [#allocation10]  }
  0x20   : > { %p2735_p3 = pnand %p1928_p0, %p368_p2  ;;  %s384_s20 = sshll.u32 %s2595_s19, 4  ;;  %s385_s20 = int_to_ptr.vmem [resolvable:$true] %s384_s20 }
  0x21   : > { %s3187_s8 = sld [smem:[#allocation37_spill]]  ;;  %s2596_s19 = smov 64  }
  0x22   : > { %s3185_s18 = scalar_select %p2735_p3, 1, 0 }
  0x23   : > { %p2050_p4 = pneg %p2735_p3  ;;  %s2597_s9 = smov 4  }
  0x24   : > { %s2598_s10 = smov [#allocation11]   ;;  %p89_p6 = scmp.ne.s32.totalorder %s2573_s26, %s2569_s25 }
  0x25   : > { %s382_s17 = sshll.u32 %s3184_s7, 4  ;;  %p2743_p5 = pnand %p2050_p4, %p96_p1  ;;  %s383_s17 = int_to_ptr.hbm [resolvable:$true] %s382_s17 }
  0x26   : > { %s398_s2 = sshll.u32 %s2598_s10, 4  ;;  %s1927_s7 = sadd.s32 4294967294, %s2593_s13   ;;  %s399_s2 = int_to_ptr.vmem [resolvable:$true] %s398_s2 }
  0x27   : > { %s396_s12 = sshll.u32 %s3187_s8, 4  ;;  %p90_p7 = scmp.eq.s32.totalorder %s2593_s13, 0  ;;  %s397_s12 = int_to_ptr.hbm [resolvable:$true] %s396_s12 }
  0x28   : > { %2053 = dma.hbm_to_vmem [thread:$0]  (!%p2743_p5), %s383_s17, 512, %s385_s20, [#allocation9], %s2596_s19, %s2596_s19, %s2597_s9  }
  0x29   : > { %2056 = dma.hbm_to_vmem [thread:$0]  (!%p2743_p5), %s397_s12, 256, %s399_s2, [#allocation12], %s2596_s19, %s2596_s19, %s2597_s9  }
  0x2a   : > { %p95_p8 = scmp.ne.s32.totalorder %s2569_s25, %s2565_s24  ;;  %p169_p9 = scmp.ne.s32.totalorder %s2561_s23, %s2557_s22 }
  0x2b   : > { %p91_p10 = por %p90_p7, %p89_p6  ;;  %p175_p11 = scmp.ne.s32.totalorder %s2557_s22, %s2553_s21 }
  0x2c   : > { %p2767_p12 = por %p96_p1, %p95_p8  ;;  %p2771_p13 = por %p169_p9, %p90_p7 }
  0x2d   : > { %p2777_p0 = por %p175_p11, %p96_p1  ;;  %p355_p2 = scmp.eq.s32.totalorder %s2727_s14, 3 }
  0x2e   : > { %p361_p4 = scmp.eq.s32.totalorder %s1927_s7, 3  ;;  %p2080_p6 = scmp.lt.s32.totalorder %s2593_s13, 4 }
  0x2f   : > { %s3190_s2 = scalar_select %p2777_p0, 1, 0 }
  0x30   : > { %p2783_p3 = por %p355_p2, %p169_p9  ;;  %s2788_s12 = sand.u32 1, %s2573_s26  }
  0x31   : > { %3191 = sst [smem:[#allocation26_spill]] %s3190_s2  ;;  %p2790_p7 = por %p361_p4, %p175_p11 }
  0x32   : > { %s3192_s9 = scalar_select %p2783_p3, 1, 0 }
  0x33   : > { %s3194_s24 = scalar_select %p2790_p7, 1, 0 }
  0x34   : > { %3193 = sst [smem:[#allocation27_spill]] %s3192_s9  ;;  %s1933_s20 = sshll.u32 %s2788_s12, 4 }
  0x35   : > { %3195 = sst [smem:[#allocation28_spill]] %s3194_s24  ;;  %p2797_p8 = pnand %p2080_p6, %p91_p10 }
  0x36   : > { %s3165_s7 = sand.u32 1, %s2593_s13   ;;  %s1936_s16 = sshll.u32 %s2788_s12, 3 }
  0x37   : > { %s1937_s8 = sshll.u32 %s2589_s30, 3  ;;  %s476_s21 = scalar_lea.vmem [#allocation5], %s1936_s16 }
  0x38   : > { %s484_s9 = sshll.u32 %s476_s21, 4  ;;  %s3197_s3 = sld [smem:[#allocation33_spill]]  ;;  %s485_s9 = int_to_ptr.vmem [resolvable:$true] %s484_s9 }
  0x39   : > { %p2811_p9 = pnand %p2080_p6, %p2771_p13  ;;  %s2817_s2 = scalar_lea.sflag [#allocation6], %s3165_s7 }
  0x3a   : > { %s3199_s11 = sld [smem:[#allocation40_spill]]  ;;  %s2599_s6 = smov [#allocation13]  }
  0x3b   : > { %s2601_s10 = smov 8   ;;  %s3200_s1 = sld [smem:[#allocation31_spill]] }
  0x3c   : > { %s44_s22 = sadd.s32 1, %s2585_s29  ;;  %s47_s15 = sadd.s32 1, %s2589_s30 }
  0x3d   : > { %s3202_s4 = sld [smem:[#allocation34_spill]]  ;;  %p3205_p2 = scmp.ne.s32.totalorder %s3185_s18, 0 }
  0x3e   : > { %s480_s27 = scalar_lea.hbm %s3197_s3, %s1937_s8  ;;  %s418_s8 = sshll.u32 %s2599_s6, 4  ;;  %s419_s8 = int_to_ptr.vmem [resolvable:$true] %s418_s8 }
  0x3f   : > { %s482_s24 = sshll.u32 %s480_s27, 4  ;;  %s2600_s27 = smov 128   ;;  %s483_s24 = int_to_ptr.hbm [resolvable:$true] %s482_s24 }
  0x40   : > { %2066 = dma.hbm_to_vmem [thread:$0]  (!%p2797_p8), %s483_s24, 128, %s485_s9, %s2817_s2  }
  0x41   : > { %s416_s0 = sshll.u32 %s3199_s11, 4  ;;  %s2021_s9 = sshll.u32 %s2589_s30, 4  ;;  %s417_s0 = int_to_ptr.hbm [resolvable:$true] %s416_s0 }
  0x42   : > { %2059 = dma.hbm_to_vmem [thread:$0]  (!%p2743_p5), %s417_s0, 256, %s419_s8, [#allocation12], %s2600_s27, %s2600_s27, %s2601_s10  }
  0x43   : > { %s447_s24 = scalar_lea.vmem [#allocation2], %s1933_s20  ;;  %s452_s3 = scalar_lea.hbm %s3200_s1, %s2021_s9 }
  0x44   : > { %s455_s21 = sshll.u32 %s447_s24, 4  ;;  %s453_s6 = sshll.u32 %s452_s3, 4  ;;  %s456_s21 = int_to_ptr.vmem [resolvable:$true] %s455_s21  ;;  %s454_s6 = int_to_ptr.hbm [resolvable:$true] %s453_s6 }
  0x45   : > { %s444_s11 = scalar_lea.sflag [#allocation3], %s2788_s12  ;;  %p45_p5 = scmp.ge.s32.totalorder %s44_s22, 2 }
  0x46   : > { %2063 = dma.hbm_to_vmem [thread:$0]  (!%p2797_p8), %s454_s6, 256, %s456_s21, %s444_s11, %s2600_s27, %s2600_s27, %s2601_s10  }
  0x47   : > { %s162_s0 = sadd.s32 1, %s2561_s23  ;;  %s493_s8 = sand.u32 1, %s2561_s23  }
  0x48   : > { %s1939_s20 = sshll.u32 %s2589_s30, 1  ;;  %s3233_s22 = smov (%p45_p5, %s44_s22), 0 }
  0x49   : > { %s3235_s15 = smov (!%p45_p5, %s47_s15), %s2589_s30  ;;  %s158_s7 = ssub.s32 %s2585_s29, %s3233_s22 }
  0x4a   : > { %s1938_s3 = sshll.u32 %s493_s8, 1  ;;  %p49_p10 = scmp.ge.s32.totalorder %s3235_s15, 2 }
  0x4b   : > { %s499_s11 = sadd.s32 %s2585_s29, %s1939_s20  ;;  %s495_s12 = scalar_lea.vmem [#allocation7], %s1938_s3 }
  0x4c   : > { %s505_s19 = sshll.u32 %s495_s12, 4  ;;  %s3237_s15 = smov (%p49_p10, %s3235_s15), 0  ;;  %s506_s19 = int_to_ptr.vmem [resolvable:$true] %s505_s19 }
  0x4d   : > { %3201 = sst [smem:[#allocation29_spill]] %s3237_s15  ;;  %s1940_s27 = sshll.u32 %s499_s11, 1 }
  0x4e   : > { %s79_s10 = ssub.s32 %s2589_s30, %s3237_s15  ;;  %s501_s21 = scalar_lea.hbm %s3202_s4, %s1940_s27 }
  0x4f   : > { %p80_p11 = scmp.eq.s32.totalorder %s79_s10, 0  ;;  %s159_s16 = sor.u32 %s158_s7, %s79_s10 }
  0x50   : > { %p160_p13 = scmp.eq.s32.totalorder %s159_s16, 0  ;;  %s503_s6 = sshll.u32 %s501_s21, 4  ;;  %s504_s6 = int_to_ptr.hbm [resolvable:$true] %s503_s6 }
  0x51   : > { %s3203_s8 = sadd.s32 1, %s2573_s26  ;;  %s522_s15 = scalar_lea.hbm %s3146_s5, %s1940_s27 }
  0x52   : > { %s2855_s20 = scalar_select %p80_p11, %s2573_s26, %s3203_s8  }
  0x53   : > { %s2858_s12 = scalar_select %p160_p13, %s2561_s23, %s162_s0  }
  0x54   : > { %2069 = dma.hbm_to_vmem [thread:$0]  (!%p2811_p9), %s504_s6, 32, %s506_s19, %s2817_s2  }
  0x55   : > { %s516_s9 = scalar_lea.vmem [#allocation8], %s1938_s3  ;;  %s524_s4 = sshll.u32 %s522_s15, 4  ;;  %s525_s4 = int_to_ptr.hbm [resolvable:$true] %s524_s4 }
  0x56   : > { %s526_s24 = sshll.u32 %s516_s9, 4  ;;  %s3204_s7 = sand.u32 1, %s2593_s13   ;;  %s527_s24 = int_to_ptr.vmem [resolvable:$true] %s526_s24 }
  0x57   : > { %s513_s10 = scalar_lea.sflag [#allocation9], %s3204_s7  ;;  %535 = sbr.rel (%p3205_p2) target bundleno = 3051 (0xbeb), region = 68 }
  0x58   : > { %2072 = dma.hbm_to_vmem [thread:$0]  (!%p2811_p9), %s525_s4, 32, %s527_s24, %s513_s10  }
  0x59   : > { %s537_s0 = sand.u32 (!%p3205_p2), 1, %s2569_s25  }
  0x5a   : > { %s1945_s2 = sshll.u32 (!%p3205_p2), %s537_s0, 4  ;;  %s538_s19 = scalar_lea.sflag (!%p3205_p2), [#allocation3], %s537_s0 }
  0x5b   : > { %s2873_s21 = scalar_lea.vmem (!%p3205_p2), [#allocation2], %s1945_s2 }
  0x5c   : > { %2524 = dma.done.wait (%p2767_p12), %s538_s19, 256  }
  0x5d   : > { %2526 = vsyncadd (%p2767_p12), %s538_s19, 4294967040  ;;  %s547_s1 = sand.u32 1, %s2727_s14   ;;  %s1946_s28 = sshll.u32 %s537_s0, 3 }
  0x5e   : > { %s548_s4 = scalar_lea.sflag [#allocation6], %s547_s1  ;;  %s2880_s15 = scalar_lea.vmem [#allocation5], %s1946_s28 }
  0x5f   : > { %2528 = dma.done.wait (%p2767_p12), %s548_s4, 128  }
  0x60   : > { %2530 = vsyncadd (%p2767_p12), %s548_s4, 4294967168  ;;  %s3206_s18 = sld [smem:[#allocation23_spill]] }
  0x66   : > { %s2887_s27 = sand.u32 1, %s3206_s18  }
  0x67   : > { %s1947_s16 = sshll.u32 %s2887_s27, 1 }
  0x68   : > { %s2890_s6 = scalar_lea.vmem [#allocation7], %s1947_s16 }
  0x69   : > { %2532 = dma.done.wait (%p2777_p0), %s548_s4, 32  }
  0x6a   : > { %2534 = vsyncadd (%p2777_p0), %s548_s4, 4294967264  ;;  %s568_s8 = scalar_lea.sflag [#allocation9], %s547_s1  ;;  %s2896_s11 = scalar_lea.vmem [#allocation8], %s1947_s16 }
  0x6b   : > { %2536 = dma.done.wait (%p2777_p0), %s568_s8, 32  }
  0x6c   : > { %2538 = vsyncadd (%p2777_p0), %s568_s8, 4294967264 }
  0x6d   : > { %2540 = dma.done.wait (%p96_p1), [#allocation9], 512  }
  0x6e   : > { %2542 = vsyncadd (%p96_p1), [#allocation9], 4294966784 }
  0x6f   : > { %2544 = dma.done.wait (%p96_p1), [#allocation12], 512  }
  0x70   : > { %2546 = vsyncadd (%p96_p1), [#allocation12], 4294966784  ;;  %s3208_s17 = sld [smem:[#allocation25_spill]]  ;;  %vm735_vm0 = vcmask 1043456   ;;  %s2602_s16 = smov 120   ;;  %vm731_vm1 = vcmask 64512  }
  0x71   : > { %s3209_s9 = sld [smem:[#allocation24_spill]]  ;;  %s2603_s8 = smov 112   ;;  %v669_v4 = vld [vmem:[%s2873_s21] sm:$0xff]  ;;  %v670_v5 = vld [vmem:[%s2873_s21 + $0x8] sm:$0xff]  ;;  %vm900_vm2 = vcmask 130048   ;;  %vm1097_vm3 = vcmask 261120  }
  0x72   : > { %s3210_s28 = sld [smem:[#allocation35_spill]]  ;;  %v2184_v6 = vpack.i.bf16 %v670_v5, %v669_v4  ;;  %v718_v7 = vpack.c.bf16 %v669_v4, %v669_v4  ;;  %v719_v8 = vpack.c.bf16 %v670_v5, %v670_v5  ;;  %v726_v49 = vld [vmem:[%s2890_s6] sm:$0x3]  ;;  %vm1652_vm11 = vcmask 523264   ;;  %s1698_s14 = scalar_lea.sflag [#allocation4], %s2887_s27 }
  0x73   : > { %s3211_s18 = sld [smem:[#allocation30_spill]]  ;;  %v727_v50 = vunpack.c.0.s8 %v726_v49 }
  0x74   : > { %v806_v9 = vunpack.c.l.b16 %v718_v7  ;;  %v807_v10 = vunpack.c.l.b16 %v719_v8 }
  0x75   : > { %v728_v53 = vcvt.s32.f32 %v727_v50 }
  0x76   : > { %p655_p12 = scmp.lt.s32.totalorder %s3208_s17, 1  ;;  %v808_v11 = vpack.c.b16 %v807_v10, %v806_v9 }
  0x77   : > { %p657_p4 = scmp.lt.s32.totalorder %s3209_s9, 1  ;;  %v1956_v55 = vadd.f32 -1.0, %v728_v53 }
  0x78   : > { %s2913_s24 = scalar_select %p655_p12, %s3208_s17, 1  ;;  %v2920_v0 = vld [vmem:[%s3210_s28] sm:$0xf]  ;;  %v813_v12 = vsel %vm731_vm1, %v808_v11, 0 }
  0x79   : > { %s658_s7 = scalar_select %p657_p4, %s3209_s9, 1  ;;  %v737_v1 = vsel %vm735_vm0, %v2920_v0, 0  ;;  %v730_v58 = vmul.f32 1e+20, %v1956_v55 }
  0x7a   : > { %s1953_s10 = sshll.u32 %s2913_s24, 1  ;;  %746 = vmatpush.bf16.msra.mxu0 %v737_v1  ;;  %762 = vmatpush.bf16.msra.mxu1 %v737_v1  ;;  %s1955_s21 = sshll.u32 %s2913_s24, 3 }
  0x7b   : > { %s660_s0 = sadd.s32 %s1953_s10, %s658_s7  ;;  %778 = vmatpush.bf16.msra.mxu2 %v737_v1  ;;  %794 = vmatpush.bf16.msra.mxu3 %v737_v1  ;;  %s2604_s7 = smov 104  }
  0x7c   : > { %s1954_s2 = sshll.u32 %s660_s0, 3  ;;  %2190 = vrot.lane.b32.xlu2 %v2184_v6, %s2604_s7  ;;  %s3215_s24 = sld [smem:[#allocation41_spill]] }
  0x7d   : > { %s662_s3 = scalar_lea.vmem %s3211_s18, %s1954_s2  ;;  %s3213_s2 = sld [smem:[#allocation39_spill]] }
  0x7e   : > { %v2927_v2 = vld [vmem:[%s662_s3] sm:$0xff]  ;;  %822 = vmatpush.bf16.xpose.msrb.mxu0 %v813_v12 }
  0x7f   : > { %685 = vrot.lane.b32.xlu1 %v2927_v2, %s2602_s16  ;;  %v694_v3 = vpack.c.bf16 %v2927_v2, %v2927_v2  ;;  %688 = vrot.lane.b32.xlu0 %v2927_v2, %s2603_s8 }
  0x81   : > { %1957 = vmatmul.msk.bf16.vlgmr.msra.gmra.mxu0 %vm731_vm1, %v694_v3 }
  0x82   : > { %s3216_s0 = smov %s3215_s24 }
  0x84   : > { %2195 = vrot.lane.b32.xlu2 %v2184_v6, %s2602_s16 }
  0x86   : > { %960 = vmatpush.bf16.msra.mxu0 %v808_v11 }
  0x87   : > { %691 = vrot.lane.b32.xlu0 %v2927_v2, %s2604_s7  ;;  %2185 = vrot.lane.b32.xlu1 %v2184_v6, %s2603_s8 }
  0xd6   : > { %v2191_v22 = vpop.permute.xlu2 %2190 }
  0xd7   : > { %v2193_v33 = vunpack.i.h.bf16 %v2191_v22  ;;  %v2192_v34 = vunpack.i.l.bf16 %v2191_v22 }
  0xd9   : > { %v725_v41 = vpack.c.bf16 %v2193_v33, %v2193_v33  ;;  %v724_v42 = vpack.c.bf16 %v2192_v34, %v2192_v34 }
  0xdb   : > { %v879_v44 = vunpack.c.l.b16 %v725_v41  ;;  %v878_v45 = vunpack.c.l.b16 %v724_v42  ;;  %v676_v41 = vld [vmem:[#allocation10] sm:$0xf] }
  0xdc   : > { %v1025_v42 = vsel %vm735_vm0, %v676_v41, 0 }
  0xdd   : > { %v880_v47 = vpack.c.b16 %v879_v44, %v878_v45 }
  0xde   : > { %v2196_v23 = vpop.permute.xlu2 %2195 }
  0xdf   : > { %v2198_v24 = vunpack.i.h.bf16 %v2196_v23  ;;  %v2197_v25 = vunpack.i.l.bf16 %v2196_v23  ;;  %v885_v48 = vsel %vm731_vm1, %v880_v47, 0 }
  0xe0   : > { %894 = vmatpush.bf16.xpose.msrb.mxu3 %v885_v48 }
  0xe1   : > { %v721_v26 = vpack.c.bf16 %v2198_v24, %v2198_v24  ;;  %v720_v27 = vpack.c.bf16 %v2197_v25, %v2197_v25 }
  0xe3   : > { %v831_v28 = vunpack.c.l.b16 %v721_v26  ;;  %v830_v29 = vunpack.c.l.b16 %v720_v27 }
  0xe5   : > { %v832_v35 = vpack.c.b16 %v831_v28, %v830_v29 }
  0xe7   : > { %v837_v38 = vsel %vm731_vm1, %v832_v35, 0 }
  0xe8   : > { %846 = vmatpush.bf16.xpose.msrb.mxu1 %v837_v38 }
  0xf1   : > { %v686_v13 = vpop.permute.xlu1 %685  ;;  %v689_v15 = vpop.permute.xlu0 %688 }
  0xf2   : > { %v695_v14 = vpack.c.bf16 %v686_v13, %v686_v13  ;;  %v696_v16 = vpack.c.bf16 %v689_v15, %v689_v15 }
  0xf4   : > { %1958 = vmatmul.msk.bf16.vlgmr.msra.gmra.mxu1 %vm731_vm1, %v695_v14  ;;  %1959 = vmatmul.msk.bf16.vlgmr.msra.gmra.mxu2 %vm731_vm1, %v696_v16 }
  0xf5   : > { %977 = vmatpush.bf16.msra.mxu1 %v832_v35 }
  0xf9   : > { %v692_v17 = vpop.permute.xlu0 %691  ;;  %v2186_v30 = vpop.permute.xlu1 %2185 }
  0xfa   : > { %v697_v18 = vpack.c.bf16 %v692_v17, %v692_v17  ;;  %v2188_v31 = vunpack.i.h.bf16 %v2186_v30  ;;  %v2187_v32 = vunpack.i.l.bf16 %v2186_v30 }
  0xfc   : > { %1960 = vmatmul.msk.bf16.vlgmr.msra.gmra.mxu3 %vm731_vm1, %v697_v18  ;;  %v723_v36 = vpack.c.bf16 %v2188_v31, %v2188_v31  ;;  %v722_v37 = vpack.c.bf16 %v2187_v32, %v2187_v32 }
  0xfd   : > { %1011 = vmatpush.bf16.msra.mxu3 %v880_v47 }
  0xfe   : > { %v748_v19 = vpop.f32.mrf.mxu0  ;;  %v855_v39 = vunpack.c.l.b16 %v723_v36  ;;  %v854_v40 = vunpack.c.l.b16 %v722_v37 }
  0xff   : > { %v800_v20 = vpack.c.bf16 %v748_v19, %v748_v19 }
 0x100   : > { %v856_v43 = vpack.c.b16 %v855_v39, %v854_v40 }
 0x101   : > { %1961 = vmatmul.msk.bf16.vlgmr.msrb.gmra.mxu0 %vm731_vm1, %v800_v20 }
 0x102   : > { %v861_v46 = vsel %vm731_vm1, %v856_v43, 0  ;;  %1034 = vmatpush.bf16.msrb.mxu0 %v1025_v42 }
 0x103   : > { %870 = vmatpush.bf16.xpose.msrb.mxu2 %v861_v46 }
 0x106   : > { %v750_v21 = vpop.f32.mrf.mxu0 }
 0x10b   : > { %994 = vmatpush.bf16.msra.mxu2 %v856_v43 }
 0x171   : > { %v764_v51 = vpop.f32.mrf.mxu1 }
 0x172   : > { %v801_v52 = vpack.c.bf16 %v764_v51, %v764_v51 }
 0x174   : > { %1962 = vmatmul.msk.bf16.vlgmr.msrb.gmra.mxu1 %vm731_vm1, %v801_v52 }
 0x177   : > { %v780_v54 = vpop.f32.mrf.mxu2 }
 0x178   : > { %v802_v56 = vpack.c.bf16 %v780_v54, %v780_v54 }
 0x179   : > { %v766_v57 = vpop.f32.mrf.mxu1 }
 0x17a   : > { %1963 = vmatmul.msk.bf16.vlgmr.msrb.gmra.mxu2 %vm731_vm1, %v802_v56 }
 0x17e   : > { %v824_v59 = vpop.f32.mrf.mxu0 }
 0x17f   : > { %v782_v60 = vpop.f32.mrf.mxu2  ;;  %v796_v61 = vpop.f32.mrf.mxu3  ;;  %v825_v62 = vadd.f32 %v824_v59, %v730_v58 }
 0x180   : > { %v803_v63 = vpack.c.bf16 %v796_v61, %v796_v61  ;;  %v677_v60 = vld [vmem:[#allocation10 + $0x4] sm:$0xf] }
 0x181   : > { %v901_v1 = vsel %vm900_vm2, %v825_v62, -inf  ;;  %v1044_v61 = vsel %vm735_vm0, %v677_v60, 0 }
 0x182   : > { %1964 = vmatmul.msk.bf16.vlgmr.msrb.gmra.mxu3 %vm731_vm1, %v803_v63  ;;  %902 = vmax.xlane.f32.xlu2 %v901_v1 }
 0x183   : > { %1053 = vmatpush.bf16.msrb.mxu1 %v1044_v61  ;;  %v672_v61 = vld [vmem:[%s2880_s15] sm:$0xff]  ;;  %s1952_s15 = sshll.u32 %s2887_s27, 3 }
 0x186   : > { %v826_v3 = vpop.f32.mrf.mxu0 }
 0x187   : > { %v798_v4 = vpop.f32.mrf.mxu3 }
 0x1f1   : > { %v848_v5 = vpop.f32.mrf.mxu1 }
 0x1f2   : > { %v849_v6 = vadd.f32 %v848_v5, %v730_v58 }
 0x1f4   : > { %v904_v7 = vsel %vm900_vm2, %v849_v6, -inf }
 0x1f5   : > { %905 = vmax.xlane.f32.xlu2 %v904_v7  ;;  %v903_v8 = vpop.xlane.xlu2 %902 }
 0x1f6   : > { %v913_v9 = vsub.f32 %v825_v62, %v903_v8  ;;  %v679_v62 = vld [vmem:[#allocation10 + $0xc] sm:$0xf] }
 0x1f7   : > { %v1082_v63 = vsel %vm735_vm0, %v679_v62, 0  ;;  %v1165_v62 = vpack.c.bf16 %v672_v61, %v672_v61 }
 0x1f8   : > { %v917_v10 = vmul.f32 1.442695, %v913_v9  ;;  %1091 = vmatpush.bf16.msrb.mxu3 %v1082_v63 }
 0x1f9   : > { %v850_v11 = vpop.f32.mrf.mxu1  ;;  %v1268_v63 = vsel %vm731_vm1, %v1165_v62, 0 }
 0x1fa   : > { %2201 = vpow2.f32 %v917_v10 }
 0x1fd   : > { %v872_v12 = vpop.f32.mrf.mxu2 }
 0x1fe   : > { %v873_v13 = vadd.f32 %v872_v12, %v730_v58 }
 0x200   : > { %v2202_v14 = vpop.eup %2201  ;;  %v907_v15 = vsel %vm900_vm2, %v873_v13, -inf }
 0x201   : > { %908 = vmax.xlane.f32.xlu0 %v907_v15  ;;  %v925_v16 = vsel %vm900_vm2, %v2202_v14, 0.0 }
 0x202   : > { %926 = vadd.xlane.f32.xlu2 %v925_v16 }
 0x205   : > { %v874_v17 = vpop.f32.mrf.mxu2  ;;  %v896_v18 = vpop.f32.mrf.mxu3 }
 0x206   : > { %v897_v19 = vadd.f32 %v896_v18, %v730_v58  ;;  %v678_v58 = vld [vmem:[#allocation10 + $0x8] sm:$0xf] }
 0x207   : > { %v1063_v59 = vsel %vm735_vm0, %v678_v58, 0 }
 0x208   : > { %v910_v20 = vsel %vm900_vm2, %v897_v19, -inf  ;;  %1072 = vmatpush.bf16.msrb.mxu2 %v1063_v59 }
 0x209   : > { %911 = vmax.xlane.f32.xlu1 %v910_v20 }
 0x20d   : > { %v898_v21 = vpop.f32.mrf.mxu3 }
 0x268   : > { %v906_v22 = vpop.xlane.xlu2 %905 }
 0x269   : > { %v914_v26 = vsub.f32 %v849_v6, %v906_v22 }
 0x26b   : > { %v919_v28 = vmul.f32 1.442695, %v914_v26 }
 0x274   : > { %v909_v23 = vpop.xlane.xlu0 %908 }
 0x275   : > { %v915_v24 = vsub.f32 %v873_v13, %v909_v23  ;;  %v927_v25 = vpop.xlane.xlu2 %926 }
 0x276   : > { %2203 = vrcp.f32 %v927_v25 }
 0x277   : > { %v921_v27 = vmul.f32 1.442695, %v915_v24 }
 0x279   : > { %2205 = vpow2.f32 %v921_v27 }
 0x27a   : > { %2207 = vpow2.f32 %v919_v28 }
 0x27c   : > { %v2204_v29 = vpop.eup %2203  ;;  %v912_v30 = vpop.xlane.xlu1 %911 }
 0x27d   : > { %v941_v31 = vmul.f32 %v2204_v29, %v2202_v14  ;;  %v916_v32 = vsub.f32 %v897_v19, %v912_v30  ;;  %v2978_v19 = vld [vmem:[#allocation13] sm:$0xff] }
 0x27e   : > { %v1105_v24 = vperm.slane %v2978_v19, 0 }
 0x27f   : > { %v2206_v33 = vpop.eup %2205  ;;  %v945_v34 = vpack.c.bf16 %v941_v31, %v941_v31  ;;  %v923_v35 = vmul.f32 1.442695, %v916_v32  ;;  %v2605_v31 = vmov 32.0   ;;  %v1189_v32 = vunpack.c.l.b16 %v2920_v0 }
 0x280   : > { %v931_v36 = vsel %vm900_vm2, %v2206_v33, 0.0  ;;  %v2208_v37 = vpop.eup %2207 }
 0x281   : > { %2209 = vpow2.f32 %v923_v35  ;;  %932 = vadd.xlane.f32.xlu0 %v931_v36  ;;  %1965 = vmatmul.msk.bf16.vlgmr.msra.gmra.mxu0 %vm900_vm2, %v945_v34  ;;  %v928_v40 = vsel %vm900_vm2, %v2208_v37, 0.0 }
 0x287   : > { %v2210_v38 = vpop.eup %2209 }
 0x288   : > { %v934_v39 = vsel %vm900_vm2, %v2210_v38, 0.0 }
 0x289   : > { %935 = vadd.xlane.f32.xlu1 %v934_v39  ;;  %929 = vadd.xlane.f32.xlu0 %v928_v40 }
 0x2f4   : > { %v933_v43 = vpop.xlane.xlu0 %932 }
 0x2f5   : > { %2211 = vrcp.f32 %v933_v43 }
 0x2fb   : > { %v2212_v44 = vpop.eup %2211 }
 0x2fc   : > { %v943_v45 = vmul.f32 %v2212_v44, %v2206_v33  ;;  %v936_v46 = vpop.xlane.xlu1 %935  ;;  %v930_v47 = vpop.xlane.xlu0 %929  ;;  %v1190_v33 = vpack.c.b16 %v1189_v32, %v1189_v32 }
 0x2fd   : > { %2213 = vrcp.f32 %v936_v46 }
 0x2fe   : > { %v947_v48 = vpack.c.bf16 %v943_v45, %v943_v45  ;;  %2215 = vrcp.f32 %v930_v47  ;;  %v962_v49 = vpop.f32.mrf.mxu0  ;;  %1191 = vrot.lane.b32.xlu0 %v1190_v33, %s2602_s16 }
 0x2ff   : > { %v1017_v50 = vpack.c.bf16 %v962_v49, %v962_v49  ;;  %2217 = vrcp.f32 %v2605_v31 }
 0x300   : > { %1967 = vmatmul.msk.bf16.vlgmr.msra.gmra.mxu2 %vm900_vm2, %v947_v48 }
 0x301   : > { %1969 = vmatmul.msk.bf16.vlgmr.msrb.gmra.mxu0 %vm731_vm1, %v1017_v50 }
 0x303   : > { %v2214_v51 = vpop.eup %2213 }
 0x304   : > { %v2216_v52 = vpop.eup %2215  ;;  %v944_v53 = vmul.f32 %v2214_v51, %v2210_v38 }
 0x305   : > { %v942_v54 = vmul.f32 %v2216_v52, %v2208_v37  ;;  %v2218_v34 = vpop.eup %2217 }
 0x306   : > { %v948_v55 = vpack.c.bf16 %v944_v53, %v944_v53  ;;  %v964_v56 = vpop.f32.mrf.mxu0  ;;  %v1112_v35 = vmul.f32 32.0, %v2218_v34  ;;  %vm1116_vm4 = vweird.f32 %v2218_v34 }
 0x307   : > { %v946_v57 = vpack.c.bf16 %v942_v54, %v942_v54  ;;  %v1137_v54 = vperm.slane %v2978_v19, 1 }
 0x308   : > { %1968 = vmatmul.msk.bf16.vlgmr.msra.gmra.mxu3 %vm900_vm2, %v948_v55  ;;  %v1113_v36 = vsub.f32 1.0, %v1112_v35 }
 0x309   : > { %1966 = vmatmul.msk.bf16.vlgmr.msra.gmra.mxu1 %vm900_vm2, %v946_v57  ;;  %v1139_v57 = vperm.slane %v2978_v19, 2 }
 0x30a   : > { %v1114_v37 = vmul.f32 %v2218_v34, %v1113_v36 }
 0x30c   : > { %v1115_v38 = vadd.f32 %v2218_v34, %v1114_v37 }
 0x30e   : > { %v2986_v39 = vsel %vm1116_vm4, %v2218_v34, %v1115_v38 }
 0x370   : > { %v1192_v0 = vpop.permute.xlu0 %1191 }
 0x371   : > { %v1197_v44 = vsel %vm735_vm0, %v1192_v0, 0 }
 0x372   : > { %1206 = vmatpush.bf16.msra.mxu0 %v1197_v44  ;;  %1254 = vmatpush.bf16.msra.mxu3 %v1197_v44 }
 0x373   : > { %1222 = vmatpush.bf16.msra.mxu1 %v1197_v44  ;;  %1238 = vmatpush.bf16.msra.mxu2 %v1197_v44 }
 0x376   : > { %1277 = vmatpush.bf16.xpose.msrb.mxu0 %v1268_v63 }
 0x37e   : > { %v1036_v1 = vpop.f32.mrf.mxu0 }
 0x37f   : > { %v1098_v16 = vsel %vm1097_vm3, %v1036_v1, 0.0 }
 0x383   : > { %v996_v3 = vpop.f32.mrf.mxu2 }
 0x384   : > { %v1019_v4 = vpack.c.bf16 %v996_v3, %v996_v3 }
 0x386   : > { %v979_v5 = vpop.f32.mrf.mxu1  ;;  %1971 = vmatmul.msk.bf16.vlgmr.msrb.gmra.mxu2 %vm731_vm1, %v1019_v4  ;;  %v1038_v6 = vpop.f32.mrf.mxu0 }
 0x387   : > { %v1018_v7 = vpack.c.bf16 %v979_v5, %v979_v5 }
 0x389   : > { %1970 = vmatmul.msk.bf16.vlgmr.msrb.gmra.mxu1 %vm731_vm1, %v1018_v7 }
 0x38b   : > { %v998_v8 = vpop.f32.mrf.mxu2  ;;  %v1013_v9 = vpop.f32.mrf.mxu3 }
 0x38c   : > { %v1020_v10 = vpack.c.bf16 %v1013_v9, %v1013_v9 }
 0x38e   : > { %v981_v11 = vpop.f32.mrf.mxu1  ;;  %1972 = vmatmul.msk.bf16.vlgmr.msrb.gmra.mxu3 %vm731_vm1, %v1020_v10 }
 0x393   : > { %v1015_v12 = vpop.f32.mrf.mxu3 }
 0x406   : > { %v1055_v13 = vpop.f32.mrf.mxu1 }
 0x407   : > { %v1099_v15 = vsel %vm1097_vm3, %v1055_v13, 0.0 }
 0x408   : > { %v1100_v20 = vadd.f32 %v1099_v15, %v1098_v16 }
 0x409   : > { %v1074_v14 = vpop.f32.mrf.mxu2 }
 0x40a   : > { %v1101_v17 = vsel %vm1097_vm3, %v1074_v14, 0.0 }
 0x40b   : > { %v1102_v21 = vadd.f32 %v1101_v17, %v1100_v20 }
 0x40e   : > { %v1057_v18 = vpop.f32.mrf.mxu1 }
 0x411   : > { %v1076_v22 = vpop.f32.mrf.mxu2  ;;  %v1093_v23 = vpop.f32.mrf.mxu3 }
 0x412   : > { %v1103_v25 = vsel %vm1097_vm3, %v1093_v23, 0.0 }
 0x413   : > { %v1104_v26 = vadd.f32 %v1103_v25, %v1102_v21 }
 0x415   : > { %v1106_v27 = vadd.f32 %v1105_v24, %v1104_v26  ;;  %v1183_v24 = vld [vmem:[%s2896_s11] sm:$0x3]  ;;  %s3212_s11 = sld [smem:[#allocation32_spill]] }
 0x416   : > { %v1184_v25 = vunpack.c.0.s8 %v1183_v24 }
 0x417   : > { %v1107_v28 = vadd.f32 %v1106_v27, %v2927_v2 }
 0x419   : > { %v1095_v29 = vpop.f32.mrf.mxu3  ;;  %v1108_v30 = vsel %vm1097_vm3, %v1107_v28, 0.0 }
 0x41a   : > { %1109 = vadd.xlane.f32.xlu1 %v1108_v30 }
 0x41b   : > { %s666_s10 = scalar_lea.vmem %s3212_s11, %s1955_s21 }
 0x48d   : > { %v1110_v2 = vpop.xlane.xlu1 %1109 }
 0x48e   : > { %v1118_v40 = vmul.f32 %v2986_v39, %v1110_v2 }
 0x490   : > { %v1119_v41 = vsub.f32 %v1107_v28, %v1118_v40  ;;  %v1185_v28 = vcvt.s32.f32 %v1184_v25 }
 0x492   : > { %v1120_v42 = vmul.f32 %v1119_v41, %v1119_v41  ;;  %v1973_v29 = vadd.f32 -1.0, %v1185_v28 }
 0x494   : > { %v1121_v43 = vsel %vm1097_vm3, %v1120_v42, 0.0  ;;  %v1187_v33 = vmul.f32 1e+20, %v1973_v29 }
 0x495   : > { %1122 = vadd.xlane.f32.xlu2 %v1121_v43 }
 0x508   : > { %v1123_v45 = vpop.xlane.xlu2 %1122 }
 0x509   : > { %v1124_v46 = vmul.f32 %v1123_v45, %v2986_v39 }
 0x50b   : > { %v1125_v47 = vadd.f32 1e-05, %v1124_v46 }
 0x50d   : > { %2219 = vrsqrt.f32 %v1125_v47  ;;  %vm1132_vm6 = vweird.f32 %v1125_v47 }
 0x513   : > { %v2220_v48 = vpop.eup %2219 }
 0x514   : > { %v1127_v49 = vmul.f32 %v2220_v48, %v1125_v47  ;;  %vm1133_vm5 = vweird.f32 %v2220_v48 }
 0x515   : > { %vm1134_vm7 = vmor %vm1132_vm6, %vm1133_vm5 }
 0x516   : > { %v1128_v50 = vmul.f32 %v2220_v48, %v1127_v49 }
 0x518   : > { %v1129_v51 = vmul.f32 0.5, %v1128_v50 }
 0x51a   : > { %v1130_v52 = vsub.f32 1.5, %v1129_v51 }
 0x51c   : > { %v1131_v53 = vmul.f32 %v2220_v48, %v1130_v52 }
 0x51e   : > { %v1135_v55 = vsel %vm1134_vm7, %v2220_v48, %v1131_v53 }
 0x51f   : > { %v1136_v56 = vmul.f32 %v1135_v55, %v1119_v41  ;;  %v671_v55 = vld [vmem:[%s666_s10] sm:$0xff] }
 0x521   : > { %v1138_v58 = vmul.f32 %v1137_v54, %v1136_v56  ;;  %v1179_v56 = vpack.c.bf16 %v671_v55, %v671_v55 }
 0x523   : > { %v2994_v59 = vadd.f32 %v1139_v57, %v1138_v58  ;;  %v1392_v57 = vsel %vm735_vm0, %v1179_v56, 0 }
 0x525   : > { %1142 = vrot.lane.b32.xlu0 %v2994_v59, %s2602_s16  ;;  %1148 = vrot.lane.b32.xlu2 %v2994_v59, %s2604_s7  ;;  %v1151_v60 = vpack.c.bf16 %v2994_v59, %v2994_v59 }
 0x526   : > { %1145 = vrot.lane.b32.xlu1 %v2994_v59, %s2603_s8 }
 0x527   : > { %1974 = vmatmul.msk.bf16.vlgmr.msra.gmra.mxu0 %vm731_vm1, %v1151_v60 }
 0x528   : > { %1401 = vmatpush.bf16.msra.mxu0 %v1392_v57 }
 0x52d   : > { %1162 = vrot.lane.b32.xlu0 %v672_v61, %s2604_s7  ;;  %1156 = vrot.lane.b32.xlu2 %v672_v61, %s2602_s16 }
 0x52e   : > { %1159 = vrot.lane.b32.xlu1 %v672_v61, %s2603_s8 }
 0x57f   : > { %v1149_v1 = vpop.permute.xlu2 %1148 }
 0x580   : > { %v1154_v3 = vpack.c.bf16 %v1149_v1, %v1149_v1 }
 0x582   : > { %1977 = vmatmul.msk.bf16.vlgmr.msra.gmra.mxu3 %vm731_vm1, %v1154_v3 }
 0x587   : > { %v1157_v14 = vpop.permute.xlu2 %1156 }
 0x588   : > { %v1166_v16 = vpack.c.bf16 %v1157_v14, %v1157_v14 }
 0x58a   : > { %v1287_v18 = vsel %vm731_vm1, %v1166_v16, 0 }
 0x58b   : > { %1296 = vmatpush.bf16.xpose.msrb.mxu1 %v1287_v18 }
 0x597   : > { %v1143_v4 = vpop.permute.xlu0 %1142 }
 0x598   : > { %v1152_v5 = vpack.c.bf16 %v1143_v4, %v1143_v4  ;;  %v1146_v6 = vpop.permute.xlu1 %1145 }
 0x599   : > { %v1153_v7 = vpack.c.bf16 %v1146_v6, %v1146_v6 }
 0x59a   : > { %1975 = vmatmul.msk.bf16.vlgmr.msra.gmra.mxu1 %vm731_vm1, %v1152_v5 }
 0x59b   : > { %1976 = vmatmul.msk.bf16.vlgmr.msra.gmra.mxu2 %vm731_vm1, %v1153_v7 }
 0x59f   : > { %v1163_v11 = vpop.permute.xlu0 %1162 }
 0x5a0   : > { %v1168_v12 = vpack.c.bf16 %v1163_v11, %v1163_v11  ;;  %v1160_v15 = vpop.permute.xlu1 %1159 }
 0x5a1   : > { %v1167_v17 = vpack.c.bf16 %v1160_v15, %v1160_v15 }
 0x5a2   : > { %v1325_v13 = vsel %vm731_vm1, %v1168_v12, 0 }
 0x5a3   : > { %1334 = vmatpush.bf16.xpose.msrb.mxu3 %v1325_v13  ;;  %v1306_v20 = vsel %vm731_vm1, %v1167_v17, 0 }
 0x5a4   : > { %v1208_v8 = vpop.f32.mrf.mxu0  ;;  %1315 = vmatpush.bf16.xpose.msrb.mxu2 %v1306_v20  ;;  %v680_v20 = vld [vmem:[#allocation10 + $0x10] sm:$0xf] }
 0x5a5   : > { %v1260_v9 = vpack.c.bf16 %v1208_v8, %v1208_v8 }
 0x5a7   : > { %1978 = vmatmul.msk.bf16.vlgmr.msrb.gmra.mxu0 %vm731_vm1, %v1260_v9 }
 0x5ac   : > { %v1210_v10 = vpop.f32.mrf.mxu0 }
 0x605   : > { %v1256_v21 = vpop.f32.mrf.mxu3 }
 0x606   : > { %v1263_v22 = vpack.c.bf16 %v1256_v21, %v1256_v21  ;;  %v1472_v21 = vsel %vm735_vm0, %v680_v20, 0 }
 0x607   : > { %1481 = vmatpush.bf16.msrb.mxu0 %v1472_v21  ;;  %v2023_v21 = vld [vmem:[#allocation11 + $0x8] sm:$0xff] }
 0x608   : > { %1981 = vmatmul.msk.bf16.vlgmr.msrb.gmra.mxu3 %vm731_vm1, %v1263_v22 }
 0x60d   : > { %v1258_v23 = vpop.f32.mrf.mxu3 }
 0x617   : > { %v1224_v26 = vpop.f32.mrf.mxu1 }
 0x618   : > { %v1261_v27 = vpack.c.bf16 %v1224_v26, %v1224_v26 }
 0x61a   : > { %1979 = vmatmul.msk.bf16.vlgmr.msrb.gmra.mxu1 %vm731_vm1, %v1261_v27 }
 0x61e   : > { %v1240_v30 = vpop.f32.mrf.mxu2 }
 0x61f   : > { %v1262_v31 = vpack.c.bf16 %v1240_v30, %v1240_v30  ;;  %v1226_v32 = vpop.f32.mrf.mxu1 }
 0x621   : > { %1980 = vmatmul.msk.bf16.vlgmr.msrb.gmra.mxu2 %vm731_vm1, %v1262_v31 }
 0x624   : > { %v1279_v34 = vpop.f32.mrf.mxu0 }
 0x625   : > { %v1280_v35 = vadd.f32 %v1279_v34, %v1187_v33 }
 0x626   : > { %v1242_v36 = vpop.f32.mrf.mxu2 }
 0x627   : > { %v1340_v37 = vsel %vm731_vm1, %v1280_v35, -inf }
 0x628   : > { %1341 = vmax.xlane.f32.xlu2 %v1340_v37 }
 0x62c   : > { %v1281_v38 = vpop.f32.mrf.mxu0 }
 0x68b   : > { %v1336_v2 = vpop.f32.mrf.mxu3 }
 0x68c   : > { %v1337_v40 = vadd.f32 %v1336_v2, %v1187_v33 }
 0x68e   : > { %v1349_v41 = vsel %vm731_vm1, %v1337_v40, -inf }
 0x68f   : > { %1350 = vmax.xlane.f32.xlu0 %v1349_v41 }
 0x693   : > { %v1338_v42 = vpop.f32.mrf.mxu3 }
 0x697   : > { %v1298_v43 = vpop.f32.mrf.mxu1 }
 0x698   : > { %v1299_v52 = vadd.f32 %v1298_v43, %v1187_v33  ;;  %v682_v43 = vld [vmem:[#allocation10 + $0x18] sm:$0xf] }
 0x69a   : > { %v1343_v54 = vsel %vm731_vm1, %v1299_v52, -inf }
 0x69b   : > { %v1342_v0 = vpop.xlane.xlu2 %1341 }
 0x69c   : > { %v1352_v44 = vsub.f32 %v1280_v35, %v1342_v0  ;;  %v1510_v0 = vsel %vm735_vm0, %v682_v43, 0 }
 0x69e   : > { %v1356_v45 = vmul.f32 1.442695, %v1352_v44  ;;  %v681_v44 = vld [vmem:[#allocation10 + $0x14] sm:$0xf] }
 0x69f   : > { %v1300_v46 = vpop.f32.mrf.mxu1 }
 0x6a0   : > { %2221 = vpow2.f32 %v1356_v45  ;;  %v1491_v45 = vsel %vm735_vm0, %v681_v44, 0  ;;  %v683_v46 = vld [vmem:[#allocation10 + $0x1c] sm:$0xf] }
 0x6a4   : > { %v1317_v47 = vpop.f32.mrf.mxu2 }
 0x6a5   : > { %v1318_v48 = vadd.f32 %v1317_v47, %v1187_v33  ;;  %v1529_v47 = vsel %vm735_vm0, %v683_v46, 0 }
 0x6a6   : > { %v2222_v49 = vpop.eup %2221 }
 0x6a7   : > { %v1346_v50 = vsel %vm731_vm1, %v1318_v48, -inf  ;;  %v1364_v51 = vsel %vm731_vm1, %v2222_v49, 0.0 }
 0x6a8   : > { %1347 = vmax.xlane.f32.xlu1 %v1346_v50  ;;  %1365 = vadd.xlane.f32.xlu2 %v1364_v51 }
 0x6ac   : > { %v1319_v53 = vpop.f32.mrf.mxu2 }
 0x6b0   : > { %1344 = vmax.xlane.f32.xlu1 %v1343_v54 }
 0x6c9   : > { %1173 = vrot.lane.b32.xlu1 %v671_v55, %s2603_s8  ;;  %s3214_s8 = sld [smem:[#allocation38_spill]] }
 0x702   : > { %v1351_v1 = vpop.xlane.xlu0 %1350 }
 0x703   : > { %v1355_v8 = vsub.f32 %v1337_v40, %v1351_v1 }
 0x705   : > { %v1362_v11 = vmul.f32 1.442695, %v1355_v8  ;;  %v1551_v8 = vperm.slane %v2978_v19, 3 }
 0x71b   : > { %v1348_v58 = vpop.xlane.xlu1 %1347  ;;  %v1366_v60 = vpop.xlane.xlu2 %1365 }
 0x71c   : > { %v1354_v61 = vsub.f32 %v1318_v48, %v1348_v58  ;;  %2223 = vrcp.f32 %v1366_v60 }
 0x71e   : > { %v1360_v62 = vmul.f32 1.442695, %v1354_v61 }
 0x720   : > { %2225 = vpow2.f32 %v1360_v62 }
 0x722   : > { %v2224_v63 = vpop.eup %2223 }
 0x723   : > { %v1380_v3 = vmul.f32 %v2224_v63, %v2222_v49  ;;  %v1345_v4 = vpop.xlane.xlu1 %1344 }
 0x724   : > { %v1353_v5 = vsub.f32 %v1299_v52, %v1345_v4 }
 0x725   : > { %v1384_v6 = vpack.c.bf16 %v1380_v3, %v1380_v3 }
 0x726   : > { %v2226_v7 = vpop.eup %2225  ;;  %v1358_v9 = vmul.f32 1.442695, %v1353_v5 }
 0x727   : > { %v1370_v10 = vsel %vm731_vm1, %v2226_v7, 0.0  ;;  %1982 = vmatmul.msk.bf16.vlgmr.msra.gmra.mxu0 %vm731_vm1, %v1384_v6 }
 0x728   : > { %2227 = vpow2.f32 %v1358_v9  ;;  %1371 = vadd.xlane.f32.xlu0 %v1370_v10  ;;  %1610 = vmatpush.bf16.msra.mxu0 %v2023_v21 }
 0x729   : > { %2229 = vpow2.f32 %v1362_v11 }
 0x72e   : > { %v2228_v12 = vpop.eup %2227 }
 0x72f   : > { %v1367_v13 = vsel %vm731_vm1, %v2228_v12, 0.0  ;;  %v2230_v14 = vpop.eup %2229 }
 0x730   : > { %1368 = vadd.xlane.f32.xlu2 %v1367_v13  ;;  %v1373_v15 = vsel %vm731_vm1, %v2230_v14, 0.0 }
 0x738   : > { %1374 = vadd.xlane.f32.xlu2 %v1373_v15 }
 0x73b   : > { %v1174_v16 = vpop.permute.xlu1 %1173 }
 0x73c   : > { %1176 = vrot.lane.b32.xlu0 %v671_v55, %s2604_s7  ;;  %v1181_v17 = vpack.c.bf16 %v1174_v16, %v1174_v16  ;;  %s2017_s7 = sshll.u32 %s3208_s17, 1  ;;  %s654_s17 = scalar_lea.vmem [#allocation14], %s1952_s15 }
 0x73d   : > { %s1708_s21 = sadd.s32 %s3209_s9, %s2017_s7  ;;  %s1712_s9 = sshll.u32 %s654_s17, 4  ;;  %s1713_s9 = int_to_ptr.vmem [resolvable:$true] %s1712_s9 }
 0x73e   : > { %v1430_v18 = vsel %vm735_vm0, %v1181_v17, 0  ;;  %s2018_s6 = sshll.u32 %s1708_s21, 3 }
 0x73f   : > { %1439 = vmatpush.bf16.msra.mxu2 %v1430_v18  ;;  %s1710_s19 = scalar_lea.hbm %s3215_s24, %s2018_s6 }
 0x740   : > { %s1714_s28 = sshll.u32 %s1710_s19, 4  ;;  %s1715_s28 = int_to_ptr.hbm [resolvable:$true] %s1714_s28 }
 0x741   : > { %s2465_s4 = sshra.s32 %s1715_s28, 4  ;;  %s2466_s4 = int_to_ptr.hbm [resolvable:$true] %s2465_s4 }
 0x742   : > { %s2467_s18 = scalar_lea.hbm %s2466_s4, 8  ;;  %p2472_p8 = scmp.lt.s32.totalorder %s2466_s4, %s3216_s0 }
 0x743   : > { %1519 = vmatpush.bf16.msrb.mxu2 %v1510_v0  ;;  %p2468_p1 = scmp.ne.s32.totalorder %s2466_s4, %s2467_s18 }
 0x745   : > { %p2469_p0 = pnand %p2468_p1, %p2783_p3 }
 0x747   : > { %p2470_p6 = pneg %p2469_p0 }
 0x750   : > { %1170 = vrot.lane.b32.xlu2 %v671_v55, %s2602_s16 }
 0x79b   : > { %v1372_v22 = vpop.xlane.xlu0 %1371 }
 0x79c   : > { %2231 = vrcp.f32 %v1372_v22  ;;  %v2022_v22 = vld [vmem:[#allocation11] sm:$0xff] }
 0x79d   : > { %1611 = vmatpush.bf16.msra.mxu0 %v2022_v22 }
 0x7a2   : > { %v2232_v23 = vpop.eup %2231 }
 0x7a3   : > { %v1382_v24 = vmul.f32 %v2232_v23, %v2226_v7  ;;  %v1369_v25 = vpop.xlane.xlu2 %1368 }
 0x7a4   : > { %v1403_v26 = vpop.f32.mrf.mxu0  ;;  %2233 = vrcp.f32 %v1369_v25  ;;  %v2026_v25 = vld [vmem:[%s3213_s2 + $0x10] sm:$0xff] }
 0x7a5   : > { %v1386_v27 = vpack.c.bf16 %v1382_v24, %v1382_v24  ;;  %v1464_v28 = vpack.c.bf16 %v1403_v26, %v1403_v26 }
 0x7a7   : > { %1984 = vmatmul.msk.bf16.vlgmr.msra.gmra.mxu2 %vm731_vm1, %v1386_v27  ;;  %1986 = vmatmul.msk.bf16.vlgmr.msrb.gmra.mxu0 %vm731_vm1, %v1464_v28 }
 0x7aa   : > { %v2234_v33 = vpop.eup %2233 }
 0x7ab   : > { %v1375_v29 = vpop.xlane.xlu2 %1374  ;;  %v1381_v38 = vmul.f32 %v2234_v33, %v2228_v12  ;;  %v1576_v33 = vperm.slane %v2978_v19, 4 }
 0x7ac   : > { %2235 = vrcp.f32 %v1375_v29  ;;  %v1405_v30 = vpop.f32.mrf.mxu0 }
 0x7ad   : > { %v1385_v42 = vpack.c.bf16 %v1381_v38, %v1381_v38 }
 0x7ae   : > { %v1177_v31 = vpop.permute.xlu0 %1176 }
 0x7af   : > { %v1182_v32 = vpack.c.bf16 %v1177_v31, %v1177_v31 }
 0x7b1   : > { %v1449_v34 = vsel %vm735_vm0, %v1182_v32, 0 }
 0x7b2   : > { %v2236_v35 = vpop.eup %2235  ;;  %1458 = vmatpush.bf16.msra.mxu3 %v1449_v34 }
 0x7b3   : > { %v1383_v36 = vmul.f32 %v2236_v35, %v2230_v14  ;;  %v1171_v37 = vpop.permute.xlu2 %1170  ;;  %v1578_v35 = vperm.slane %v2978_v19, 5 }
 0x7b4   : > { %v1180_v2 = vpack.c.bf16 %v1171_v37, %v1171_v37 }
 0x7b5   : > { %v1387_v40 = vpack.c.bf16 %v1383_v36, %v1383_v36 }
 0x7b6   : > { %v1411_v41 = vsel %vm735_vm0, %v1180_v2, 0  ;;  %1538 = vmatpush.bf16.msrb.mxu3 %v1529_v47  ;;  %v1627_v47 = vperm.slane %v2978_v19, 6 }
 0x7b7   : > { %1420 = vmatpush.bf16.msra.mxu1 %v1411_v41  ;;  %1985 = vmatmul.msk.bf16.vlgmr.msra.gmra.mxu3 %vm731_vm1, %v1387_v40  ;;  %v2025_v40 = vld [vmem:[%s3213_s2 + $0x8] sm:$0xff]  ;;  %v2024_v41 = vld [vmem:[%s3213_s2] sm:$0xff] }
 0x7ba   : > { %1983 = vmatmul.msk.bf16.vlgmr.msra.gmra.mxu1 %vm731_vm1, %v1385_v42  ;;  %v2199_v42 = vld [vmem:[%s3214_s8] ss:$0 sm:$0xff]  ;;  %s2471_s8 = scalar_lea.hbm %s3216_s0, 32 }
 0x7bb   : > { %1500 = vmatpush.bf16.msrb.mxu1 %v1491_v45  ;;  %p2473_p9 = scmp.lt.s32.totalorder %s2471_s8, %s2467_s18 }
 0x7bd   : > { %p2474_p5 = por %p2473_p9, %p2472_p8 }
 0x7bf   : > { %p2475_p10 = pnand %p2474_p5, %p2470_p6 }
 0x824   : > { %v1483_v48 = vpop.f32.mrf.mxu0 }
 0x825   : > { %v1544_v1 = vsel %vm1097_vm3, %v1483_v48, 0.0 }
 0x82a   : > { %v1441_v49 = vpop.f32.mrf.mxu2 }
 0x82b   : > { %v1466_v50 = vpack.c.bf16 %v1441_v49, %v1441_v49 }
 0x82c   : > { %v1485_v51 = vpop.f32.mrf.mxu0 }
 0x82d   : > { %1988 = vmatmul.msk.bf16.vlgmr.msrb.gmra.mxu2 %vm731_vm1, %v1466_v50 }
 0x832   : > { %v1443_v52 = vpop.f32.mrf.mxu2 }
 0x837   : > { %v1422_v53 = vpop.f32.mrf.mxu1 }
 0x838   : > { %v1465_v54 = vpack.c.bf16 %v1422_v53, %v1422_v53 }
 0x83a   : > { %v1460_v55 = vpop.f32.mrf.mxu3  ;;  %1987 = vmatmul.msk.bf16.vlgmr.msrb.gmra.mxu1 %vm731_vm1, %v1465_v54 }
 0x83b   : > { %v1467_v56 = vpack.c.bf16 %v1460_v55, %v1460_v55 }
 0x83d   : > { %1989 = vmatmul.msk.bf16.vlgmr.msrb.gmra.mxu3 %vm731_vm1, %v1467_v56 }
 0x83f   : > { %v1424_v57 = vpop.f32.mrf.mxu1 }
 0x842   : > { %v1462_v58 = vpop.f32.mrf.mxu3 }
 0x8b0   : > { %v1521_v60 = vpop.f32.mrf.mxu2 }
 0x8b1   : > { %v1547_v4 = vsel %vm1097_vm3, %v1521_v60, 0.0 }
 0x8b7   : > { %v1502_v61 = vpop.f32.mrf.mxu1 }
 0x8b8   : > { %v1523_v62 = vpop.f32.mrf.mxu2  ;;  %v1545_v63 = vsel %vm1097_vm3, %v1502_v61, 0.0 }
 0x8b9   : > { %v1546_v3 = vadd.f32 %v1545_v63, %v1544_v1 }
 0x8bb   : > { %v1548_v7 = vadd.f32 %v1547_v4, %v1546_v3 }
 0x8bf   : > { %v1504_v5 = vpop.f32.mrf.mxu1 }
 0x8c0   : > { %v1540_v6 = vpop.f32.mrf.mxu3 }
 0x8c1   : > { %v1549_v9 = vsel %vm1097_vm3, %v1540_v6, 0.0  ;;  %v1692_v6 = vperm.slane %v2978_v19, 7 }
 0x8c2   : > { %v1550_v10 = vadd.f32 %v1549_v9, %v1548_v7 }
 0x8c4   : > { %v1552_v11 = vadd.f32 %v1551_v8, %v1550_v10  ;;  %v2200_v8 = vld [vmem:[#allocation13 + $0x8] ss:$0 sm:$0xff] }
 0x8c6   : > { %v1553_v12 = vadd.f32 %v1552_v11, %v2994_v59  ;;  %v2027_v59 = vld [vmem:[%s3213_s2 + $0x18] sm:$0xff] }
 0x8c7   : > { %1660 = vmatpush.bf16.msra.mxu1 %v2027_v59 }
 0x8c8   : > { %v1542_v13 = vpop.f32.mrf.mxu3  ;;  %v1554_v14 = vsel %vm1097_vm3, %v1553_v12, 0.0 }
 0x8c9   : > { %1555 = vadd.xlane.f32.xlu0 %v1554_v14 }
 0x8cb   : > { %1661 = vmatpush.bf16.msra.mxu1 %v2026_v25 }
 0x8cf   : > { %1662 = vmatpush.bf16.msra.mxu1 %v2025_v40 }
 0x8d3   : > { %1663 = vmatpush.bf16.msra.mxu1 %v2024_v41 }
 0x93c   : > { %v1556_v15 = vpop.xlane.xlu0 %1555 }
 0x93d   : > { %v1557_v16 = vmul.f32 %v1556_v15, %v2986_v39 }
 0x93f   : > { %v1558_v17 = vsub.f32 %v1553_v12, %v1557_v16 }
 0x941   : > { %v1559_v18 = vmul.f32 %v1558_v17, %v1558_v17 }
 0x943   : > { %v1560_v20 = vsel %vm1097_vm3, %v1559_v18, 0.0 }
 0x944   : > { %1561 = vadd.xlane.f32.xlu1 %v1560_v20 }
 0x9b7   : > { %v1562_v23 = vpop.xlane.xlu1 %1561 }
 0x9b8   : > { %v1563_v24 = vmul.f32 %v1562_v23, %v2986_v39 }
 0x9ba   : > { %v1564_v26 = vadd.f32 1e-05, %v1563_v24 }
 0x9bc   : > { %2237 = vrsqrt.f32 %v1564_v26  ;;  %vm1571_vm9 = vweird.f32 %v1564_v26 }
 0x9c2   : > { %v2238_v27 = vpop.eup %2237 }
 0x9c3   : > { %v1566_v28 = vmul.f32 %v2238_v27, %v1564_v26  ;;  %vm1572_vm8 = vweird.f32 %v2238_v27 }
 0x9c4   : > { %vm1573_vm10 = vmor %vm1571_vm9, %vm1572_vm8 }
 0x9c5   : > { %v1567_v29 = vmul.f32 %v2238_v27, %v1566_v28 }
 0x9c7   : > { %v1568_v30 = vmul.f32 0.5, %v1567_v29 }
 0x9c9   : > { %v1569_v31 = vsub.f32 1.5, %v1568_v30 }
 0x9cb   : > { %v1570_v32 = vmul.f32 %v2238_v27, %v1569_v31 }
 0x9cd   : > { %v1574_v34 = vsel %vm1573_vm10, %v2238_v27, %v1570_v32 }
 0x9ce   : > { %v1575_v36 = vmul.f32 %v1574_v34, %v1558_v17 }
 0x9d0   : > { %v1577_v37 = vmul.f32 %v1576_v33, %v1575_v36 }
 0x9d2   : > { %v1579_v38 = vadd.f32 %v1578_v35, %v1577_v37 }
 0x9d4   : > { %v1580_v2 = vpack.c.bf16 %v1579_v38, %v1579_v38 }
 0x9d6   : > { %1998 = vmatmul.msk.bf16.vlgmr.msra.gmra.mxu0 %vm1097_vm3, %v1580_v2 }
 0xa53   : > { %v1613_v43 = vpop.f32.mrf.mxu0 }
 0xa54   : > { %v1614_v0 = vadd.f32 %v2199_v42, %v1613_v43 }
 0xa56   : > { %v1617_v44 = vmax.f32 %v1614_v0, 0.0 }
 0xa58   : > { %v1618_v45 = vpack.c.bf16 %v1617_v44, %v1617_v44 }
 0xa5a   : > { %2015 = vmatmul.msk.bf16.vlgmr.msra.gmra.mxu1 %vm1652_vm11, %v1618_v45 }
 0xa5b   : > { %v1615_v46 = vpop.f32.mrf.mxu0 }
 0xad7   : > { %v1665_v48 = vpop.f32.mrf.mxu1 }
 0xad8   : > { %v1666_v49 = vadd.f32 %v1665_v48, %v1627_v47 }
 0xada   : > { %v1669_v50 = vadd.f32 %v1666_v49, %v1579_v38 }
 0xadc   : > { %v1670_v51 = vsel %vm1097_vm3, %v1669_v50, 0.0 }
 0xadd   : > { %1671 = vadd.xlane.f32.xlu2 %v1670_v51 }
 0xadf   : > { %v1667_v52 = vpop.f32.mrf.mxu1 }
 0xb50   : > { %v1672_v53 = vpop.xlane.xlu2 %1671 }
 0xb51   : > { %v1673_v54 = vmul.f32 %v1672_v53, %v2986_v39 }
 0xb53   : > { %v1674_v55 = vsub.f32 %v1669_v50, %v1673_v54 }
 0xb55   : > { %v1675_v56 = vmul.f32 %v1674_v55, %v1674_v55 }
 0xb57   : > { %v1676_v57 = vsel %vm1097_vm3, %v1675_v56, 0.0 }
 0xb58   : > { %1677 = vadd.xlane.f32.xlu0 %v1676_v57 }
 0xbcb   : > { %v1678_v58 = vpop.xlane.xlu0 %1677 }
 0xbcc   : > { %v1679_v60 = vmul.f32 %v1678_v58, %v2986_v39 }
 0xbce   : > { %v1680_v61 = vadd.f32 1e-05, %v1679_v60 }
 0xbd0   : > { %2239 = vrsqrt.f32 %v1680_v61  ;;  %vm1687_vm13 = vweird.f32 %v1680_v61 }
 0xbd6   : > { %v2240_v62 = vpop.eup %2239 }
 0xbd7   : > { %v1682_v63 = vmul.f32 %v2240_v62, %v1680_v61  ;;  %vm1688_vm12 = vweird.f32 %v2240_v62 }
 0xbd8   : > { %vm1689_vm14 = vmor %vm1687_vm13, %vm1688_vm12 }
 0xbd9   : > { %v1683_v1 = vmul.f32 %v2240_v62, %v1682_v63 }
 0xbdb   : > { %v1684_v3 = vmul.f32 0.5, %v1683_v1 }
 0xbdd   : > { %v1685_v4 = vsub.f32 1.5, %v1684_v3 }
 0xbdf   : > { %v1686_v5 = vmul.f32 %v2240_v62, %v1685_v4 }
 0xbe1   : > { %v1690_v39 = vsel %vm1689_vm14, %v2240_v62, %v1686_v5 }
 0xbe2   : > { %v1691_v7 = vmul.f32 %v1690_v39, %v1674_v55 }
 0xbe4   : > { %v1693_v9 = vmul.f32 %v1692_v6, %v1691_v7 }
 0xbe6   : > { %v1695_v10 = vadd.f32 %v2200_v8, %v1693_v9 }
 0xbe8   : > { %1696 = vst.msk [vmem:[%s654_s17] sm:$0xff] %vm1097_vm3, %v1695_v10 }
 0xbe9   : > { %2478 = shalt.err (!%p2475_p10)
}
 0xbea   : > { %2048 = dma.vmem_to_hbm [thread:$0]  (%p2783_p3), %s1713_s9, 128, %s1715_s28, %s1698_s14  }
 0xbeb PF: > { %s3218_s27 = sld [smem:[#allocation22_spill]]  ;;  %p2084_p11 = scmp.ge.s32.totalorder %s2593_s13, 2 }
 0xbed   : > { %p2074_p13 = pnand %p2084_p11, %p2790_p7 }
 0xbef   : > { %p2075_p2 = pneg %p2074_p13 }
 0xbf1   : > { %s1726_s6 = sand.u32 1, %s3218_s27  }
 0xbf2   : > { %s1727_s11 = scalar_lea.sflag [#allocation4], %s1726_s6 }
 0xbf3   : > { %2548 = dma.done.wait (%p2075_p2), %s1727_s11, 128  }
 0xbf4   : > { %2550 = vsyncadd (%p2075_p2), %s1727_s11, 4294967168  ;;  %s35_s13 = sadd.s32 1, %s2593_s13   ;;  %s3220_s21 = sld [smem:[#allocation23_spill]] }
 0xbf5   : > { %p32_p12 = scmp.ge.s32.totalorder %s35_s13, 6   ;;  %s3221_s10 = smov %s3233_s22 }
 0xbf6   : > { %s3222_s19 = sld [smem:[#allocation29_spill]]  ;;  %s3223_s22 = smov %s2561_s23 }
 0xbf7   : > { %s3224_s23 = smov %s2858_s12  ;;  %s3225_s24 = smov %s2569_s25 }
 0xbf8   : > { %s3226_s25 = smov %s2573_s26  ;;  %s3227_s26 = smov %s2855_s20 }
 0xbf9   : > { %s3228_s27 = smov %s2585_s29  ;;  %s3229_s28 = smov %s2589_s30 }
 0xbfa   : > { %s3230_s29 = smov %s3221_s10  ;;  %34 = sbr.rel (!%p32_p12) target bundleno = 27 (0x1b), region = 168 }
 0xbfc   : > { %s3231_s30 = smov %s3222_s19 }
 0xbff   :  { %1733 = vsyncpa [#allocation3], 1 }
 0xc00   :  { %1735 = vsyncpa [#allocation3 + $0x1], 1 }
 0xc01   :  { %1736 = vsyncpa [#allocation6], 1 }
 0xc02   :  { %1738 = vsyncpa [#allocation6 + $0x1], 1 }
 0xc03   :  { %1739 = vsyncpa [#allocation9], 1 }
 0xc04   :  { %1741 = vsyncpa [#allocation9 + $0x1], 1 }
 0xc05   :  { %1742 = vsyncpa [#allocation12], 1 }
 0xc06   :  { %1743 = vsyncpa [#allocation4], 1 }
 0xc07   :  { %1745 = vsyncpa [#allocation4 + $0x1], 1 }

</bundles_post_ra>
